<compile_context>
chip_gen: v5e
topology: v5e:2x2
jax: 0.10.0
libtpu: 0.0.40
codegen_flags: <defaults>
</compile_context>

<pallas_src>
import functools
import math

import jax
import jax.numpy as jnp
from jax import lax
from jax.experimental import pallas as pl
from jax.experimental.pallas import tpu as pltpu

BN_EPS = 1e-5


# --------------------------------------------------------------------------------------
# Fused Baseblock kernel
# --------------------------------------------------------------------------------------
def _baseblock_kernel(*refs, s, Ho, Wo, Hq, cin, cout, has_dim_change):
    if has_dim_change:
        (xph_ref, w1_ref, b1_ref, w2_ref, b2_ref, wd_ref, bd_ref,
         out_ref, col1_ref, y1p_ref, col2_ref) = refs
    else:
        (xph_ref, w1_ref, b1_ref, w2_ref, b2_ref,
         out_ref, col1_ref, y1p_ref, col2_ref) = refs
        wd_ref = bd_ref = None

    k = 3
    M = Ho * Wo

    # ---- im2col for conv1 (bf16, straight from the input ref; no value reshapes) ------
    # tap (di, dj) of the stride-s conv lives in phase (di%s, dj%s) at offset (di//s, dj//s)
    for di in range(k):
        pa, oi = di % s, di // s
        for dj in range(k):
            pb, oj = dj % s, dj // s
            t = di * k + dj
            base = (pa * s + pb) * Hq
            win = xph_ref[0, base + oi:base + oi + Ho, oj:oj + Wo, :]     # (Ho, Wo, cin) bf16
            for i in range(Ho):
                col1_ref[i * Wo:(i + 1) * Wo, t * cin:(t + 1) * cin] = win[i]

    # ---- conv1 (3x3, stride s, pad 1) + bn1 + relu : ONE matmul, K = 9*cin -------------
    y1 = jnp.dot(col1_ref[...], w1_ref[...], preferred_element_type=jnp.float32)
    y1 = jnp.maximum(y1 + b1_ref[...], 0.0)                               # (M, cout) f32

    # ---- zero-bordered y1 in bf16 VMEM scratch (never touches HBM) ---------------------
    Hp1, Wp1 = Ho + 2, Wo + 2
    zrow = jnp.zeros((Wp1, cout), jnp.bfloat16)
    y1p_ref[0, :, :] = zrow
    y1p_ref[Hp1 - 1, :, :] = zrow
    zcol = jnp.zeros((Hp1, 1, cout), jnp.bfloat16)
    y1p_ref[:, 0:1, :] = zcol
    y1p_ref[:, Wp1 - 1:Wp1, :] = zcol
    for i in range(Ho):
        y1p_ref[1 + i, 1:1 + Wo, :] = y1[i * Wo:(i + 1) * Wo, :].astype(jnp.bfloat16)

    # ---- im2col for conv2 (3x3, stride 1, pad 1) from the bf16 scratch -----------------
    for di in range(k):
        for dj in range(k):
            t = di * k + dj
            win = y1p_ref[di:di + Ho, dj:dj + Wo, :]                      # (Ho, Wo, cout) bf16
            for i in range(Ho):
                col2_ref[i * Wo:(i + 1) * Wo, t * cout:(t + 1) * cout] = win[i]

    # ---- conv2 + bn2 : ONE matmul, K = 9*cout ------------------------------------------
    acc2 = jnp.dot(col2_ref[...], w2_ref[...], preferred_element_type=jnp.float32)
    acc2 = acc2 + b2_ref[...]

    # ---- residual path: conv1 tap (1,1) window is exactly x[s*i, s*j, :] ---------------
    res_in = col1_ref[:, 4 * cin:5 * cin]                                 # (M, cin) bf16
    if has_dim_change:
        res = jnp.dot(res_in, wd_ref[...], preferred_element_type=jnp.float32) + bd_ref[...]
    else:
        res = res_in.astype(jnp.float32)                                  # identity, f32 add

    out_ref[0] = jnp.maximum(acc2 + res, 0.0).astype(out_ref.dtype)       # (M, cout) bf16


# --------------------------------------------------------------------------------------
# Wrapper: pad (+ phase packing for stride>1) + pallas_call.  API is NHWC / bf16.
# --------------------------------------------------------------------------------------
def _space_to_phases(xpad, s):
    """(N, Hp, Wp, C) -> (N, s*s*Hq, Wq, C) with phase (a,b)[i,j] = xpad[a+s*i, b+s*j]."""
    N, Hp, Wp, C = xpad.shape
    Hq = -(-Hp // s)
    Wq = -(-Wp // s)
    xp = jnp.pad(xpad, ((0, 0), (0, Hq * s - Hp), (0, Wq * s - Wp), (0, 0)))
    xp = xp.reshape(N, Hq, s, Wq, s, C)
    xp = jnp.transpose(xp, (0, 2, 4, 1, 3, 5))            # (N, s, s, Hq, Wq, C)
    return xp.reshape(N, s * s * Hq, Wq, C), Hq, Wq


def baseblock_apply(x_nhwc, params, *, stride, has_dim_change):
    """Fused Baseblock on an NHWC activation; returns NHWC bfloat16."""
    N, H, W, cin = x_nhwc.shape
    cout = params["w1"].shape[-1]
    k, pad = 3, 1
    s = stride
    if not has_dim_change:
        assert s == 1 and cin == cout, "identity residual requires stride=1 and cin==cout"
    Ho = (H + 2 * pad - k) // s + 1
    Wo = (W + 2 * pad - k) // s + 1
    M = Ho * Wo

    x = x_nhwc.astype(jnp.bfloat16)
    xpad = jnp.pad(x, ((0, 0), (pad, pad), (pad, pad), (0, 0)))
    if s == 1:
        xph, Hq, Wq = xpad, H + 2 * pad, W + 2 * pad
    else:
        xph, Hq, Wq = _space_to_phases(xpad, s)

    w1 = params["w1"].astype(jnp.bfloat16).reshape(k * k * cin, cout)     # bn1 folded in
    b1 = params["b1"].reshape(1, cout).astype(jnp.float32)
    w2 = params["w2"].astype(jnp.bfloat16).reshape(k * k * cout, cout)    # bn2 folded in
    b2 = params["b2"].reshape(1, cout).astype(jnp.float32)

    inputs = [xph, w1, b1, w2, b2]
    in_specs = [
        pl.BlockSpec((1, s * s * Hq, Wq, cin), lambda n: (n, 0, 0, 0)),
        pl.BlockSpec((k * k * cin, cout), lambda n: (0, 0)),
        pl.BlockSpec((1, cout), lambda n: (0, 0)),
        pl.BlockSpec((k * k * cout, cout), lambda n: (0, 0)),
        pl.BlockSpec((1, cout), lambda n: (0, 0)),
    ]
    if has_dim_change:
        inputs += [params["wd"].astype(jnp.bfloat16),
                   params["bd"].reshape(1, cout).astype(jnp.float32)]
        in_specs += [pl.BlockSpec((cin, cout), lambda n: (0, 0)),
                     pl.BlockSpec((1, cout), lambda n: (0, 0))]

    kernel = functools.partial(
        _baseblock_kernel, s=s, Ho=Ho, Wo=Wo, Hq=Hq, cin=cin, cout=cout,
        has_dim_change=has_dim_change)

    out = pl.pallas_call(
        kernel,
        grid=(N,),
        in_specs=in_specs,
        out_specs=pl.BlockSpec((1, M, cout), lambda n: (n, 0, 0)),
        out_shape=jax.ShapeDtypeStruct((N, M, cout), jnp.bfloat16),       # bf16 writeback
        scratch_shapes=[
            pltpu.VMEM((M, k * k * cin), jnp.bfloat16),                   # conv1 im2col
            pltpu.VMEM((Ho + 2 * pad, Wo + 2 * pad, cout), jnp.bfloat16), # padded y1
            pltpu.VMEM((M, k * k * cout), jnp.bfloat16),                  # conv2 im2col
        ],
        compiler_params=pltpu.CompilerParams(dimension_semantics=("parallel",)),
    )(*inputs)
    return out.reshape(N, Ho, Wo, cout)


# --------------------------------------------------------------------------------------
# Parameters: Conv2d (default PyTorch init, bias=True) with eval-mode BN folded in.
# --------------------------------------------------------------------------------------
def _conv_bn(key, k, ci, co):
    kw, kb = jax.random.split(key)
    bound = 1.0 / math.sqrt(k * k * ci)
    w = jax.random.uniform(kw, (k, k, ci, co), jnp.float32, -bound, bound)
    b = jax.random.uniform(kb, (co,), jnp.float32, -bound, bound)
    gamma = jnp.ones((co,), jnp.float32)
    beta = jnp.zeros((co,), jnp.float32)
    mean = jnp.zeros((co,), jnp.float32)
    var = jnp.ones((co,), jnp.float32)
    scale = gamma / jnp.sqrt(var + BN_EPS)
    return w * scale, beta + scale * (b - mean)


def init_baseblock_params(key, cin, cout, has_dim_change):
    k1, k2, kd = jax.random.split(key, 3)
    w1, b1 = _conv_bn(k1, 3, cin, cout)
    w2, b2 = _conv_bn(k2, 3, cout, cout)
    p = {"w1": w1, "b1": b1, "w2": w2, "b2": b2}
    if has_dim_change:                       # dim_change = 1x1 conv (stride s) + BN
        wd, bd = _conv_bn(kd, 1, cin, cout)
        p["wd"] = wd.reshape(cin, cout)
        p["bd"] = bd
    return p


# --------------------------------------------------------------------------------------
# Pure-JAX reference (same bf16 rounding points as the kernel) for validation.
# --------------------------------------------------------------------------------------
def baseblock_reference(x_nhwc, params, *, stride, has_dim_change):
    dn = ("NHWC", "HWIO", "NHWC")
    xf = x_nhwc.astype(jnp.bfloat16).astype(jnp.float32)
    w1 = params["w1"].astype(jnp.bfloat16).astype(jnp.float32)
    w2 = params["w2"].astype(jnp.bfloat16).astype(jnp.float32)
    y = lax.conv_general_dilated(xf, w1, (stride, stride), ((1, 1), (1, 1)),
                                 dimension_numbers=dn)
    y = jnp.maximum(y + params["b1"], 0.0)
    y = y.astype(jnp.bfloat16).astype(jnp.float32)        # kernel keeps y1 as bf16 in VMEM
    z = lax.conv_general_dilated(y, w2, (1, 1), ((1, 1), (1, 1)),
                                 dimension_numbers=dn) + params["b2"]
    if has_dim_change:
        cin, cout = x_nhwc.shape[-1], params["w1"].shape[-1]
        wd = params["wd"].astype(jnp.bfloat16).astype(jnp.float32).reshape(1, 1, cin, cout)
        r = lax.conv_general_dilated(xf, wd, (stride, stride), ((0, 0), (0, 0)),
                                     dimension_numbers=dn) + params["bd"]
    else:
        r = xf
    return jnp.maximum(z + r, 0.0)


# --------------------------------------------------------------------------------------
if __name__ == "__main__":
    key = jax.random.PRNGKey(0)
    kp, kx, kp2 = jax.random.split(key, 3)

    # Baseblock(input_planes=4, planes=8, stride=2, dim_change=1x1 conv + BN)
    N, cin, H, W = 2, 4, 16, 16
    cout, stride = 8, 2
    params = init_baseblock_params(kp, cin, cout, has_dim_change=True)
    x_nchw = jax.random.normal(kx, (N, cin, H, W), jnp.float32)           # NCHW like PyTorch

    # One-time NCHW -> NHWC + bf16; the rest of the network stays NHWC/bf16 end-to-end.
    x = jnp.transpose(x_nchw, (0, 2, 3, 1)).astype(jnp.bfloat16)

    block1 = jax.jit(functools.partial(baseblock_apply, stride=stride, has_dim_change=True))
    out1 = block1(x, params)
    jax.block_until_ready(out1)
    assert out1.shape == (N, H // stride, W // stride, cout), out1.shape
    assert bool(jnp.all(jnp.isfinite(out1.astype(jnp.float32))))
    assert bool(jnp.all(out1.astype(jnp.float32) >= 0.0))                 # post-ReLU
    ref1 = baseblock_reference(x, params, stride=stride, has_dim_change=True)
    assert bool(jnp.allclose(out1.astype(jnp.float32), ref1, atol=0.05, rtol=0.05))

    # Identity-residual path: Baseblock(8, 8, stride=1, dim_change=None), chained in NHWC/bf16.
    params2 = init_baseblock_params(kp2, cout, cout, has_dim_change=False)
    block2 = jax.jit(functools.partial(baseblock_apply, stride=1, has_dim_change=False))
    out2 = block2(out1, params2)
    jax.block_until_ready(out2)
    assert out2.shape == out1.shape, out2.shape
    assert bool(jnp.all(jnp.isfinite(out2.astype(jnp.float32))))
    ref2 = baseblock_reference(out1, params2, stride=1, has_dim_change=False)
    assert bool(jnp.allclose(out2.astype(jnp.float32), ref2, atol=0.05, rtol=0.05))

    print("KERNEL_OK")
</pallas_src>

<mosaic_0001>
module attributes {stable_mosaic.version = 11 : i64} {
  func.func @_baseblock_kernel(%arg0: i32, %arg1: memref<1x36x9x4xbf16, #tpu.memory_space<vmem>>, %arg2: memref<36x8xbf16, #tpu.memory_space<vmem>>, %arg3: memref<1x8xf32, #tpu.memory_space<vmem>>, %arg4: memref<72x8xbf16, #tpu.memory_space<vmem>>, %arg5: memref<1x8xf32, #tpu.memory_space<vmem>>, %arg6: memref<4x8xbf16, #tpu.memory_space<vmem>>, %arg7: memref<1x8xf32, #tpu.memory_space<vmem>>, %arg8: memref<1x64x8xbf16, #tpu.memory_space<vmem>>, %arg9: memref<64x36xbf16, #tpu.memory_space<vmem>>, %arg10: memref<10x10x8xbf16, #tpu.memory_space<vmem>>, %arg11: memref<64x72xbf16, #tpu.memory_space<vmem>>) attributes {dimension_semantics = [#tpu.dimension_semantics<parallel>], iteration_bounds = array<i64: 2>, scalar_prefetch = 0 : i64, scratch_operands = 3 : i64, tpu.core_type = #tpu.core_type<tc>, window_params = [{transform_indices = @transform_0, window_bounds = array<i64: 1, 36, 9, 4>}, {pipeline_mode = #tpu.pipeline_mode<synchronous>, transform_indices = @transform_1, window_bounds = array<i64: 36, 8>}, {pipeline_mode = #tpu.pipeline_mode<synchronous>, transform_indices = @transform_2, window_bounds = array<i64: 1, 8>}, {pipeline_mode = #tpu.pipeline_mode<synchronous>, transform_indices = @transform_3, window_bounds = array<i64: 72, 8>}, {pipeline_mode = #tpu.pipeline_mode<synchronous>, transform_indices = @transform_4, window_bounds = array<i64: 1, 8>}, {pipeline_mode = #tpu.pipeline_mode<synchronous>, transform_indices = @transform_5, window_bounds = array<i64: 4, 8>}, {pipeline_mode = #tpu.pipeline_mode<synchronous>, transform_indices = @transform_6, window_bounds = array<i64: 1, 8>}, {transform_indices = @transform_7, window_bounds = array<i64: 1, 64, 8>}]} {
    %c0 = arith.constant 0 : index
    %c0_0 = arith.constant 0 : index
    %c0_1 = arith.constant 0 : index
    %c0_2 = arith.constant 0 : index
    %0 = vector.load %arg1[%c0, %c0_0, %c0_1, %c0_2] : memref<1x36x9x4xbf16, #tpu.memory_space<vmem>>, vector<1x8x8x4xbf16>
    %1 = vector.shape_cast %0 : vector<1x8x8x4xbf16> to vector<8x8x4xbf16>
    %2 = vector.extract_strided_slice %1 {offsets = [0, 0, 0], sizes = [1, 8, 4], strides = [1, 1, 1]} : vector<8x8x4xbf16> to vector<1x8x4xbf16>
    %3 = vector.shape_cast %2 : vector<1x8x4xbf16> to vector<8x4xbf16>
    %c0_3 = arith.constant 0 : index
    %c0_4 = arith.constant 0 : index
    %4 = vector.load %arg9[%c0_3, %c0_4] : memref<64x36xbf16, #tpu.memory_space<vmem>>, vector<8x4xbf16>
    tpu.vector_store %arg9[%c0_3, %c0_4], %3 {strides = array<i32>} : memref<64x36xbf16, #tpu.memory_space<vmem>>, vector<8x4xbf16>,
    %5 = vector.extract_strided_slice %1 {offsets = [1, 0, 0], sizes = [1, 8, 4], strides = [1, 1, 1]} : vector<8x8x4xbf16> to vector<1x8x4xbf16>
    %6 = vector.shape_cast %5 : vector<1x8x4xbf16> to vector<8x4xbf16>
    %c8 = arith.constant 8 : index
    %c0_5 = arith.constant 0 : index
    %7 = vector.load %arg9[%c8, %c0_5] : memref<64x36xbf16, #tpu.memory_space<vmem>>, vector<8x4xbf16>
    tpu.vector_store %arg9[%c8, %c0_5], %6 {strides = array<i32>} : memref<64x36xbf16, #tpu.memory_space<vmem>>, vector<8x4xbf16>,
    %8 = vector.extract_strided_slice %1 {offsets = [2, 0, 0], sizes = [1, 8, 4], strides = [1, 1, 1]} : vector<8x8x4xbf16> to vector<1x8x4xbf16>
    %9 = vector.shape_cast %8 : vector<1x8x4xbf16> to vector<8x4xbf16>
    %c16 = arith.constant 16 : index
    %c0_6 = arith.constant 0 : index
    %10 = vector.load %arg9[%c16, %c0_6] : memref<64x36xbf16, #tpu.memory_space<vmem>>, vector<8x4xbf16>
    tpu.vector_store %arg9[%c16, %c0_6], %9 {strides = array<i32>} : memref<64x36xbf16, #tpu.memory_space<vmem>>, vector<8x4xbf16>,
    %11 = vector.extract_strided_slice %1 {offsets = [3, 0, 0], sizes = [1, 8, 4], strides = [1, 1, 1]} : vector<8x8x4xbf16> to vector<1x8x4xbf16>
    %12 = vector.shape_cast %11 : vector<1x8x4xbf16> to vector<8x4xbf16>
    %c24 = arith.constant 24 : index
    %c0_7 = arith.constant 0 : index
    %13 = vector.load %arg9[%c24, %c0_7] : memref<64x36xbf16, #tpu.memory_space<vmem>>, vector<8x4xbf16>
    tpu.vector_store %arg9[%c24, %c0_7], %12 {strides = array<i32>} : memref<64x36xbf16, #tpu.memory_space<vmem>>, vector<8x4xbf16>,
    %14 = vector.extract_strided_slice %1 {offsets = [4, 0, 0], sizes = [1, 8, 4], strides = [1, 1, 1]} : vector<8x8x4xbf16> to vector<1x8x4xbf16>
    %15 = vector.shape_cast %14 : vector<1x8x4xbf16> to vector<8x4xbf16>
    %c32 = arith.constant 32 : index
    %c0_8 = arith.constant 0 : index
    %16 = vector.load %arg9[%c32, %c0_8] : memref<64x36xbf16, #tpu.memory_space<vmem>>, vector<8x4xbf16>
    tpu.vector_store %arg9[%c32, %c0_8], %15 {strides = array<i32>} : memref<64x36xbf16, #tpu.memory_space<vmem>>, vector<8x4xbf16>,
    %17 = vector.extract_strided_slice %1 {offsets = [5, 0, 0], sizes = [1, 8, 4], strides = [1, 1, 1]} : vector<8x8x4xbf16> to vector<1x8x4xbf16>
    %18 = vector.shape_cast %17 : vector<1x8x4xbf16> to vector<8x4xbf16>
    %c40 = arith.constant 40 : index
    %c0_9 = arith.constant 0 : index
    %19 = vector.load %arg9[%c40, %c0_9] : memref<64x36xbf16, #tpu.memory_space<vmem>>, vector<8x4xbf16>
    tpu.vector_store %arg9[%c40, %c0_9], %18 {strides = array<i32>} : memref<64x36xbf16, #tpu.memory_space<vmem>>, vector<8x4xbf16>,
    %20 = vector.extract_strided_slice %1 {offsets = [6, 0, 0], sizes = [1, 8, 4], strides = [1, 1, 1]} : vector<8x8x4xbf16> to vector<1x8x4xbf16>
    %21 = vector.shape_cast %20 : vector<1x8x4xbf16> to vector<8x4xbf16>
    %c48 = arith.constant 48 : index
    %c0_10 = arith.constant 0 : index
    %22 = vector.load %arg9[%c48, %c0_10] : memref<64x36xbf16, #tpu.memory_space<vmem>>, vector<8x4xbf16>
    tpu.vector_store %arg9[%c48, %c0_10], %21 {strides = array<i32>} : memref<64x36xbf16, #tpu.memory_space<vmem>>, vector<8x4xbf16>,
    %23 = vector.extract_strided_slice %1 {offsets = [7, 0, 0], sizes = [1, 8, 4], strides = [1, 1, 1]} : vector<8x8x4xbf16> to vector<1x8x4xbf16>
    %24 = vector.shape_cast %23 : vector<1x8x4xbf16> to vector<8x4xbf16>
    %c56 = arith.constant 56 : index
    %c0_11 = arith.constant 0 : index
    %25 = vector.load %arg9[%c56, %c0_11] : memref<64x36xbf16, #tpu.memory_space<vmem>>, vector<8x4xbf16>
    tpu.vector_store %arg9[%c56, %c0_11], %24 {strides = array<i32>} : memref<64x36xbf16, #tpu.memory_space<vmem>>, vector<8x4xbf16>,
    %c0_12 = arith.constant 0 : index
    %c9 = arith.constant 9 : index
    %c0_13 = arith.constant 0 : index
    %c0_14 = arith.constant 0 : index
    %26 = vector.load %arg1[%c0_12, %c9, %c0_13, %c0_14] : memref<1x36x9x4xbf16, #tpu.memory_space<vmem>>, vector<1x8x8x4xbf16>
    %27 = vector.shape_cast %26 : vector<1x8x8x4xbf16> to vector<8x8x4xbf16>
    %28 = vector.extract_strided_slice %27 {offsets = [0, 0, 0], sizes = [1, 8, 4], strides = [1, 1, 1]} : vector<8x8x4xbf16> to vector<1x8x4xbf16>
    %29 = vector.shape_cast %28 : vector<1x8x4xbf16> to vector<8x4xbf16>
    %c0_15 = arith.constant 0 : index
    %c4 = arith.constant 4 : index
    %30 = vector.load %arg9[%c0_15, %c4] : memref<64x36xbf16, #tpu.memory_space<vmem>>, vector<8x4xbf16>
    tpu.vector_store %arg9[%c0_15, %c4], %29 {strides = array<i32>} : memref<64x36xbf16, #tpu.memory_space<vmem>>, vector<8x4xbf16>,
    %31 = vector.extract_strided_slice %27 {offsets = [1, 0, 0], sizes = [1, 8, 4], strides = [1, 1, 1]} : vector<8x8x4xbf16> to vector<1x8x4xbf16>
    %32 = vector.shape_cast %31 : vector<1x8x4xbf16> to vector<8x4xbf16>
    %c8_16 = arith.constant 8 : index
    %c4_17 = arith.constant 4 : index
    %33 = vector.load %arg9[%c8_16, %c4_17] : memref<64x36xbf16, #tpu.memory_space<vmem>>, vector<8x4xbf16>
    tpu.vector_store %arg9[%c8_16, %c4_17], %32 {strides = array<i32>} : memref<64x36xbf16, #tpu.memory_space<vmem>>, vector<8x4xbf16>,
    %34 = vector.extract_strided_slice %27 {offsets = [2, 0, 0], sizes = [1, 8, 4], strides = [1, 1, 1]} : vector<8x8x4xbf16> to vector<1x8x4xbf16>
    %35 = vector.shape_cast %34 : vector<1x8x4xbf16> to vector<8x4xbf16>
    %c16_18 = arith.constant 16 : index
    %c4_19 = arith.constant 4 : index
    %36 = vector.load %arg9[%c16_18, %c4_19] : memref<64x36xbf16, #tpu.memory_space<vmem>>, vector<8x4xbf16>
    tpu.vector_store %arg9[%c16_18, %c4_19], %35 {strides = array<i32>} : memref<64x36xbf16, #tpu.memory_space<vmem>>, vector<8x4xbf16>,
    %37 = vector.extract_strided_slice %27 {offsets = [3, 0, 0], sizes = [1, 8, 4], strides = [1, 1, 1]} : vector<8x8x4xbf16> to vector<1x8x4xbf16>
    %38 = vector.shape_cast %37 : vector<1x8x4xbf16> to vector<8x4xbf16>
    %c24_20 = arith.constant 24 : index
    %c4_21 = arith.constant 4 : index
    %39 = vector.load %arg9[%c24_20, %c4_21] : memref<64x36xbf16, #tpu.memory_space<vmem>>, vector<8x4xbf16>
    tpu.vector_store %arg9[%c24_20, %c4_21], %38 {strides = array<i32>} : memref<64x36xbf16, #tpu.memory_space<vmem>>, vector<8x4xbf16>,
    %40 = vector.extract_strided_slice %27 {offsets = [4, 0, 0], sizes = [1, 8, 4], strides = [1, 1, 1]} : vector<8x8x4xbf16> to vector<1x8x4xbf16>
    %41 = vector.shape_cast %40 : vector<1x8x4xbf16> to vector<8x4xbf16>
    %c32_22 = arith.constant 32 : index
    %c4_23 = arith.constant 4 : index
    %42 = vector.load %arg9[%c32_22, %c4_23] : memref<64x36xbf16, #tpu.memory_space<vmem>>, vector<8x4xbf16>
    tpu.vector_store %arg9[%c32_22, %c4_23], %41 {strides = array<i32>} : memref<64x36xbf16, #tpu.memory_space<vmem>>, vector<8x4xbf16>,
    %43 = vector.extract_strided_slice %27 {offsets = [5, 0, 0], sizes = [1, 8, 4], strides = [1, 1, 1]} : vector<8x8x4xbf16> to vector<1x8x4xbf16>
    %44 = vector.shape_cast %43 : vector<1x8x4xbf16> to vector<8x4xbf16>
    %c40_24 = arith.constant 40 : index
    %c4_25 = arith.constant 4 : index
    %45 = vector.load %arg9[%c40_24, %c4_25] : memref<64x36xbf16, #tpu.memory_space<vmem>>, vector<8x4xbf16>
    tpu.vector_store %arg9[%c40_24, %c4_25], %44 {strides = array<i32>} : memref<64x36xbf16, #tpu.memory_space<vmem>>, vector<8x4xbf16>,
    %46 = vector.extract_strided_slice %27 {offsets = [6, 0, 0], sizes = [1, 8, 4], strides = [1, 1, 1]} : vector<8x8x4xbf16> to vector<1x8x4xbf16>
    %47 = vector.shape_cast %46 : vector<1x8x4xbf16> to vector<8x4xbf16>
    %c48_26 = arith.constant 48 : index
    %c4_27 = arith.constant 4 : index
    %48 = vector.load %arg9[%c48_26, %c4_27] : memref<64x36xbf16, #tpu.memory_space<vmem>>, vector<8x4xbf16>
    tpu.vector_store %arg9[%c48_26, %c4_27], %47 {strides = array<i32>} : memref<64x36xbf16, #tpu.memory_space<vmem>>, vector<8x4xbf16>,
    %49 = vector.extract_strided_slice %27 {offsets = [7, 0, 0], sizes = [1, 8, 4], strides = [1, 1, 1]} : vector<8x8x4xbf16> to vector<1x8x4xbf16>
    %50 = vector.shape_cast %49 : vector<1x8x4xbf16> to vector<8x4xbf16>
    %c56_28 = arith.constant 56 : index
    %c4_29 = arith.constant 4 : index
    %51 = vector.load %arg9[%c56_28, %c4_29] : memref<64x36xbf16, #tpu.memory_space<vmem>>, vector<8x4xbf16>
    tpu.vector_store %arg9[%c56_28, %c4_29], %50 {strides = array<i32>} : memref<64x36xbf16, #tpu.memory_space<vmem>>, vector<8x4xbf16>,
    %c0_30 = arith.constant 0 : index
    %c0_31 = arith.constant 0 : index
    %c1 = arith.constant 1 : index
    %c0_32 = arith.constant 0 : index
    %52 = vector.load %arg1[%c0_30, %c0_31, %c1, %c0_32] : memref<1x36x9x4xbf16, #tpu.memory_space<vmem>>, vector<1x8x8x4xbf16>
    %53 = vector.shape_cast %52 : vector<1x8x8x4xbf16> to vector<8x8x4xbf16>
    %54 = vector.extract_strided_slice %53 {offsets = [0, 0, 0], sizes = [1, 8, 4], strides = [1, 1, 1]} : vector<8x8x4xbf16> to vector<1x8x4xbf16>
    %55 = vector.shape_cast %54 : vector<1x8x4xbf16> to vector<8x4xbf16>
    %c0_33 = arith.constant 0 : index
    %c8_34 = arith.constant 8 : index
    %56 = vector.load %arg9[%c0_33, %c8_34] : memref<64x36xbf16, #tpu.memory_space<vmem>>, vector<8x4xbf16>
    tpu.vector_store %arg9[%c0_33, %c8_34], %55 {strides = array<i32>} : memref<64x36xbf16, #tpu.memory_space<vmem>>, vector<8x4xbf16>,
    %57 = vector.extract_strided_slice %53 {offsets = [1, 0, 0], sizes = [1, 8, 4], strides = [1, 1, 1]} : vector<8x8x4xbf16> to vector<1x8x4xbf16>
    %58 = vector.shape_cast %57 : vector<1x8x4xbf16> to vector<8x4xbf16>
    %c8_35 = arith.constant 8 : index
    %c8_36 = arith.constant 8 : index
    %59 = vector.load %arg9[%c8_35, %c8_36] : memref<64x36xbf16, #tpu.memory_space<vmem>>, vector<8x4xbf16>
    tpu.vector_store %arg9[%c8_35, %c8_36], %58 {strides = array<i32>} : memref<64x36xbf16, #tpu.memory_space<vmem>>, vector<8x4xbf16>,
    %60 = vector.extract_strided_slice %53 {offsets = [2, 0, 0], sizes = [1, 8, 4], strides = [1, 1, 1]} : vector<8x8x4xbf16> to vector<1x8x4xbf16>
    %61 = vector.shape_cast %60 : vector<1x8x4xbf16> to vector<8x4xbf16>
    %c16_37 = arith.constant 16 : index
    %c8_38 = arith.constant 8 : index
    %62 = vector.load %arg9[%c16_37, %c8_38] : memref<64x36xbf16, #tpu.memory_space<vmem>>, vector<8x4xbf16>
    tpu.vector_store %arg9[%c16_37, %c8_38], %61 {strides = array<i32>} : memref<64x36xbf16, #tpu.memory_space<vmem>>, vector<8x4xbf16>,
    %63 = vector.extract_strided_slice %53 {offsets = [3, 0, 0], sizes = [1, 8, 4], strides = [1, 1, 1]} : vector<8x8x4xbf16> to vector<1x8x4xbf16>
    %64 = vector.shape_cast %63 : vector<1x8x4xbf16> to vector<8x4xbf16>
    %c24_39 = arith.constant 24 : index
    %c8_40 = arith.constant 8 : index
    %65 = vector.load %arg9[%c24_39, %c8_40] : memref<64x36xbf16, #tpu.memory_space<vmem>>, vector<8x4xbf16>
    tpu.vector_store %arg9[%c24_39, %c8_40], %64 {strides = array<i32>} : memref<64x36xbf16, #tpu.memory_space<vmem>>, vector<8x4xbf16>,
    %66 = vector.extract_strided_slice %53 {offsets = [4, 0, 0], sizes = [1, 8, 4], strides = [1, 1, 1]} : vector<8x8x4xbf16> to vector<1x8x4xbf16>
    %67 = vector.shape_cast %66 : vector<1x8x4xbf16> to vector<8x4xbf16>
    %c32_41 = arith.constant 32 : index
    %c8_42 = arith.constant 8 : index
    %68 = vector.load %arg9[%c32_41, %c8_42] : memref<64x36xbf16, #tpu.memory_space<vmem>>, vector<8x4xbf16>
    tpu.vector_store %arg9[%c32_41, %c8_42], %67 {strides = array<i32>} : memref<64x36xbf16, #tpu.memory_space<vmem>>, vector<8x4xbf16>,
    %69 = vector.extract_strided_slice %53 {offsets = [5, 0, 0], sizes = [1, 8, 4], strides = [1, 1, 1]} : vector<8x8x4xbf16> to vector<1x8x4xbf16>
    %70 = vector.shape_cast %69 : vector<1x8x4xbf16> to vector<8x4xbf16>
    %c40_43 = arith.constant 40 : index
    %c8_44 = arith.constant 8 : index
    %71 = vector.load %arg9[%c40_43, %c8_44] : memref<64x36xbf16, #tpu.memory_space<vmem>>, vector<8x4xbf16>
    tpu.vector_store %arg9[%c40_43, %c8_44], %70 {strides = array<i32>} : memref<64x36xbf16, #tpu.memory_space<vmem>>, vector<8x4xbf16>,
    %72 = vector.extract_strided_slice %53 {offsets = [6, 0, 0], sizes = [1, 8, 4], strides = [1, 1, 1]} : vector<8x8x4xbf16> to vector<1x8x4xbf16>
    %73 = vector.shape_cast %72 : vector<1x8x4xbf16> to vector<8x4xbf16>
    %c48_45 = arith.constant 48 : index
    %c8_46 = arith.constant 8 : index
    %74 = vector.load %arg9[%c48_45, %c8_46] : memref<64x36xbf16, #tpu.memory_space<vmem>>, vector<8x4xbf16>
    tpu.vector_store %arg9[%c48_45, %c8_46], %73 {strides = array<i32>} : memref<64x36xbf16, #tpu.memory_space<vmem>>, vector<8x4xbf16>,
    %75 = vector.extract_strided_slice %53 {offsets = [7, 0, 0], sizes = [1, 8, 4], strides = [1, 1, 1]} : vector<8x8x4xbf16> to vector<1x8x4xbf16>
    %76 = vector.shape_cast %75 : vector<1x8x4xbf16> to vector<8x4xbf16>
    %c56_47 = arith.constant 56 : index
    %c8_48 = arith.constant 8 : index
    %77 = vector.load %arg9[%c56_47, %c8_48] : memref<64x36xbf16, #tpu.memory_space<vmem>>, vector<8x4xbf16>
    tpu.vector_store %arg9[%c56_47, %c8_48], %76 {strides = array<i32>} : memref<64x36xbf16, #tpu.memory_space<vmem>>, vector<8x4xbf16>,
    %c0_49 = arith.constant 0 : index
    %c18 = arith.constant 18 : index
    %c0_50 = arith.constant 0 : index
    %c0_51 = arith.constant 0 : index
    %78 = vector.load %arg1[%c0_49, %c18, %c0_50, %c0_51] : memref<1x36x9x4xbf16, #tpu.memory_space<vmem>>, vector<1x8x8x4xbf16>
    %79 = vector.shape_cast %78 : vector<1x8x8x4xbf16> to vector<8x8x4xbf16>
    %80 = vector.extract_strided_slice %79 {offsets = [0, 0, 0], sizes = [1, 8, 4], strides = [1, 1, 1]} : vector<8x8x4xbf16> to vector<1x8x4xbf16>
    %81 = vector.shape_cast %80 : vector<1x8x4xbf16> to vector<8x4xbf16>
    %c0_52 = arith.constant 0 : index
    %c12 = arith.constant 12 : index
    %82 = vector.load %arg9[%c0_52, %c12] : memref<64x36xbf16, #tpu.memory_space<vmem>>, vector<8x4xbf16>
    tpu.vector_store %arg9[%c0_52, %c12], %81 {strides = array<i32>} : memref<64x36xbf16, #tpu.memory_space<vmem>>, vector<8x4xbf16>,
    %83 = vector.extract_strided_slice %79 {offsets = [1, 0, 0], sizes = [1, 8, 4], strides = [1, 1, 1]} : vector<8x8x4xbf16> to vector<1x8x4xbf16>
    %84 = vector.shape_cast %83 : vector<1x8x4xbf16> to vector<8x4xbf16>
    %c8_53 = arith.constant 8 : index
    %c12_54 = arith.constant 12 : index
    %85 = vector.load %arg9[%c8_53, %c12_54] : memref<64x36xbf16, #tpu.memory_space<vmem>>, vector<8x4xbf16>
    tpu.vector_store %arg9[%c8_53, %c12_54], %84 {strides = array<i32>} : memref<64x36xbf16, #tpu.memory_space<vmem>>, vector<8x4xbf16>,
    %86 = vector.extract_strided_slice %79 {offsets = [2, 0, 0], sizes = [1, 8, 4], strides = [1, 1, 1]} : vector<8x8x4xbf16> to vector<1x8x4xbf16>
    %87 = vector.shape_cast %86 : vector<1x8x4xbf16> to vector<8x4xbf16>
    %c16_55 = arith.constant 16 : index
    %c12_56 = arith.constant 12 : index
    %88 = vector.load %arg9[%c16_55, %c12_56] : memref<64x36xbf16, #tpu.memory_space<vmem>>, vector<8x4xbf16>
    tpu.vector_store %arg9[%c16_55, %c12_56], %87 {strides = array<i32>} : memref<64x36xbf16, #tpu.memory_space<vmem>>, vector<8x4xbf16>,
    %89 = vector.extract_strided_slice %79 {offsets = [3, 0, 0], sizes = [1, 8, 4], strides = [1, 1, 1]} : vector<8x8x4xbf16> to vector<1x8x4xbf16>
    %90 = vector.shape_cast %89 : vector<1x8x4xbf16> to vector<8x4xbf16>
    %c24_57 = arith.constant 24 : index
    %c12_58 = arith.constant 12 : index
    %91 = vector.load %arg9[%c24_57, %c12_58] : memref<64x36xbf16, #tpu.memory_space<vmem>>, vector<8x4xbf16>
    tpu.vector_store %arg9[%c24_57, %c12_58], %90 {strides = array<i32>} : memref<64x36xbf16, #tpu.memory_space<vmem>>, vector<8x4xbf16>,
    %92 = vector.extract_strided_slice %79 {offsets = [4, 0, 0], sizes = [1, 8, 4], strides = [1, 1, 1]} : vector<8x8x4xbf16> to vector<1x8x4xbf16>
    %93 = vector.shape_cast %92 : vector<1x8x4xbf16> to vector<8x4xbf16>
    %c32_59 = arith.constant 32 : index
    %c12_60 = arith.constant 12 : index
    %94 = vector.load %arg9[%c32_59, %c12_60] : memref<64x36xbf16, #tpu.memory_space<vmem>>, vector<8x4xbf16>
    tpu.vector_store %arg9[%c32_59, %c12_60], %93 {strides = array<i32>} : memref<64x36xbf16, #tpu.memory_space<vmem>>, vector<8x4xbf16>,
    %95 = vector.extract_strided_slice %79 {offsets = [5, 0, 0], sizes = [1, 8, 4], strides = [1, 1, 1]} : vector<8x8x4xbf16> to vector<1x8x4xbf16>
    %96 = vector.shape_cast %95 : vector<1x8x4xbf16> to vector<8x4xbf16>
    %c40_61 = arith.constant 40 : index
    %c12_62 = arith.constant 12 : index
    %97 = vector.load %arg9[%c40_61, %c12_62] : memref<64x36xbf16, #tpu.memory_space<vmem>>, vector<8x4xbf16>
    tpu.vector_store %arg9[%c40_61, %c12_62], %96 {strides = array<i32>} : memref<64x36xbf16, #tpu.memory_space<vmem>>, vector<8x4xbf16>,
    %98 = vector.extract_strided_slice %79 {offsets = [6, 0, 0], sizes = [1, 8, 4], strides = [1, 1, 1]} : vector<8x8x4xbf16> to vector<1x8x4xbf16>
    %99 = vector.shape_cast %98 : vector<1x8x4xbf16> to vector<8x4xbf16>
    %c48_63 = arith.constant 48 : index
    %c12_64 = arith.constant 12 : index
    %100 = vector.load %arg9[%c48_63, %c12_64] : memref<64x36xbf16, #tpu.memory_space<vmem>>, vector<8x4xbf16>
    tpu.vector_store %arg9[%c48_63, %c12_64], %99 {strides = array<i32>} : memref<64x36xbf16, #tpu.memory_space<vmem>>, vector<8x4xbf16>,
    %101 = vector.extract_strided_slice %79 {offsets = [7, 0, 0], sizes = [1, 8, 4], strides = [1, 1, 1]} : vector<8x8x4xbf16> to vector<1x8x4xbf16>
    %102 = vector.shape_cast %101 : vector<1x8x4xbf16> to vector<8x4xbf16>
    %c56_65 = arith.constant 56 : index
    %c12_66 = arith.constant 12 : index
    %103 = vector.load %arg9[%c56_65, %c12_66] : memref<64x36xbf16, #tpu.memory_space<vmem>>, vector<8x4xbf16>
    tpu.vector_store %arg9[%c56_65, %c12_66], %102 {strides = array<i32>} : memref<64x36xbf16, #tpu.memory_space<vmem>>, vector<8x4xbf16>,
    %c0_67 = arith.constant 0 : index
    %c27 = arith.constant 27 : index
    %c0_68 = arith.constant 0 : index
    %c0_69 = arith.constant 0 : index
    %104 = vector.load %arg1[%c0_67, %c27, %c0_68, %c0_69] : memref<1x36x9x4xbf16, #tpu.memory_space<vmem>>, vector<1x8x8x4xbf16>
    %105 = vector.shape_cast %104 : vector<1x8x8x4xbf16> to vector<8x8x4xbf16>
    %106 = vector.extract_strided_slice %105 {offsets = [0, 0, 0], sizes = [1, 8, 4], strides = [1, 1, 1]} : vector<8x8x4xbf16> to vector<1x8x4xbf16>
    %107 = vector.shape_cast %106 : vector<1x8x4xbf16> to vector<8x4xbf16>
    %c0_70 = arith.constant 0 : index
    %c16_71 = arith.constant 16 : index
    %108 = vector.load %arg9[%c0_70, %c16_71] : memref<64x36xbf16, #tpu.memory_space<vmem>>, vector<8x4xbf16>
    tpu.vector_store %arg9[%c0_70, %c16_71], %107 {strides = array<i32>} : memref<64x36xbf16, #tpu.memory_space<vmem>>, vector<8x4xbf16>,
    %109 = vector.extract_strided_slice %105 {offsets = [1, 0, 0], sizes = [1, 8, 4], strides = [1, 1, 1]} : vector<8x8x4xbf16> to vector<1x8x4xbf16>
    %110 = vector.shape_cast %109 : vector<1x8x4xbf16> to vector<8x4xbf16>
    %c8_72 = arith.constant 8 : index
    %c16_73 = arith.constant 16 : index
    %111 = vector.load %arg9[%c8_72, %c16_73] : memref<64x36xbf16, #tpu.memory_space<vmem>>, vector<8x4xbf16>
    tpu.vector_store %arg9[%c8_72, %c16_73], %110 {strides = array<i32>} : memref<64x36xbf16, #tpu.memory_space<vmem>>, vector<8x4xbf16>,
    %112 = vector.extract_strided_slice %105 {offsets = [2, 0, 0], sizes = [1, 8, 4], strides = [1, 1, 1]} : vector<8x8x4xbf16> to vector<1x8x4xbf16>
    %113 = vector.shape_cast %112 : vector<1x8x4xbf16> to vector<8x4xbf16>
    %c16_74 = arith.constant 16 : index
    %c16_75 = arith.constant 16 : index
    %114 = vector.load %arg9[%c16_74, %c16_75] : memref<64x36xbf16, #tpu.memory_space<vmem>>, vector<8x4xbf16>
    tpu.vector_store %arg9[%c16_74, %c16_75], %113 {strides = array<i32>} : memref<64x36xbf16, #tpu.memory_space<vmem>>, vector<8x4xbf16>,
    %115 = vector.extract_strided_slice %105 {offsets = [3, 0, 0], sizes = [1, 8, 4], strides = [1, 1, 1]} : vector<8x8x4xbf16> to vector<1x8x4xbf16>
    %116 = vector.shape_cast %115 : vector<1x8x4xbf16> to vector<8x4xbf16>
    %c24_76 = arith.constant 24 : index
    %c16_77 = arith.constant 16 : index
    %117 = vector.load %arg9[%c24_76, %c16_77] : memref<64x36xbf16, #tpu.memory_space<vmem>>, vector<8x4xbf16>
    tpu.vector_store %arg9[%c24_76, %c16_77], %116 {strides = array<i32>} : memref<64x36xbf16, #tpu.memory_space<vmem>>, vector<8x4xbf16>,
    %118 = vector.extract_strided_slice %105 {offsets = [4, 0, 0], sizes = [1, 8, 4], strides = [1, 1, 1]} : vector<8x8x4xbf16> to vector<1x8x4xbf16>
    %119 = vector.shape_cast %118 : vector<1x8x4xbf16> to vector<8x4xbf16>
    %c32_78 = arith.constant 32 : index
    %c16_79 = arith.constant 16 : index
    %120 = vector.load %arg9[%c32_78, %c16_79] : memref<64x36xbf16, #tpu.memory_space<vmem>>, vector<8x4xbf16>
    tpu.vector_store %arg9[%c32_78, %c16_79], %119 {strides = array<i32>} : memref<64x36xbf16, #tpu.memory_space<vmem>>, vector<8x4xbf16>,
    %121 = vector.extract_strided_slice %105 {offsets = [5, 0, 0], sizes = [1, 8, 4], strides = [1, 1, 1]} : vector<8x8x4xbf16> to vector<1x8x4xbf16>
    %122 = vector.shape_cast %121 : vector<1x8x4xbf16> to vector<8x4xbf16>
    %c40_80 = arith.constant 40 : index
    %c16_81 = arith.constant 16 : index
    %123 = vector.load %arg9[%c40_80, %c16_81] : memref<64x36xbf16, #tpu.memory_space<vmem>>, vector<8x4xbf16>
    tpu.vector_store %arg9[%c40_80, %c16_81], %122 {strides = array<i32>} : memref<64x36xbf16, #tpu.memory_space<vmem>>, vector<8x4xbf16>,
    %124 = vector.extract_strided_slice %105 {offsets = [6, 0, 0], sizes = [1, 8, 4], strides = [1, 1, 1]} : vector<8x8x4xbf16> to vector<1x8x4xbf16>
    %125 = vector.shape_cast %124 : vector<1x8x4xbf16> to vector<8x4xbf16>
    %c48_82 = arith.constant 48 : index
    %c16_83 = arith.constant 16 : index
    %126 = vector.load %arg9[%c48_82, %c16_83] : memref<64x36xbf16, #tpu.memory_space<vmem>>, vector<8x4xbf16>
    tpu.vector_store %arg9[%c48_82, %c16_83], %125 {strides = array<i32>} : memref<64x36xbf16, #tpu.memory_space<vmem>>, vector<8x4xbf16>,
    %127 = vector.extract_strided_slice %105 {offsets = [7, 0, 0], sizes = [1, 8, 4], strides = [1, 1, 1]} : vector<8x8x4xbf16> to vector<1x8x4xbf16>
    %128 = vector.shape_cast %127 : vector<1x8x4xbf16> to vector<8x4xbf16>
    %c56_84 = arith.constant 56 : index
    %c16_85 = arith.constant 16 : index
    %129 = vector.load %arg9[%c56_84, %c16_85] : memref<64x36xbf16, #tpu.memory_space<vmem>>, vector<8x4xbf16>
    tpu.vector_store %arg9[%c56_84, %c16_85], %128 {strides = array<i32>} : memref<64x36xbf16, #tpu.memory_space<vmem>>, vector<8x4xbf16>,
    %c0_86 = arith.constant 0 : index
    %c18_87 = arith.constant 18 : index
    %c1_88 = arith.constant 1 : index
    %c0_89 = arith.constant 0 : index
    %130 = vector.load %arg1[%c0_86, %c18_87, %c1_88, %c0_89] : memref<1x36x9x4xbf16, #tpu.memory_space<vmem>>, vector<1x8x8x4xbf16>
    %131 = vector.shape_cast %130 : vector<1x8x8x4xbf16> to vector<8x8x4xbf16>
    %132 = vector.extract_strided_slice %131 {offsets = [0, 0, 0], sizes = [1, 8, 4], strides = [1, 1, 1]} : vector<8x8x4xbf16> to vector<1x8x4xbf16>
    %133 = vector.shape_cast %132 : vector<1x8x4xbf16> to vector<8x4xbf16>
    %c0_90 = arith.constant 0 : index
    %c20 = arith.constant 20 : index
    %134 = vector.load %arg9[%c0_90, %c20] : memref<64x36xbf16, #tpu.memory_space<vmem>>, vector<8x4xbf16>
    tpu.vector_store %arg9[%c0_90, %c20], %133 {strides = array<i32>} : memref<64x36xbf16, #tpu.memory_space<vmem>>, vector<8x4xbf16>,
    %135 = vector.extract_strided_slice %131 {offsets = [1, 0, 0], sizes = [1, 8, 4], strides = [1, 1, 1]} : vector<8x8x4xbf16> to vector<1x8x4xbf16>
    %136 = vector.shape_cast %135 : vector<1x8x4xbf16> to vector<8x4xbf16>
    %c8_91 = arith.constant 8 : index
    %c20_92 = arith.constant 20 : index
    %137 = vector.load %arg9[%c8_91, %c20_92] : memref<64x36xbf16, #tpu.memory_space<vmem>>, vector<8x4xbf16>
    tpu.vector_store %arg9[%c8_91, %c20_92], %136 {strides = array<i32>} : memref<64x36xbf16, #tpu.memory_space<vmem>>, vector<8x4xbf16>,
    %138 = vector.extract_strided_slice %131 {offsets = [2, 0, 0], sizes = [1, 8, 4], strides = [1, 1, 1]} : vector<8x8x4xbf16> to vector<1x8x4xbf16>
    %139 = vector.shape_cast %138 : vector<1x8x4xbf16> to vector<8x4xbf16>
    %c16_93 = arith.constant 16 : index
    %c20_94 = arith.constant 20 : index
    %140 = vector.load %arg9[%c16_93, %c20_94] : memref<64x36xbf16, #tpu.memory_space<vmem>>, vector<8x4xbf16>
    tpu.vector_store %arg9[%c16_93, %c20_94], %139 {strides = array<i32>} : memref<64x36xbf16, #tpu.memory_space<vmem>>, vector<8x4xbf16>,
    %141 = vector.extract_strided_slice %131 {offsets = [3, 0, 0], sizes = [1, 8, 4], strides = [1, 1, 1]} : vector<8x8x4xbf16> to vector<1x8x4xbf16>
    %142 = vector.shape_cast %141 : vector<1x8x4xbf16> to vector<8x4xbf16>
    %c24_95 = arith.constant 24 : index
    %c20_96 = arith.constant 20 : index
    %143 = vector.load %arg9[%c24_95, %c20_96] : memref<64x36xbf16, #tpu.memory_space<vmem>>, vector<8x4xbf16>
    tpu.vector_store %arg9[%c24_95, %c20_96], %142 {strides = array<i32>} : memref<64x36xbf16, #tpu.memory_space<vmem>>, vector<8x4xbf16>,
    %144 = vector.extract_strided_slice %131 {offsets = [4, 0, 0], sizes = [1, 8, 4], strides = [1, 1, 1]} : vector<8x8x4xbf16> to vector<1x8x4xbf16>
    %145 = vector.shape_cast %144 : vector<1x8x4xbf16> to vector<8x4xbf16>
    %c32_97 = arith.constant 32 : index
    %c20_98 = arith.constant 20 : index
    %146 = vector.load %arg9[%c32_97, %c20_98] : memref<64x36xbf16, #tpu.memory_space<vmem>>, vector<8x4xbf16>
    tpu.vector_store %arg9[%c32_97, %c20_98], %145 {strides = array<i32>} : memref<64x36xbf16, #tpu.memory_space<vmem>>, vector<8x4xbf16>,
    %147 = vector.extract_strided_slice %131 {offsets = [5, 0, 0], sizes = [1, 8, 4], strides = [1, 1, 1]} : vector<8x8x4xbf16> to vector<1x8x4xbf16>
    %148 = vector.shape_cast %147 : vector<1x8x4xbf16> to vector<8x4xbf16>
    %c40_99 = arith.constant 40 : index
    %c20_100 = arith.constant 20 : index
    %149 = vector.load %arg9[%c40_99, %c20_100] : memref<64x36xbf16, #tpu.memory_space<vmem>>, vector<8x4xbf16>
    tpu.vector_store %arg9[%c40_99, %c20_100], %148 {strides = array<i32>} : memref<64x36xbf16, #tpu.memory_space<vmem>>, vector<8x4xbf16>,
    %150 = vector.extract_strided_slice %131 {offsets = [6, 0, 0], sizes = [1, 8, 4], strides = [1, 1, 1]} : vector<8x8x4xbf16> to vector<1x8x4xbf16>
    %151 = vector.shape_cast %150 : vector<1x8x4xbf16> to vector<8x4xbf16>
    %c48_101 = arith.constant 48 : index
    %c20_102 = arith.constant 20 : index
    %152 = vector.load %arg9[%c48_101, %c20_102] : memref<64x36xbf16, #tpu.memory_space<vmem>>, vector<8x4xbf16>
    tpu.vector_store %arg9[%c48_101, %c20_102], %151 {strides = array<i32>} : memref<64x36xbf16, #tpu.memory_space<vmem>>, vector<8x4xbf16>,
    %153 = vector.extract_strided_slice %131 {offsets = [7, 0, 0], sizes = [1, 8, 4], strides = [1, 1, 1]} : vector<8x8x4xbf16> to vector<1x8x4xbf16>
    %154 = vector.shape_cast %153 : vector<1x8x4xbf16> to vector<8x4xbf16>
    %c56_103 = arith.constant 56 : index
    %c20_104 = arith.constant 20 : index
    %155 = vector.load %arg9[%c56_103, %c20_104] : memref<64x36xbf16, #tpu.memory_space<vmem>>, vector<8x4xbf16>
    tpu.vector_store %arg9[%c56_103, %c20_104], %154 {strides = array<i32>} : memref<64x36xbf16, #tpu.memory_space<vmem>>, vector<8x4xbf16>,
    %c0_105 = arith.constant 0 : index
    %c1_106 = arith.constant 1 : index
    %c0_107 = arith.constant 0 : index
    %c0_108 = arith.constant 0 : index
    %156 = vector.load %arg1[%c0_105, %c1_106, %c0_107, %c0_108] : memref<1x36x9x4xbf16, #tpu.memory_space<vmem>>, vector<1x8x8x4xbf16>
    %157 = vector.shape_cast %156 : vector<1x8x8x4xbf16> to vector<8x8x4xbf16>
    %158 = vector.extract_strided_slice %157 {offsets = [0, 0, 0], sizes = [1, 8, 4], strides = [1, 1, 1]} : vector<8x8x4xbf16> to vector<1x8x4xbf16>
    %159 = vector.shape_cast %158 : vector<1x8x4xbf16> to vector<8x4xbf16>
    %c0_109 = arith.constant 0 : index
    %c24_110 = arith.constant 24 : index
    %160 = vector.load %arg9[%c0_109, %c24_110] : memref<64x36xbf16, #tpu.memory_space<vmem>>, vector<8x4xbf16>
    tpu.vector_store %arg9[%c0_109, %c24_110], %159 {strides = array<i32>} : memref<64x36xbf16, #tpu.memory_space<vmem>>, vector<8x4xbf16>,
    %161 = vector.extract_strided_slice %157 {offsets = [1, 0, 0], sizes = [1, 8, 4], strides = [1, 1, 1]} : vector<8x8x4xbf16> to vector<1x8x4xbf16>
    %162 = vector.shape_cast %161 : vector<1x8x4xbf16> to vector<8x4xbf16>
    %c8_111 = arith.constant 8 : index
    %c24_112 = arith.constant 24 : index
    %163 = vector.load %arg9[%c8_111, %c24_112] : memref<64x36xbf16, #tpu.memory_space<vmem>>, vector<8x4xbf16>
    tpu.vector_store %arg9[%c8_111, %c24_112], %162 {strides = array<i32>} : memref<64x36xbf16, #tpu.memory_space<vmem>>, vector<8x4xbf16>,
    %164 = vector.extract_strided_slice %157 {offsets = [2, 0, 0], sizes = [1, 8, 4], strides = [1, 1, 1]} : vector<8x8x4xbf16> to vector<1x8x4xbf16>
    %165 = vector.shape_cast %164 : vector<1x8x4xbf16> to vector<8x4xbf16>
    %c16_113 = arith.constant 16 : index
    %c24_114 = arith.constant 24 : index
    %166 = vector.load %arg9[%c16_113, %c24_114] : memref<64x36xbf16, #tpu.memory_space<vmem>>, vector<8x4xbf16>
    tpu.vector_store %arg9[%c16_113, %c24_114], %165 {strides = array<i32>} : memref<64x36xbf16, #tpu.memory_space<vmem>>, vector<8x4xbf16>,
    %167 = vector.extract_strided_slice %157 {offsets = [3, 0, 0], sizes = [1, 8, 4], strides = [1, 1, 1]} : vector<8x8x4xbf16> to vector<1x8x4xbf16>
    %168 = vector.shape_cast %167 : vector<1x8x4xbf16> to vector<8x4xbf16>
    %c24_115 = arith.constant 24 : index
    %c24_116 = arith.constant 24 : index
    %169 = vector.load %arg9[%c24_115, %c24_116] : memref<64x36xbf16, #tpu.memory_space<vmem>>, vector<8x4xbf16>
    tpu.vector_store %arg9[%c24_115, %c24_116], %168 {strides = array<i32>} : memref<64x36xbf16, #tpu.memory_space<vmem>>, vector<8x4xbf16>,
    %170 = vector.extract_strided_slice %157 {offsets = [4, 0, 0], sizes = [1, 8, 4], strides = [1, 1, 1]} : vector<8x8x4xbf16> to vector<1x8x4xbf16>
    %171 = vector.shape_cast %170 : vector<1x8x4xbf16> to vector<8x4xbf16>
    %c32_117 = arith.constant 32 : index
    %c24_118 = arith.constant 24 : index
    %172 = vector.load %arg9[%c32_117, %c24_118] : memref<64x36xbf16, #tpu.memory_space<vmem>>, vector<8x4xbf16>
    tpu.vector_store %arg9[%c32_117, %c24_118], %171 {strides = array<i32>} : memref<64x36xbf16, #tpu.memory_space<vmem>>, vector<8x4xbf16>,
    %173 = vector.extract_strided_slice %157 {offsets = [5, 0, 0], sizes = [1, 8, 4], strides = [1, 1, 1]} : vector<8x8x4xbf16> to vector<1x8x4xbf16>
    %174 = vector.shape_cast %173 : vector<1x8x4xbf16> to vector<8x4xbf16>
    %c40_119 = arith.constant 40 : index
    %c24_120 = arith.constant 24 : index
    %175 = vector.load %arg9[%c40_119, %c24_120] : memref<64x36xbf16, #tpu.memory_space<vmem>>, vector<8x4xbf16>
    tpu.vector_store %arg9[%c40_119, %c24_120], %174 {strides = array<i32>} : memref<64x36xbf16, #tpu.memory_space<vmem>>, vector<8x4xbf16>,
    %176 = vector.extract_strided_slice %157 {offsets = [6, 0, 0], sizes = [1, 8, 4], strides = [1, 1, 1]} : vector<8x8x4xbf16> to vector<1x8x4xbf16>
    %177 = vector.shape_cast %176 : vector<1x8x4xbf16> to vector<8x4xbf16>
    %c48_121 = arith.constant 48 : index
    %c24_122 = arith.constant 24 : index
    %178 = vector.load %arg9[%c48_121, %c24_122] : memref<64x36xbf16, #tpu.memory_space<vmem>>, vector<8x4xbf16>
    tpu.vector_store %arg9[%c48_121, %c24_122], %177 {strides = array<i32>} : memref<64x36xbf16, #tpu.memory_space<vmem>>, vector<8x4xbf16>,
    %179 = vector.extract_strided_slice %157 {offsets = [7, 0, 0], sizes = [1, 8, 4], strides = [1, 1, 1]} : vector<8x8x4xbf16> to vector<1x8x4xbf16>
    %180 = vector.shape_cast %179 : vector<1x8x4xbf16> to vector<8x4xbf16>
    %c56_123 = arith.constant 56 : index
    %c24_124 = arith.constant 24 : index
    %181 = vector.load %arg9[%c56_123, %c24_124] : memref<64x36xbf16, #tpu.memory_space<vmem>>, vector<8x4xbf16>
    tpu.vector_store %arg9[%c56_123, %c24_124], %180 {strides = array<i32>} : memref<64x36xbf16, #tpu.memory_space<vmem>>, vector<8x4xbf16>,
    %c0_125 = arith.constant 0 : index
    %c10 = arith.constant 10 : index
    %c0_126 = arith.constant 0 : index
    %c0_127 = arith.constant 0 : index
    %182 = vector.load %arg1[%c0_125, %c10, %c0_126, %c0_127] : memref<1x36x9x4xbf16, #tpu.memory_space<vmem>>, vector<1x8x8x4xbf16>
    %183 = vector.shape_cast %182 : vector<1x8x8x4xbf16> to vector<8x8x4xbf16>
    %184 = vector.extract_strided_slice %183 {offsets = [0, 0, 0], sizes = [1, 8, 4], strides = [1, 1, 1]} : vector<8x8x4xbf16> to vector<1x8x4xbf16>
    %185 = vector.shape_cast %184 : vector<1x8x4xbf16> to vector<8x4xbf16>
    %c0_128 = arith.constant 0 : index
    %c28 = arith.constant 28 : index
    %186 = vector.load %arg9[%c0_128, %c28] : memref<64x36xbf16, #tpu.memory_space<vmem>>, vector<8x4xbf16>
    tpu.vector_store %arg9[%c0_128, %c28], %185 {strides = array<i32>} : memref<64x36xbf16, #tpu.memory_space<vmem>>, vector<8x4xbf16>,
    %187 = vector.extract_strided_slice %183 {offsets = [1, 0, 0], sizes = [1, 8, 4], strides = [1, 1, 1]} : vector<8x8x4xbf16> to vector<1x8x4xbf16>
    %188 = vector.shape_cast %187 : vector<1x8x4xbf16> to vector<8x4xbf16>
    %c8_129 = arith.constant 8 : index
    %c28_130 = arith.constant 28 : index
    %189 = vector.load %arg9[%c8_129, %c28_130] : memref<64x36xbf16, #tpu.memory_space<vmem>>, vector<8x4xbf16>
    tpu.vector_store %arg9[%c8_129, %c28_130], %188 {strides = array<i32>} : memref<64x36xbf16, #tpu.memory_space<vmem>>, vector<8x4xbf16>,
    %190 = vector.extract_strided_slice %183 {offsets = [2, 0, 0], sizes = [1, 8, 4], strides = [1, 1, 1]} : vector<8x8x4xbf16> to vector<1x8x4xbf16>
    %191 = vector.shape_cast %190 : vector<1x8x4xbf16> to vector<8x4xbf16>
    %c16_131 = arith.constant 16 : index
    %c28_132 = arith.constant 28 : index
    %192 = vector.load %arg9[%c16_131, %c28_132] : memref<64x36xbf16, #tpu.memory_space<vmem>>, vector<8x4xbf16>
    tpu.vector_store %arg9[%c16_131, %c28_132], %191 {strides = array<i32>} : memref<64x36xbf16, #tpu.memory_space<vmem>>, vector<8x4xbf16>,
    %193 = vector.extract_strided_slice %183 {offsets = [3, 0, 0], sizes = [1, 8, 4], strides = [1, 1, 1]} : vector<8x8x4xbf16> to vector<1x8x4xbf16>
    %194 = vector.shape_cast %193 : vector<1x8x4xbf16> to vector<8x4xbf16>
    %c24_133 = arith.constant 24 : index
    %c28_134 = arith.constant 28 : index
    %195 = vector.load %arg9[%c24_133, %c28_134] : memref<64x36xbf16, #tpu.memory_space<vmem>>, vector<8x4xbf16>
    tpu.vector_store %arg9[%c24_133, %c28_134], %194 {strides = array<i32>} : memref<64x36xbf16, #tpu.memory_space<vmem>>, vector<8x4xbf16>,
    %196 = vector.extract_strided_slice %183 {offsets = [4, 0, 0], sizes = [1, 8, 4], strides = [1, 1, 1]} : vector<8x8x4xbf16> to vector<1x8x4xbf16>
    %197 = vector.shape_cast %196 : vector<1x8x4xbf16> to vector<8x4xbf16>
    %c32_135 = arith.constant 32 : index
    %c28_136 = arith.constant 28 : index
    %198 = vector.load %arg9[%c32_135, %c28_136] : memref<64x36xbf16, #tpu.memory_space<vmem>>, vector<8x4xbf16>
    tpu.vector_store %arg9[%c32_135, %c28_136], %197 {strides = array<i32>} : memref<64x36xbf16, #tpu.memory_space<vmem>>, vector<8x4xbf16>,
    %199 = vector.extract_strided_slice %183 {offsets = [5, 0, 0], sizes = [1, 8, 4], strides = [1, 1, 1]} : vector<8x8x4xbf16> to vector<1x8x4xbf16>
    %200 = vector.shape_cast %199 : vector<1x8x4xbf16> to vector<8x4xbf16>
    %c40_137 = arith.constant 40 : index
    %c28_138 = arith.constant 28 : index
    %201 = vector.load %arg9[%c40_137, %c28_138] : memref<64x36xbf16, #tpu.memory_space<vmem>>, vector<8x4xbf16>
    tpu.vector_store %arg9[%c40_137, %c28_138], %200 {strides = array<i32>} : memref<64x36xbf16, #tpu.memory_space<vmem>>, vector<8x4xbf16>,
    %202 = vector.extract_strided_slice %183 {offsets = [6, 0, 0], sizes = [1, 8, 4], strides = [1, 1, 1]} : vector<8x8x4xbf16> to vector<1x8x4xbf16>
    %203 = vector.shape_cast %202 : vector<1x8x4xbf16> to vector<8x4xbf16>
    %c48_139 = arith.constant 48 : index
    %c28_140 = arith.constant 28 : index
    %204 = vector.load %arg9[%c48_139, %c28_140] : memref<64x36xbf16, #tpu.memory_space<vmem>>, vector<8x4xbf16>
    tpu.vector_store %arg9[%c48_139, %c28_140], %203 {strides = array<i32>} : memref<64x36xbf16, #tpu.memory_space<vmem>>, vector<8x4xbf16>,
    %205 = vector.extract_strided_slice %183 {offsets = [7, 0, 0], sizes = [1, 8, 4], strides = [1, 1, 1]} : vector<8x8x4xbf16> to vector<1x8x4xbf16>
    %206 = vector.shape_cast %205 : vector<1x8x4xbf16> to vector<8x4xbf16>
    %c56_141 = arith.constant 56 : index
    %c28_142 = arith.constant 28 : index
    %207 = vector.load %arg9[%c56_141, %c28_142] : memref<64x36xbf16, #tpu.memory_space<vmem>>, vector<8x4xbf16>
    tpu.vector_store %arg9[%c56_141, %c28_142], %206 {strides = array<i32>} : memref<64x36xbf16, #tpu.memory_space<vmem>>, vector<8x4xbf16>,
    %c0_143 = arith.constant 0 : index
    %c1_144 = arith.constant 1 : index
    %c1_145 = arith.constant 1 : index
    %c0_146 = arith.constant 0 : index
    %208 = vector.load %arg1[%c0_143, %c1_144, %c1_145, %c0_146] : memref<1x36x9x4xbf16, #tpu.memory_space<vmem>>, vector<1x8x8x4xbf16>
    %209 = vector.shape_cast %208 : vector<1x8x8x4xbf16> to vector<8x8x4xbf16>
    %210 = vector.extract_strided_slice %209 {offsets = [0, 0, 0], sizes = [1, 8, 4], strides = [1, 1, 1]} : vector<8x8x4xbf16> to vector<1x8x4xbf16>
    %211 = vector.shape_cast %210 : vector<1x8x4xbf16> to vector<8x4xbf16>
    %c0_147 = arith.constant 0 : index
    %c32_148 = arith.constant 32 : index
    %212 = vector.load %arg9[%c0_147, %c32_148] : memref<64x36xbf16, #tpu.memory_space<vmem>>, vector<8x4xbf16>
    tpu.vector_store %arg9[%c0_147, %c32_148], %211 {strides = array<i32>} : memref<64x36xbf16, #tpu.memory_space<vmem>>, vector<8x4xbf16>,
    %213 = vector.extract_strided_slice %209 {offsets = [1, 0, 0], sizes = [1, 8, 4], strides = [1, 1, 1]} : vector<8x8x4xbf16> to vector<1x8x4xbf16>
    %214 = vector.shape_cast %213 : vector<1x8x4xbf16> to vector<8x4xbf16>
    %c8_149 = arith.constant 8 : index
    %c32_150 = arith.constant 32 : index
    %215 = vector.load %arg9[%c8_149, %c32_150] : memref<64x36xbf16, #tpu.memory_space<vmem>>, vector<8x4xbf16>
    tpu.vector_store %arg9[%c8_149, %c32_150], %214 {strides = array<i32>} : memref<64x36xbf16, #tpu.memory_space<vmem>>, vector<8x4xbf16>,
    %216 = vector.extract_strided_slice %209 {offsets = [2, 0, 0], sizes = [1, 8, 4], strides = [1, 1, 1]} : vector<8x8x4xbf16> to vector<1x8x4xbf16>
    %217 = vector.shape_cast %216 : vector<1x8x4xbf16> to vector<8x4xbf16>
    %c16_151 = arith.constant 16 : index
    %c32_152 = arith.constant 32 : index
    %218 = vector.load %arg9[%c16_151, %c32_152] : memref<64x36xbf16, #tpu.memory_space<vmem>>, vector<8x4xbf16>
    tpu.vector_store %arg9[%c16_151, %c32_152], %217 {strides = array<i32>} : memref<64x36xbf16, #tpu.memory_space<vmem>>, vector<8x4xbf16>,
    %219 = vector.extract_strided_slice %209 {offsets = [3, 0, 0], sizes = [1, 8, 4], strides = [1, 1, 1]} : vector<8x8x4xbf16> to vector<1x8x4xbf16>
    %220 = vector.shape_cast %219 : vector<1x8x4xbf16> to vector<8x4xbf16>
    %c24_153 = arith.constant 24 : index
    %c32_154 = arith.constant 32 : index
    %221 = vector.load %arg9[%c24_153, %c32_154] : memref<64x36xbf16, #tpu.memory_space<vmem>>, vector<8x4xbf16>
    tpu.vector_store %arg9[%c24_153, %c32_154], %220 {strides = array<i32>} : memref<64x36xbf16, #tpu.memory_space<vmem>>, vector<8x4xbf16>,
    %222 = vector.extract_strided_slice %209 {offsets = [4, 0, 0], sizes = [1, 8, 4], strides = [1, 1, 1]} : vector<8x8x4xbf16> to vector<1x8x4xbf16>
    %223 = vector.shape_cast %222 : vector<1x8x4xbf16> to vector<8x4xbf16>
    %c32_155 = arith.constant 32 : index
    %c32_156 = arith.constant 32 : index
    %224 = vector.load %arg9[%c32_155, %c32_156] : memref<64x36xbf16, #tpu.memory_space<vmem>>, vector<8x4xbf16>
    tpu.vector_store %arg9[%c32_155, %c32_156], %223 {strides = array<i32>} : memref<64x36xbf16, #tpu.memory_space<vmem>>, vector<8x4xbf16>,
    %225 = vector.extract_strided_slice %209 {offsets = [5, 0, 0], sizes = [1, 8, 4], strides = [1, 1, 1]} : vector<8x8x4xbf16> to vector<1x8x4xbf16>
    %226 = vector.shape_cast %225 : vector<1x8x4xbf16> to vector<8x4xbf16>
    %c40_157 = arith.constant 40 : index
    %c32_158 = arith.constant 32 : index
    %227 = vector.load %arg9[%c40_157, %c32_158] : memref<64x36xbf16, #tpu.memory_space<vmem>>, vector<8x4xbf16>
    tpu.vector_store %arg9[%c40_157, %c32_158], %226 {strides = array<i32>} : memref<64x36xbf16, #tpu.memory_space<vmem>>, vector<8x4xbf16>,
    %228 = vector.extract_strided_slice %209 {offsets = [6, 0, 0], sizes = [1, 8, 4], strides = [1, 1, 1]} : vector<8x8x4xbf16> to vector<1x8x4xbf16>
    %229 = vector.shape_cast %228 : vector<1x8x4xbf16> to vector<8x4xbf16>
    %c48_159 = arith.constant 48 : index
    %c32_160 = arith.constant 32 : index
    %230 = vector.load %arg9[%c48_159, %c32_160] : memref<64x36xbf16, #tpu.memory_space<vmem>>, vector<8x4xbf16>
    tpu.vector_store %arg9[%c48_159, %c32_160], %229 {strides = array<i32>} : memref<64x36xbf16, #tpu.memory_space<vmem>>, vector<8x4xbf16>,
    %231 = vector.extract_strided_slice %209 {offsets = [7, 0, 0], sizes = [1, 8, 4], strides = [1, 1, 1]} : vector<8x8x4xbf16> to vector<1x8x4xbf16>
    %232 = vector.shape_cast %231 : vector<1x8x4xbf16> to vector<8x4xbf16>
    %c56_161 = arith.constant 56 : index
    %c32_162 = arith.constant 32 : index
    %233 = vector.load %arg9[%c56_161, %c32_162] : memref<64x36xbf16, #tpu.memory_space<vmem>>, vector<8x4xbf16>
    tpu.vector_store %arg9[%c56_161, %c32_162], %232 {strides = array<i32>} : memref<64x36xbf16, #tpu.memory_space<vmem>>, vector<8x4xbf16>,
    %c0_163 = arith.constant 0 : index
    %c0_164 = arith.constant 0 : index
    %234 = vector.load %arg9[%c0_163, %c0_164] : memref<64x36xbf16, #tpu.memory_space<vmem>>, vector<64x36xbf16>
    %c0_165 = arith.constant 0 : index
    %c0_166 = arith.constant 0 : index
    %235 = vector.load %arg2[%c0_165, %c0_166] : memref<36x8xbf16, #tpu.memory_space<vmem>>, vector<36x8xbf16>
    %cst = arith.constant dense<0.000000e+00> : vector<64x8xf32>
    %236 = tpu.matmul %234, %235, %cst {dimension_numbers = #tpu.dot_dimension_numbers<[1], [0], [0], [1], [0, 0, 1, 1], [], []>} : vector<64x36xbf16>, vector<36x8xbf16>, vector<64x8xf32> -> vector<64x8xf32>
    %c0_167 = arith.constant 0 : index
    %c0_168 = arith.constant 0 : index
    %237 = vector.load %arg3[%c0_167, %c0_168] : memref<1x8xf32, #tpu.memory_space<vmem>>, vector<1x8xf32>
    %238 = vector.broadcast %237 : vector<1x8xf32> to vector<64x8xf32>
    %239 = arith.addf %236, %238 : vector<64x8xf32>
    %cst_169 = arith.constant 0.000000e+00 : f32
    %240 = vector.broadcast %cst_169 : f32 to vector<64x8xf32>
    %241 = arith.maximumf %239, %240 : vector<64x8xf32>
    %cst_170 = arith.constant 0.000000e+00 : bf16
    %242 = vector.broadcast %cst_170 : bf16 to vector<10x8xbf16>
    %c0_171 = arith.constant 0 : index
    %c0_172 = arith.constant 0 : index
    %c0_173 = arith.constant 0 : index
    %243 = vector.load %arg10[%c0_171, %c0_172, %c0_173] : memref<10x10x8xbf16, #tpu.memory_space<vmem>>, vector<1x10x8xbf16>
    %244 = vector.shape_cast %243 : vector<1x10x8xbf16> to vector<10x8xbf16>
    %245 = vector.shape_cast %242 : vector<10x8xbf16> to vector<1x10x8xbf16>
    tpu.vector_store %arg10[%c0_171, %c0_172, %c0_173], %245 {strides = array<i32>} : memref<10x10x8xbf16, #tpu.memory_space<vmem>>, vector<1x10x8xbf16>,
    %c9_174 = arith.constant 9 : index
    %c0_175 = arith.constant 0 : index
    %c0_176 = arith.constant 0 : index
    %246 = vector.load %arg10[%c9_174, %c0_175, %c0_176] : memref<10x10x8xbf16, #tpu.memory_space<vmem>>, vector<1x10x8xbf16>
    %247 = vector.shape_cast %246 : vector<1x10x8xbf16> to vector<10x8xbf16>
    %248 = vector.shape_cast %242 : vector<10x8xbf16> to vector<1x10x8xbf16>
    tpu.vector_store %arg10[%c9_174, %c0_175, %c0_176], %248 {strides = array<i32>} : memref<10x10x8xbf16, #tpu.memory_space<vmem>>, vector<1x10x8xbf16>,
    %cst_177 = arith.constant 0.000000e+00 : bf16
    %249 = vector.broadcast %cst_177 : bf16 to vector<10x1x8xbf16>
    %c0_178 = arith.constant 0 : index
    %c0_179 = arith.constant 0 : index
    %c0_180 = arith.constant 0 : index
    %250 = vector.load %arg10[%c0_178, %c0_179, %c0_180] : memref<10x10x8xbf16, #tpu.memory_space<vmem>>, vector<10x1x8xbf16>
    tpu.vector_store %arg10[%c0_178, %c0_179, %c0_180], %249 {strides = array<i32>} : memref<10x10x8xbf16, #tpu.memory_space<vmem>>, vector<10x1x8xbf16>,
    %c0_181 = arith.constant 0 : index
    %c9_182 = arith.constant 9 : index
    %c0_183 = arith.constant 0 : index
    %251 = vector.load %arg10[%c0_181, %c9_182, %c0_183] : memref<10x10x8xbf16, #tpu.memory_space<vmem>>, vector<10x1x8xbf16>
    tpu.vector_store %arg10[%c0_181, %c9_182, %c0_183], %249 {strides = array<i32>} : memref<10x10x8xbf16, #tpu.memory_space<vmem>>, vector<10x1x8xbf16>,
    %252 = vector.extract_strided_slice %241 {offsets = [0, 0], sizes = [8, 8], strides = [1, 1]} : vector<64x8xf32> to vector<8x8xf32>
    %253 = arith.truncf %252 : vector<8x8xf32> to vector<8x8xbf16>
    %c1_184 = arith.constant 1 : index
    %c1_185 = arith.constant 1 : index
    %c0_186 = arith.constant 0 : index
    %254 = vector.load %arg10[%c1_184, %c1_185, %c0_186] : memref<10x10x8xbf16, #tpu.memory_space<vmem>>, vector<1x8x8xbf16>
    %255 = vector.shape_cast %254 : vector<1x8x8xbf16> to vector<8x8xbf16>
    %256 = vector.shape_cast %253 : vector<8x8xbf16> to vector<1x8x8xbf16>
    tpu.vector_store %arg10[%c1_184, %c1_185, %c0_186], %256 {strides = array<i32>} : memref<10x10x8xbf16, #tpu.memory_space<vmem>>, vector<1x8x8xbf16>,
    %257 = vector.extract_strided_slice %241 {offsets = [8, 0], sizes = [8, 8], strides = [1, 1]} : vector<64x8xf32> to vector<8x8xf32>
    %258 = arith.truncf %257 : vector<8x8xf32> to vector<8x8xbf16>
    %c2 = arith.constant 2 : index
    %c1_187 = arith.constant 1 : index
    %c0_188 = arith.constant 0 : index
    %259 = vector.load %arg10[%c2, %c1_187, %c0_188] : memref<10x10x8xbf16, #tpu.memory_space<vmem>>, vector<1x8x8xbf16>
    %260 = vector.shape_cast %259 : vector<1x8x8xbf16> to vector<8x8xbf16>
    %261 = vector.shape_cast %258 : vector<8x8xbf16> to vector<1x8x8xbf16>
    tpu.vector_store %arg10[%c2, %c1_187, %c0_188], %261 {strides = array<i32>} : memref<10x10x8xbf16, #tpu.memory_space<vmem>>, vector<1x8x8xbf16>,
    %262 = vector.extract_strided_slice %241 {offsets = [16, 0], sizes = [8, 8], strides = [1, 1]} : vector<64x8xf32> to vector<8x8xf32>
    %263 = arith.truncf %262 : vector<8x8xf32> to vector<8x8xbf16>
    %c3 = arith.constant 3 : index
    %c1_189 = arith.constant 1 : index
    %c0_190 = arith.constant 0 : index
    %264 = vector.load %arg10[%c3, %c1_189, %c0_190] : memref<10x10x8xbf16, #tpu.memory_space<vmem>>, vector<1x8x8xbf16>
    %265 = vector.shape_cast %264 : vector<1x8x8xbf16> to vector<8x8xbf16>
    %266 = vector.shape_cast %263 : vector<8x8xbf16> to vector<1x8x8xbf16>
    tpu.vector_store %arg10[%c3, %c1_189, %c0_190], %266 {strides = array<i32>} : memref<10x10x8xbf16, #tpu.memory_space<vmem>>, vector<1x8x8xbf16>,
    %267 = vector.extract_strided_slice %241 {offsets = [24, 0], sizes = [8, 8], strides = [1, 1]} : vector<64x8xf32> to vector<8x8xf32>
    %268 = arith.truncf %267 : vector<8x8xf32> to vector<8x8xbf16>
    %c4_191 = arith.constant 4 : index
    %c1_192 = arith.constant 1 : index
    %c0_193 = arith.constant 0 : index
    %269 = vector.load %arg10[%c4_191, %c1_192, %c0_193] : memref<10x10x8xbf16, #tpu.memory_space<vmem>>, vector<1x8x8xbf16>
    %270 = vector.shape_cast %269 : vector<1x8x8xbf16> to vector<8x8xbf16>
    %271 = vector.shape_cast %268 : vector<8x8xbf16> to vector<1x8x8xbf16>
    tpu.vector_store %arg10[%c4_191, %c1_192, %c0_193], %271 {strides = array<i32>} : memref<10x10x8xbf16, #tpu.memory_space<vmem>>, vector<1x8x8xbf16>,
    %272 = vector.extract_strided_slice %241 {offsets = [32, 0], sizes = [8, 8], strides = [1, 1]} : vector<64x8xf32> to vector<8x8xf32>
    %273 = arith.truncf %272 : vector<8x8xf32> to vector<8x8xbf16>
    %c5 = arith.constant 5 : index
    %c1_194 = arith.constant 1 : index
    %c0_195 = arith.constant 0 : index
    %274 = vector.load %arg10[%c5, %c1_194, %c0_195] : memref<10x10x8xbf16, #tpu.memory_space<vmem>>, vector<1x8x8xbf16>
    %275 = vector.shape_cast %274 : vector<1x8x8xbf16> to vector<8x8xbf16>
    %276 = vector.shape_cast %273 : vector<8x8xbf16> to vector<1x8x8xbf16>
    tpu.vector_store %arg10[%c5, %c1_194, %c0_195], %276 {strides = array<i32>} : memref<10x10x8xbf16, #tpu.memory_space<vmem>>, vector<1x8x8xbf16>,
    %277 = vector.extract_strided_slice %241 {offsets = [40, 0], sizes = [8, 8], strides = [1, 1]} : vector<64x8xf32> to vector<8x8xf32>
    %278 = arith.truncf %277 : vector<8x8xf32> to vector<8x8xbf16>
    %c6 = arith.constant 6 : index
    %c1_196 = arith.constant 1 : index
    %c0_197 = arith.constant 0 : index
    %279 = vector.load %arg10[%c6, %c1_196, %c0_197] : memref<10x10x8xbf16, #tpu.memory_space<vmem>>, vector<1x8x8xbf16>
    %280 = vector.shape_cast %279 : vector<1x8x8xbf16> to vector<8x8xbf16>
    %281 = vector.shape_cast %278 : vector<8x8xbf16> to vector<1x8x8xbf16>
    tpu.vector_store %arg10[%c6, %c1_196, %c0_197], %281 {strides = array<i32>} : memref<10x10x8xbf16, #tpu.memory_space<vmem>>, vector<1x8x8xbf16>,
    %282 = vector.extract_strided_slice %241 {offsets = [48, 0], sizes = [8, 8], strides = [1, 1]} : vector<64x8xf32> to vector<8x8xf32>
    %283 = arith.truncf %282 : vector<8x8xf32> to vector<8x8xbf16>
    %c7 = arith.constant 7 : index
    %c1_198 = arith.constant 1 : index
    %c0_199 = arith.constant 0 : index
    %284 = vector.load %arg10[%c7, %c1_198, %c0_199] : memref<10x10x8xbf16, #tpu.memory_space<vmem>>, vector<1x8x8xbf16>
    %285 = vector.shape_cast %284 : vector<1x8x8xbf16> to vector<8x8xbf16>
    %286 = vector.shape_cast %283 : vector<8x8xbf16> to vector<1x8x8xbf16>
    tpu.vector_store %arg10[%c7, %c1_198, %c0_199], %286 {strides = array<i32>} : memref<10x10x8xbf16, #tpu.memory_space<vmem>>, vector<1x8x8xbf16>,
    %287 = vector.extract_strided_slice %241 {offsets = [56, 0], sizes = [8, 8], strides = [1, 1]} : vector<64x8xf32> to vector<8x8xf32>
    %288 = arith.truncf %287 : vector<8x8xf32> to vector<8x8xbf16>
    %c8_200 = arith.constant 8 : index
    %c1_201 = arith.constant 1 : index
    %c0_202 = arith.constant 0 : index
    %289 = vector.load %arg10[%c8_200, %c1_201, %c0_202] : memref<10x10x8xbf16, #tpu.memory_space<vmem>>, vector<1x8x8xbf16>
    %290 = vector.shape_cast %289 : vector<1x8x8xbf16> to vector<8x8xbf16>
    %291 = vector.shape_cast %288 : vector<8x8xbf16> to vector<1x8x8xbf16>
    tpu.vector_store %arg10[%c8_200, %c1_201, %c0_202], %291 {strides = array<i32>} : memref<10x10x8xbf16, #tpu.memory_space<vmem>>, vector<1x8x8xbf16>,
    %c0_203 = arith.constant 0 : index
    %c0_204 = arith.constant 0 : index
    %c0_205 = arith.constant 0 : index
    %292 = vector.load %arg10[%c0_203, %c0_204, %c0_205] : memref<10x10x8xbf16, #tpu.memory_space<vmem>>, vector<8x8x8xbf16>
    %293 = vector.extract_strided_slice %292 {offsets = [0, 0, 0], sizes = [1, 8, 8], strides = [1, 1, 1]} : vector<8x8x8xbf16> to vector<1x8x8xbf16>
    %294 = vector.shape_cast %293 : vector<1x8x8xbf16> to vector<8x8xbf16>
    %c0_206 = arith.constant 0 : index
    %c0_207 = arith.constant 0 : index
    %295 = vector.load %arg11[%c0_206, %c0_207] : memref<64x72xbf16, #tpu.memory_space<vmem>>, vector<8x8xbf16>
    tpu.vector_store %arg11[%c0_206, %c0_207], %294 {strides = array<i32>} : memref<64x72xbf16, #tpu.memory_space<vmem>>, vector<8x8xbf16>,
    %296 = vector.extract_strided_slice %292 {offsets = [1, 0, 0], sizes = [1, 8, 8], strides = [1, 1, 1]} : vector<8x8x8xbf16> to vector<1x8x8xbf16>
    %297 = vector.shape_cast %296 : vector<1x8x8xbf16> to vector<8x8xbf16>
    %c8_208 = arith.constant 8 : index
    %c0_209 = arith.constant 0 : index
    %298 = vector.load %arg11[%c8_208, %c0_209] : memref<64x72xbf16, #tpu.memory_space<vmem>>, vector<8x8xbf16>
    tpu.vector_store %arg11[%c8_208, %c0_209], %297 {strides = array<i32>} : memref<64x72xbf16, #tpu.memory_space<vmem>>, vector<8x8xbf16>,
    %299 = vector.extract_strided_slice %292 {offsets = [2, 0, 0], sizes = [1, 8, 8], strides = [1, 1, 1]} : vector<8x8x8xbf16> to vector<1x8x8xbf16>
    %300 = vector.shape_cast %299 : vector<1x8x8xbf16> to vector<8x8xbf16>
    %c16_210 = arith.constant 16 : index
    %c0_211 = arith.constant 0 : index
    %301 = vector.load %arg11[%c16_210, %c0_211] : memref<64x72xbf16, #tpu.memory_space<vmem>>, vector<8x8xbf16>
    tpu.vector_store %arg11[%c16_210, %c0_211], %300 {strides = array<i32>} : memref<64x72xbf16, #tpu.memory_space<vmem>>, vector<8x8xbf16>,
    %302 = vector.extract_strided_slice %292 {offsets = [3, 0, 0], sizes = [1, 8, 8], strides = [1, 1, 1]} : vector<8x8x8xbf16> to vector<1x8x8xbf16>
    %303 = vector.shape_cast %302 : vector<1x8x8xbf16> to vector<8x8xbf16>
    %c24_212 = arith.constant 24 : index
    %c0_213 = arith.constant 0 : index
    %304 = vector.load %arg11[%c24_212, %c0_213] : memref<64x72xbf16, #tpu.memory_space<vmem>>, vector<8x8xbf16>
    tpu.vector_store %arg11[%c24_212, %c0_213], %303 {strides = array<i32>} : memref<64x72xbf16, #tpu.memory_space<vmem>>, vector<8x8xbf16>,
    %305 = vector.extract_strided_slice %292 {offsets = [4, 0, 0], sizes = [1, 8, 8], strides = [1, 1, 1]} : vector<8x8x8xbf16> to vector<1x8x8xbf16>
    %306 = vector.shape_cast %305 : vector<1x8x8xbf16> to vector<8x8xbf16>
    %c32_214 = arith.constant 32 : index
    %c0_215 = arith.constant 0 : index
    %307 = vector.load %arg11[%c32_214, %c0_215] : memref<64x72xbf16, #tpu.memory_space<vmem>>, vector<8x8xbf16>
    tpu.vector_store %arg11[%c32_214, %c0_215], %306 {strides = array<i32>} : memref<64x72xbf16, #tpu.memory_space<vmem>>, vector<8x8xbf16>,
    %308 = vector.extract_strided_slice %292 {offsets = [5, 0, 0], sizes = [1, 8, 8], strides = [1, 1, 1]} : vector<8x8x8xbf16> to vector<1x8x8xbf16>
    %309 = vector.shape_cast %308 : vector<1x8x8xbf16> to vector<8x8xbf16>
    %c40_216 = arith.constant 40 : index
    %c0_217 = arith.constant 0 : index
    %310 = vector.load %arg11[%c40_216, %c0_217] : memref<64x72xbf16, #tpu.memory_space<vmem>>, vector<8x8xbf16>
    tpu.vector_store %arg11[%c40_216, %c0_217], %309 {strides = array<i32>} : memref<64x72xbf16, #tpu.memory_space<vmem>>, vector<8x8xbf16>,
    %311 = vector.extract_strided_slice %292 {offsets = [6, 0, 0], sizes = [1, 8, 8], strides = [1, 1, 1]} : vector<8x8x8xbf16> to vector<1x8x8xbf16>
    %312 = vector.shape_cast %311 : vector<1x8x8xbf16> to vector<8x8xbf16>
    %c48_218 = arith.constant 48 : index
    %c0_219 = arith.constant 0 : index
    %313 = vector.load %arg11[%c48_218, %c0_219] : memref<64x72xbf16, #tpu.memory_space<vmem>>, vector<8x8xbf16>
    tpu.vector_store %arg11[%c48_218, %c0_219], %312 {strides = array<i32>} : memref<64x72xbf16, #tpu.memory_space<vmem>>, vector<8x8xbf16>,
    %314 = vector.extract_strided_slice %292 {offsets = [7, 0, 0], sizes = [1, 8, 8], strides = [1, 1, 1]} : vector<8x8x8xbf16> to vector<1x8x8xbf16>
    %315 = vector.shape_cast %314 : vector<1x8x8xbf16> to vector<8x8xbf16>
    %c56_220 = arith.constant 56 : index
    %c0_221 = arith.constant 0 : index
    %316 = vector.load %arg11[%c56_220, %c0_221] : memref<64x72xbf16, #tpu.memory_space<vmem>>, vector<8x8xbf16>
    tpu.vector_store %arg11[%c56_220, %c0_221], %315 {strides = array<i32>} : memref<64x72xbf16, #tpu.memory_space<vmem>>, vector<8x8xbf16>,
    %c0_222 = arith.constant 0 : index
    %c1_223 = arith.constant 1 : index
    %c0_224 = arith.constant 0 : index
    %317 = vector.load %arg10[%c0_222, %c1_223, %c0_224] : memref<10x10x8xbf16, #tpu.memory_space<vmem>>, vector<8x8x8xbf16>
    %318 = vector.extract_strided_slice %317 {offsets = [0, 0, 0], sizes = [1, 8, 8], strides = [1, 1, 1]} : vector<8x8x8xbf16> to vector<1x8x8xbf16>
    %319 = vector.shape_cast %318 : vector<1x8x8xbf16> to vector<8x8xbf16>
    %c0_225 = arith.constant 0 : index
    %c8_226 = arith.constant 8 : index
    %320 = vector.load %arg11[%c0_225, %c8_226] : memref<64x72xbf16, #tpu.memory_space<vmem>>, vector<8x8xbf16>
    tpu.vector_store %arg11[%c0_225, %c8_226], %319 {strides = array<i32>} : memref<64x72xbf16, #tpu.memory_space<vmem>>, vector<8x8xbf16>,
    %321 = vector.extract_strided_slice %317 {offsets = [1, 0, 0], sizes = [1, 8, 8], strides = [1, 1, 1]} : vector<8x8x8xbf16> to vector<1x8x8xbf16>
    %322 = vector.shape_cast %321 : vector<1x8x8xbf16> to vector<8x8xbf16>
    %c8_227 = arith.constant 8 : index
    %c8_228 = arith.constant 8 : index
    %323 = vector.load %arg11[%c8_227, %c8_228] : memref<64x72xbf16, #tpu.memory_space<vmem>>, vector<8x8xbf16>
    tpu.vector_store %arg11[%c8_227, %c8_228], %322 {strides = array<i32>} : memref<64x72xbf16, #tpu.memory_space<vmem>>, vector<8x8xbf16>,
    %324 = vector.extract_strided_slice %317 {offsets = [2, 0, 0], sizes = [1, 8, 8], strides = [1, 1, 1]} : vector<8x8x8xbf16> to vector<1x8x8xbf16>
    %325 = vector.shape_cast %324 : vector<1x8x8xbf16> to vector<8x8xbf16>
    %c16_229 = arith.constant 16 : index
    %c8_230 = arith.constant 8 : index
    %326 = vector.load %arg11[%c16_229, %c8_230] : memref<64x72xbf16, #tpu.memory_space<vmem>>, vector<8x8xbf16>
    tpu.vector_store %arg11[%c16_229, %c8_230], %325 {strides = array<i32>} : memref<64x72xbf16, #tpu.memory_space<vmem>>, vector<8x8xbf16>,
    %327 = vector.extract_strided_slice %317 {offsets = [3, 0, 0], sizes = [1, 8, 8], strides = [1, 1, 1]} : vector<8x8x8xbf16> to vector<1x8x8xbf16>
    %328 = vector.shape_cast %327 : vector<1x8x8xbf16> to vector<8x8xbf16>
    %c24_231 = arith.constant 24 : index
    %c8_232 = arith.constant 8 : index
    %329 = vector.load %arg11[%c24_231, %c8_232] : memref<64x72xbf16, #tpu.memory_space<vmem>>, vector<8x8xbf16>
    tpu.vector_store %arg11[%c24_231, %c8_232], %328 {strides = array<i32>} : memref<64x72xbf16, #tpu.memory_space<vmem>>, vector<8x8xbf16>,
    %330 = vector.extract_strided_slice %317 {offsets = [4, 0, 0], sizes = [1, 8, 8], strides = [1, 1, 1]} : vector<8x8x8xbf16> to vector<1x8x8xbf16>
    %331 = vector.shape_cast %330 : vector<1x8x8xbf16> to vector<8x8xbf16>
    %c32_233 = arith.constant 32 : index
    %c8_234 = arith.constant 8 : index
    %332 = vector.load %arg11[%c32_233, %c8_234] : memref<64x72xbf16, #tpu.memory_space<vmem>>, vector<8x8xbf16>
    tpu.vector_store %arg11[%c32_233, %c8_234], %331 {strides = array<i32>} : memref<64x72xbf16, #tpu.memory_space<vmem>>, vector<8x8xbf16>,
    %333 = vector.extract_strided_slice %317 {offsets = [5, 0, 0], sizes = [1, 8, 8], strides = [1, 1, 1]} : vector<8x8x8xbf16> to vector<1x8x8xbf16>
    %334 = vector.shape_cast %333 : vector<1x8x8xbf16> to vector<8x8xbf16>
    %c40_235 = arith.constant 40 : index
    %c8_236 = arith.constant 8 : index
    %335 = vector.load %arg11[%c40_235, %c8_236] : memref<64x72xbf16, #tpu.memory_space<vmem>>, vector<8x8xbf16>
    tpu.vector_store %arg11[%c40_235, %c8_236], %334 {strides = array<i32>} : memref<64x72xbf16, #tpu.memory_space<vmem>>, vector<8x8xbf16>,
    %336 = vector.extract_strided_slice %317 {offsets = [6, 0, 0], sizes = [1, 8, 8], strides = [1, 1, 1]} : vector<8x8x8xbf16> to vector<1x8x8xbf16>
    %337 = vector.shape_cast %336 : vector<1x8x8xbf16> to vector<8x8xbf16>
    %c48_237 = arith.constant 48 : index
    %c8_238 = arith.constant 8 : index
    %338 = vector.load %arg11[%c48_237, %c8_238] : memref<64x72xbf16, #tpu.memory_space<vmem>>, vector<8x8xbf16>
    tpu.vector_store %arg11[%c48_237, %c8_238], %337 {strides = array<i32>} : memref<64x72xbf16, #tpu.memory_space<vmem>>, vector<8x8xbf16>,
    %339 = vector.extract_strided_slice %317 {offsets = [7, 0, 0], sizes = [1, 8, 8], strides = [1, 1, 1]} : vector<8x8x8xbf16> to vector<1x8x8xbf16>
    %340 = vector.shape_cast %339 : vector<1x8x8xbf16> to vector<8x8xbf16>
    %c56_239 = arith.constant 56 : index
    %c8_240 = arith.constant 8 : index
    %341 = vector.load %arg11[%c56_239, %c8_240] : memref<64x72xbf16, #tpu.memory_space<vmem>>, vector<8x8xbf16>
    tpu.vector_store %arg11[%c56_239, %c8_240], %340 {strides = array<i32>} : memref<64x72xbf16, #tpu.memory_space<vmem>>, vector<8x8xbf16>,
    %c0_241 = arith.constant 0 : index
    %c2_242 = arith.constant 2 : index
    %c0_243 = arith.constant 0 : index
    %342 = vector.load %arg10[%c0_241, %c2_242, %c0_243] : memref<10x10x8xbf16, #tpu.memory_space<vmem>>, vector<8x8x8xbf16>
    %343 = vector.extract_strided_slice %342 {offsets = [0, 0, 0], sizes = [1, 8, 8], strides = [1, 1, 1]} : vector<8x8x8xbf16> to vector<1x8x8xbf16>
    %344 = vector.shape_cast %343 : vector<1x8x8xbf16> to vector<8x8xbf16>
    %c0_244 = arith.constant 0 : index
    %c16_245 = arith.constant 16 : index
    %345 = vector.load %arg11[%c0_244, %c16_245] : memref<64x72xbf16, #tpu.memory_space<vmem>>, vector<8x8xbf16>
    tpu.vector_store %arg11[%c0_244, %c16_245], %344 {strides = array<i32>} : memref<64x72xbf16, #tpu.memory_space<vmem>>, vector<8x8xbf16>,
    %346 = vector.extract_strided_slice %342 {offsets = [1, 0, 0], sizes = [1, 8, 8], strides = [1, 1, 1]} : vector<8x8x8xbf16> to vector<1x8x8xbf16>
    %347 = vector.shape_cast %346 : vector<1x8x8xbf16> to vector<8x8xbf16>
    %c8_246 = arith.constant 8 : index
    %c16_247 = arith.constant 16 : index
    %348 = vector.load %arg11[%c8_246, %c16_247] : memref<64x72xbf16, #tpu.memory_space<vmem>>, vector<8x8xbf16>
    tpu.vector_store %arg11[%c8_246, %c16_247], %347 {strides = array<i32>} : memref<64x72xbf16, #tpu.memory_space<vmem>>, vector<8x8xbf16>,
    %349 = vector.extract_strided_slice %342 {offsets = [2, 0, 0], sizes = [1, 8, 8], strides = [1, 1, 1]} : vector<8x8x8xbf16> to vector<1x8x8xbf16>
    %350 = vector.shape_cast %349 : vector<1x8x8xbf16> to vector<8x8xbf16>
    %c16_248 = arith.constant 16 : index
    %c16_249 = arith.constant 16 : index
    %351 = vector.load %arg11[%c16_248, %c16_249] : memref<64x72xbf16, #tpu.memory_space<vmem>>, vector<8x8xbf16>
    tpu.vector_store %arg11[%c16_248, %c16_249], %350 {strides = array<i32>} : memref<64x72xbf16, #tpu.memory_space<vmem>>, vector<8x8xbf16>,
    %352 = vector.extract_strided_slice %342 {offsets = [3, 0, 0], sizes = [1, 8, 8], strides = [1, 1, 1]} : vector<8x8x8xbf16> to vector<1x8x8xbf16>
    %353 = vector.shape_cast %352 : vector<1x8x8xbf16> to vector<8x8xbf16>
    %c24_250 = arith.constant 24 : index
    %c16_251 = arith.constant 16 : index
    %354 = vector.load %arg11[%c24_250, %c16_251] : memref<64x72xbf16, #tpu.memory_space<vmem>>, vector<8x8xbf16>
    tpu.vector_store %arg11[%c24_250, %c16_251], %353 {strides = array<i32>} : memref<64x72xbf16, #tpu.memory_space<vmem>>, vector<8x8xbf16>,
    %355 = vector.extract_strided_slice %342 {offsets = [4, 0, 0], sizes = [1, 8, 8], strides = [1, 1, 1]} : vector<8x8x8xbf16> to vector<1x8x8xbf16>
    %356 = vector.shape_cast %355 : vector<1x8x8xbf16> to vector<8x8xbf16>
    %c32_252 = arith.constant 32 : index
    %c16_253 = arith.constant 16 : index
    %357 = vector.load %arg11[%c32_252, %c16_253] : memref<64x72xbf16, #tpu.memory_space<vmem>>, vector<8x8xbf16>
    tpu.vector_store %arg11[%c32_252, %c16_253], %356 {strides = array<i32>} : memref<64x72xbf16, #tpu.memory_space<vmem>>, vector<8x8xbf16>,
    %358 = vector.extract_strided_slice %342 {offsets = [5, 0, 0], sizes = [1, 8, 8], strides = [1, 1, 1]} : vector<8x8x8xbf16> to vector<1x8x8xbf16>
    %359 = vector.shape_cast %358 : vector<1x8x8xbf16> to vector<8x8xbf16>
    %c40_254 = arith.constant 40 : index
    %c16_255 = arith.constant 16 : index
    %360 = vector.load %arg11[%c40_254, %c16_255] : memref<64x72xbf16, #tpu.memory_space<vmem>>, vector<8x8xbf16>
    tpu.vector_store %arg11[%c40_254, %c16_255], %359 {strides = array<i32>} : memref<64x72xbf16, #tpu.memory_space<vmem>>, vector<8x8xbf16>,
    %361 = vector.extract_strided_slice %342 {offsets = [6, 0, 0], sizes = [1, 8, 8], strides = [1, 1, 1]} : vector<8x8x8xbf16> to vector<1x8x8xbf16>
    %362 = vector.shape_cast %361 : vector<1x8x8xbf16> to vector<8x8xbf16>
    %c48_256 = arith.constant 48 : index
    %c16_257 = arith.constant 16 : index
    %363 = vector.load %arg11[%c48_256, %c16_257] : memref<64x72xbf16, #tpu.memory_space<vmem>>, vector<8x8xbf16>
    tpu.vector_store %arg11[%c48_256, %c16_257], %362 {strides = array<i32>} : memref<64x72xbf16, #tpu.memory_space<vmem>>, vector<8x8xbf16>,
    %364 = vector.extract_strided_slice %342 {offsets = [7, 0, 0], sizes = [1, 8, 8], strides = [1, 1, 1]} : vector<8x8x8xbf16> to vector<1x8x8xbf16>
    %365 = vector.shape_cast %364 : vector<1x8x8xbf16> to vector<8x8xbf16>
    %c56_258 = arith.constant 56 : index
    %c16_259 = arith.constant 16 : index
    %366 = vector.load %arg11[%c56_258, %c16_259] : memref<64x72xbf16, #tpu.memory_space<vmem>>, vector<8x8xbf16>
    tpu.vector_store %arg11[%c56_258, %c16_259], %365 {strides = array<i32>} : memref<64x72xbf16, #tpu.memory_space<vmem>>, vector<8x8xbf16>,
    %c1_260 = arith.constant 1 : index
    %c0_261 = arith.constant 0 : index
    %c0_262 = arith.constant 0 : index
    %367 = vector.load %arg10[%c1_260, %c0_261, %c0_262] : memref<10x10x8xbf16, #tpu.memory_space<vmem>>, vector<8x8x8xbf16>
    %368 = vector.extract_strided_slice %367 {offsets = [0, 0, 0], sizes = [1, 8, 8], strides = [1, 1, 1]} : vector<8x8x8xbf16> to vector<1x8x8xbf16>
    %369 = vector.shape_cast %368 : vector<1x8x8xbf16> to vector<8x8xbf16>
    %c0_263 = arith.constant 0 : index
    %c24_264 = arith.constant 24 : index
    %370 = vector.load %arg11[%c0_263, %c24_264] : memref<64x72xbf16, #tpu.memory_space<vmem>>, vector<8x8xbf16>
    tpu.vector_store %arg11[%c0_263, %c24_264], %369 {strides = array<i32>} : memref<64x72xbf16, #tpu.memory_space<vmem>>, vector<8x8xbf16>,
    %371 = vector.extract_strided_slice %367 {offsets = [1, 0, 0], sizes = [1, 8, 8], strides = [1, 1, 1]} : vector<8x8x8xbf16> to vector<1x8x8xbf16>
    %372 = vector.shape_cast %371 : vector<1x8x8xbf16> to vector<8x8xbf16>
    %c8_265 = arith.constant 8 : index
    %c24_266 = arith.constant 24 : index
    %373 = vector.load %arg11[%c8_265, %c24_266] : memref<64x72xbf16, #tpu.memory_space<vmem>>, vector<8x8xbf16>
    tpu.vector_store %arg11[%c8_265, %c24_266], %372 {strides = array<i32>} : memref<64x72xbf16, #tpu.memory_space<vmem>>, vector<8x8xbf16>,
    %374 = vector.extract_strided_slice %367 {offsets = [2, 0, 0], sizes = [1, 8, 8], strides = [1, 1, 1]} : vector<8x8x8xbf16> to vector<1x8x8xbf16>
    %375 = vector.shape_cast %374 : vector<1x8x8xbf16> to vector<8x8xbf16>
    %c16_267 = arith.constant 16 : index
    %c24_268 = arith.constant 24 : index
    %376 = vector.load %arg11[%c16_267, %c24_268] : memref<64x72xbf16, #tpu.memory_space<vmem>>, vector<8x8xbf16>
    tpu.vector_store %arg11[%c16_267, %c24_268], %375 {strides = array<i32>} : memref<64x72xbf16, #tpu.memory_space<vmem>>, vector<8x8xbf16>,
    %377 = vector.extract_strided_slice %367 {offsets = [3, 0, 0], sizes = [1, 8, 8], strides = [1, 1, 1]} : vector<8x8x8xbf16> to vector<1x8x8xbf16>
    %378 = vector.shape_cast %377 : vector<1x8x8xbf16> to vector<8x8xbf16>
    %c24_269 = arith.constant 24 : index
    %c24_270 = arith.constant 24 : index
    %379 = vector.load %arg11[%c24_269, %c24_270] : memref<64x72xbf16, #tpu.memory_space<vmem>>, vector<8x8xbf16>
    tpu.vector_store %arg11[%c24_269, %c24_270], %378 {strides = array<i32>} : memref<64x72xbf16, #tpu.memory_space<vmem>>, vector<8x8xbf16>,
    %380 = vector.extract_strided_slice %367 {offsets = [4, 0, 0], sizes = [1, 8, 8], strides = [1, 1, 1]} : vector<8x8x8xbf16> to vector<1x8x8xbf16>
    %381 = vector.shape_cast %380 : vector<1x8x8xbf16> to vector<8x8xbf16>
    %c32_271 = arith.constant 32 : index
    %c24_272 = arith.constant 24 : index
    %382 = vector.load %arg11[%c32_271, %c24_272] : memref<64x72xbf16, #tpu.memory_space<vmem>>, vector<8x8xbf16>
    tpu.vector_store %arg11[%c32_271, %c24_272], %381 {strides = array<i32>} : memref<64x72xbf16, #tpu.memory_space<vmem>>, vector<8x8xbf16>,
    %383 = vector.extract_strided_slice %367 {offsets = [5, 0, 0], sizes = [1, 8, 8], strides = [1, 1, 1]} : vector<8x8x8xbf16> to vector<1x8x8xbf16>
    %384 = vector.shape_cast %383 : vector<1x8x8xbf16> to vector<8x8xbf16>
    %c40_273 = arith.constant 40 : index
    %c24_274 = arith.constant 24 : index
    %385 = vector.load %arg11[%c40_273, %c24_274] : memref<64x72xbf16, #tpu.memory_space<vmem>>, vector<8x8xbf16>
    tpu.vector_store %arg11[%c40_273, %c24_274], %384 {strides = array<i32>} : memref<64x72xbf16, #tpu.memory_space<vmem>>, vector<8x8xbf16>,
    %386 = vector.extract_strided_slice %367 {offsets = [6, 0, 0], sizes = [1, 8, 8], strides = [1, 1, 1]} : vector<8x8x8xbf16> to vector<1x8x8xbf16>
    %387 = vector.shape_cast %386 : vector<1x8x8xbf16> to vector<8x8xbf16>
    %c48_275 = arith.constant 48 : index
    %c24_276 = arith.constant 24 : index
    %388 = vector.load %arg11[%c48_275, %c24_276] : memref<64x72xbf16, #tpu.memory_space<vmem>>, vector<8x8xbf16>
    tpu.vector_store %arg11[%c48_275, %c24_276], %387 {strides = array<i32>} : memref<64x72xbf16, #tpu.memory_space<vmem>>, vector<8x8xbf16>,
    %389 = vector.extract_strided_slice %367 {offsets = [7, 0, 0], sizes = [1, 8, 8], strides = [1, 1, 1]} : vector<8x8x8xbf16> to vector<1x8x8xbf16>
    %390 = vector.shape_cast %389 : vector<1x8x8xbf16> to vector<8x8xbf16>
    %c56_277 = arith.constant 56 : index
    %c24_278 = arith.constant 24 : index
    %391 = vector.load %arg11[%c56_277, %c24_278] : memref<64x72xbf16, #tpu.memory_space<vmem>>, vector<8x8xbf16>
    tpu.vector_store %arg11[%c56_277, %c24_278], %390 {strides = array<i32>} : memref<64x72xbf16, #tpu.memory_space<vmem>>, vector<8x8xbf16>,
    %c1_279 = arith.constant 1 : index
    %c1_280 = arith.constant 1 : index
    %c0_281 = arith.constant 0 : index
    %392 = vector.load %arg10[%c1_279, %c1_280, %c0_281] : memref<10x10x8xbf16, #tpu.memory_space<vmem>>, vector<8x8x8xbf16>
    %393 = vector.extract_strided_slice %392 {offsets = [0, 0, 0], sizes = [1, 8, 8], strides = [1, 1, 1]} : vector<8x8x8xbf16> to vector<1x8x8xbf16>
    %394 = vector.shape_cast %393 : vector<1x8x8xbf16> to vector<8x8xbf16>
    %c0_282 = arith.constant 0 : index
    %c32_283 = arith.constant 32 : index
    %395 = vector.load %arg11[%c0_282, %c32_283] : memref<64x72xbf16, #tpu.memory_space<vmem>>, vector<8x8xbf16>
    tpu.vector_store %arg11[%c0_282, %c32_283], %394 {strides = array<i32>} : memref<64x72xbf16, #tpu.memory_space<vmem>>, vector<8x8xbf16>,
    %396 = vector.extract_strided_slice %392 {offsets = [1, 0, 0], sizes = [1, 8, 8], strides = [1, 1, 1]} : vector<8x8x8xbf16> to vector<1x8x8xbf16>
    %397 = vector.shape_cast %396 : vector<1x8x8xbf16> to vector<8x8xbf16>
    %c8_284 = arith.constant 8 : index
    %c32_285 = arith.constant 32 : index
    %398 = vector.load %arg11[%c8_284, %c32_285] : memref<64x72xbf16, #tpu.memory_space<vmem>>, vector<8x8xbf16>
    tpu.vector_store %arg11[%c8_284, %c32_285], %397 {strides = array<i32>} : memref<64x72xbf16, #tpu.memory_space<vmem>>, vector<8x8xbf16>,
    %399 = vector.extract_strided_slice %392 {offsets = [2, 0, 0], sizes = [1, 8, 8], strides = [1, 1, 1]} : vector<8x8x8xbf16> to vector<1x8x8xbf16>
    %400 = vector.shape_cast %399 : vector<1x8x8xbf16> to vector<8x8xbf16>
    %c16_286 = arith.constant 16 : index
    %c32_287 = arith.constant 32 : index
    %401 = vector.load %arg11[%c16_286, %c32_287] : memref<64x72xbf16, #tpu.memory_space<vmem>>, vector<8x8xbf16>
    tpu.vector_store %arg11[%c16_286, %c32_287], %400 {strides = array<i32>} : memref<64x72xbf16, #tpu.memory_space<vmem>>, vector<8x8xbf16>,
    %402 = vector.extract_strided_slice %392 {offsets = [3, 0, 0], sizes = [1, 8, 8], strides = [1, 1, 1]} : vector<8x8x8xbf16> to vector<1x8x8xbf16>
    %403 = vector.shape_cast %402 : vector<1x8x8xbf16> to vector<8x8xbf16>
    %c24_288 = arith.constant 24 : index
    %c32_289 = arith.constant 32 : index
    %404 = vector.load %arg11[%c24_288, %c32_289] : memref<64x72xbf16, #tpu.memory_space<vmem>>, vector<8x8xbf16>
    tpu.vector_store %arg11[%c24_288, %c32_289], %403 {strides = array<i32>} : memref<64x72xbf16, #tpu.memory_space<vmem>>, vector<8x8xbf16>,
    %405 = vector.extract_strided_slice %392 {offsets = [4, 0, 0], sizes = [1, 8, 8], strides = [1, 1, 1]} : vector<8x8x8xbf16> to vector<1x8x8xbf16>
    %406 = vector.shape_cast %405 : vector<1x8x8xbf16> to vector<8x8xbf16>
    %c32_290 = arith.constant 32 : index
    %c32_291 = arith.constant 32 : index
    %407 = vector.load %arg11[%c32_290, %c32_291] : memref<64x72xbf16, #tpu.memory_space<vmem>>, vector<8x8xbf16>
    tpu.vector_store %arg11[%c32_290, %c32_291], %406 {strides = array<i32>} : memref<64x72xbf16, #tpu.memory_space<vmem>>, vector<8x8xbf16>,
    %408 = vector.extract_strided_slice %392 {offsets = [5, 0, 0], sizes = [1, 8, 8], strides = [1, 1, 1]} : vector<8x8x8xbf16> to vector<1x8x8xbf16>
    %409 = vector.shape_cast %408 : vector<1x8x8xbf16> to vector<8x8xbf16>
    %c40_292 = arith.constant 40 : index
    %c32_293 = arith.constant 32 : index
    %410 = vector.load %arg11[%c40_292, %c32_293] : memref<64x72xbf16, #tpu.memory_space<vmem>>, vector<8x8xbf16>
    tpu.vector_store %arg11[%c40_292, %c32_293], %409 {strides = array<i32>} : memref<64x72xbf16, #tpu.memory_space<vmem>>, vector<8x8xbf16>,
    %411 = vector.extract_strided_slice %392 {offsets = [6, 0, 0], sizes = [1, 8, 8], strides = [1, 1, 1]} : vector<8x8x8xbf16> to vector<1x8x8xbf16>
    %412 = vector.shape_cast %411 : vector<1x8x8xbf16> to vector<8x8xbf16>
    %c48_294 = arith.constant 48 : index
    %c32_295 = arith.constant 32 : index
    %413 = vector.load %arg11[%c48_294, %c32_295] : memref<64x72xbf16, #tpu.memory_space<vmem>>, vector<8x8xbf16>
    tpu.vector_store %arg11[%c48_294, %c32_295], %412 {strides = array<i32>} : memref<64x72xbf16, #tpu.memory_space<vmem>>, vector<8x8xbf16>,
    %414 = vector.extract_strided_slice %392 {offsets = [7, 0, 0], sizes = [1, 8, 8], strides = [1, 1, 1]} : vector<8x8x8xbf16> to vector<1x8x8xbf16>
    %415 = vector.shape_cast %414 : vector<1x8x8xbf16> to vector<8x8xbf16>
    %c56_296 = arith.constant 56 : index
    %c32_297 = arith.constant 32 : index
    %416 = vector.load %arg11[%c56_296, %c32_297] : memref<64x72xbf16, #tpu.memory_space<vmem>>, vector<8x8xbf16>
    tpu.vector_store %arg11[%c56_296, %c32_297], %415 {strides = array<i32>} : memref<64x72xbf16, #tpu.memory_space<vmem>>, vector<8x8xbf16>,
    %c1_298 = arith.constant 1 : index
    %c2_299 = arith.constant 2 : index
    %c0_300 = arith.constant 0 : index
    %417 = vector.load %arg10[%c1_298, %c2_299, %c0_300] : memref<10x10x8xbf16, #tpu.memory_space<vmem>>, vector<8x8x8xbf16>
    %418 = vector.extract_strided_slice %417 {offsets = [0, 0, 0], sizes = [1, 8, 8], strides = [1, 1, 1]} : vector<8x8x8xbf16> to vector<1x8x8xbf16>
    %419 = vector.shape_cast %418 : vector<1x8x8xbf16> to vector<8x8xbf16>
    %c0_301 = arith.constant 0 : index
    %c40_302 = arith.constant 40 : index
    %420 = vector.load %arg11[%c0_301, %c40_302] : memref<64x72xbf16, #tpu.memory_space<vmem>>, vector<8x8xbf16>
    tpu.vector_store %arg11[%c0_301, %c40_302], %419 {strides = array<i32>} : memref<64x72xbf16, #tpu.memory_space<vmem>>, vector<8x8xbf16>,
    %421 = vector.extract_strided_slice %417 {offsets = [1, 0, 0], sizes = [1, 8, 8], strides = [1, 1, 1]} : vector<8x8x8xbf16> to vector<1x8x8xbf16>
    %422 = vector.shape_cast %421 : vector<1x8x8xbf16> to vector<8x8xbf16>
    %c8_303 = arith.constant 8 : index
    %c40_304 = arith.constant 40 : index
    %423 = vector.load %arg11[%c8_303, %c40_304] : memref<64x72xbf16, #tpu.memory_space<vmem>>, vector<8x8xbf16>
    tpu.vector_store %arg11[%c8_303, %c40_304], %422 {strides = array<i32>} : memref<64x72xbf16, #tpu.memory_space<vmem>>, vector<8x8xbf16>,
    %424 = vector.extract_strided_slice %417 {offsets = [2, 0, 0], sizes = [1, 8, 8], strides = [1, 1, 1]} : vector<8x8x8xbf16> to vector<1x8x8xbf16>
    %425 = vector.shape_cast %424 : vector<1x8x8xbf16> to vector<8x8xbf16>
    %c16_305 = arith.constant 16 : index
    %c40_306 = arith.constant 40 : index
    %426 = vector.load %arg11[%c16_305, %c40_306] : memref<64x72xbf16, #tpu.memory_space<vmem>>, vector<8x8xbf16>
    tpu.vector_store %arg11[%c16_305, %c40_306], %425 {strides = array<i32>} : memref<64x72xbf16, #tpu.memory_space<vmem>>, vector<8x8xbf16>,
    %427 = vector.extract_strided_slice %417 {offsets = [3, 0, 0], sizes = [1, 8, 8], strides = [1, 1, 1]} : vector<8x8x8xbf16> to vector<1x8x8xbf16>
    %428 = vector.shape_cast %427 : vector<1x8x8xbf16> to vector<8x8xbf16>
    %c24_307 = arith.constant 24 : index
    %c40_308 = arith.constant 40 : index
    %429 = vector.load %arg11[%c24_307, %c40_308] : memref<64x72xbf16, #tpu.memory_space<vmem>>, vector<8x8xbf16>
    tpu.vector_store %arg11[%c24_307, %c40_308], %428 {strides = array<i32>} : memref<64x72xbf16, #tpu.memory_space<vmem>>, vector<8x8xbf16>,
    %430 = vector.extract_strided_slice %417 {offsets = [4, 0, 0], sizes = [1, 8, 8], strides = [1, 1, 1]} : vector<8x8x8xbf16> to vector<1x8x8xbf16>
    %431 = vector.shape_cast %430 : vector<1x8x8xbf16> to vector<8x8xbf16>
    %c32_309 = arith.constant 32 : index
    %c40_310 = arith.constant 40 : index
    %432 = vector.load %arg11[%c32_309, %c40_310] : memref<64x72xbf16, #tpu.memory_space<vmem>>, vector<8x8xbf16>
    tpu.vector_store %arg11[%c32_309, %c40_310], %431 {strides = array<i32>} : memref<64x72xbf16, #tpu.memory_space<vmem>>, vector<8x8xbf16>,
    %433 = vector.extract_strided_slice %417 {offsets = [5, 0, 0], sizes = [1, 8, 8], strides = [1, 1, 1]} : vector<8x8x8xbf16> to vector<1x8x8xbf16>
    %434 = vector.shape_cast %433 : vector<1x8x8xbf16> to vector<8x8xbf16>
    %c40_311 = arith.constant 40 : index
    %c40_312 = arith.constant 40 : index
    %435 = vector.load %arg11[%c40_311, %c40_312] : memref<64x72xbf16, #tpu.memory_space<vmem>>, vector<8x8xbf16>
    tpu.vector_store %arg11[%c40_311, %c40_312], %434 {strides = array<i32>} : memref<64x72xbf16, #tpu.memory_space<vmem>>, vector<8x8xbf16>,
    %436 = vector.extract_strided_slice %417 {offsets = [6, 0, 0], sizes = [1, 8, 8], strides = [1, 1, 1]} : vector<8x8x8xbf16> to vector<1x8x8xbf16>
    %437 = vector.shape_cast %436 : vector<1x8x8xbf16> to vector<8x8xbf16>
    %c48_313 = arith.constant 48 : index
    %c40_314 = arith.constant 40 : index
    %438 = vector.load %arg11[%c48_313, %c40_314] : memref<64x72xbf16, #tpu.memory_space<vmem>>, vector<8x8xbf16>
    tpu.vector_store %arg11[%c48_313, %c40_314], %437 {strides = array<i32>} : memref<64x72xbf16, #tpu.memory_space<vmem>>, vector<8x8xbf16>,
    %439 = vector.extract_strided_slice %417 {offsets = [7, 0, 0], sizes = [1, 8, 8], strides = [1, 1, 1]} : vector<8x8x8xbf16> to vector<1x8x8xbf16>
    %440 = vector.shape_cast %439 : vector<1x8x8xbf16> to vector<8x8xbf16>
    %c56_315 = arith.constant 56 : index
    %c40_316 = arith.constant 40 : index
    %441 = vector.load %arg11[%c56_315, %c40_316] : memref<64x72xbf16, #tpu.memory_space<vmem>>, vector<8x8xbf16>
    tpu.vector_store %arg11[%c56_315, %c40_316], %440 {strides = array<i32>} : memref<64x72xbf16, #tpu.memory_space<vmem>>, vector<8x8xbf16>,
    %c2_317 = arith.constant 2 : index
    %c0_318 = arith.constant 0 : index
    %c0_319 = arith.constant 0 : index
    %442 = vector.load %arg10[%c2_317, %c0_318, %c0_319] : memref<10x10x8xbf16, #tpu.memory_space<vmem>>, vector<8x8x8xbf16>
    %443 = vector.extract_strided_slice %442 {offsets = [0, 0, 0], sizes = [1, 8, 8], strides = [1, 1, 1]} : vector<8x8x8xbf16> to vector<1x8x8xbf16>
    %444 = vector.shape_cast %443 : vector<1x8x8xbf16> to vector<8x8xbf16>
    %c0_320 = arith.constant 0 : index
    %c48_321 = arith.constant 48 : index
    %445 = vector.load %arg11[%c0_320, %c48_321] : memref<64x72xbf16, #tpu.memory_space<vmem>>, vector<8x8xbf16>
    tpu.vector_store %arg11[%c0_320, %c48_321], %444 {strides = array<i32>} : memref<64x72xbf16, #tpu.memory_space<vmem>>, vector<8x8xbf16>,
    %446 = vector.extract_strided_slice %442 {offsets = [1, 0, 0], sizes = [1, 8, 8], strides = [1, 1, 1]} : vector<8x8x8xbf16> to vector<1x8x8xbf16>
    %447 = vector.shape_cast %446 : vector<1x8x8xbf16> to vector<8x8xbf16>
    %c8_322 = arith.constant 8 : index
    %c48_323 = arith.constant 48 : index
    %448 = vector.load %arg11[%c8_322, %c48_323] : memref<64x72xbf16, #tpu.memory_space<vmem>>, vector<8x8xbf16>
    tpu.vector_store %arg11[%c8_322, %c48_323], %447 {strides = array<i32>} : memref<64x72xbf16, #tpu.memory_space<vmem>>, vector<8x8xbf16>,
    %449 = vector.extract_strided_slice %442 {offsets = [2, 0, 0], sizes = [1, 8, 8], strides = [1, 1, 1]} : vector<8x8x8xbf16> to vector<1x8x8xbf16>
    %450 = vector.shape_cast %449 : vector<1x8x8xbf16> to vector<8x8xbf16>
    %c16_324 = arith.constant 16 : index
    %c48_325 = arith.constant 48 : index
    %451 = vector.load %arg11[%c16_324, %c48_325] : memref<64x72xbf16, #tpu.memory_space<vmem>>, vector<8x8xbf16>
    tpu.vector_store %arg11[%c16_324, %c48_325], %450 {strides = array<i32>} : memref<64x72xbf16, #tpu.memory_space<vmem>>, vector<8x8xbf16>,
    %452 = vector.extract_strided_slice %442 {offsets = [3, 0, 0], sizes = [1, 8, 8], strides = [1, 1, 1]} : vector<8x8x8xbf16> to vector<1x8x8xbf16>
    %453 = vector.shape_cast %452 : vector<1x8x8xbf16> to vector<8x8xbf16>
    %c24_326 = arith.constant 24 : index
    %c48_327 = arith.constant 48 : index
    %454 = vector.load %arg11[%c24_326, %c48_327] : memref<64x72xbf16, #tpu.memory_space<vmem>>, vector<8x8xbf16>
    tpu.vector_store %arg11[%c24_326, %c48_327], %453 {strides = array<i32>} : memref<64x72xbf16, #tpu.memory_space<vmem>>, vector<8x8xbf16>,
    %455 = vector.extract_strided_slice %442 {offsets = [4, 0, 0], sizes = [1, 8, 8], strides = [1, 1, 1]} : vector<8x8x8xbf16> to vector<1x8x8xbf16>
    %456 = vector.shape_cast %455 : vector<1x8x8xbf16> to vector<8x8xbf16>
    %c32_328 = arith.constant 32 : index
    %c48_329 = arith.constant 48 : index
    %457 = vector.load %arg11[%c32_328, %c48_329] : memref<64x72xbf16, #tpu.memory_space<vmem>>, vector<8x8xbf16>
    tpu.vector_store %arg11[%c32_328, %c48_329], %456 {strides = array<i32>} : memref<64x72xbf16, #tpu.memory_space<vmem>>, vector<8x8xbf16>,
    %458 = vector.extract_strided_slice %442 {offsets = [5, 0, 0], sizes = [1, 8, 8], strides = [1, 1, 1]} : vector<8x8x8xbf16> to vector<1x8x8xbf16>
    %459 = vector.shape_cast %458 : vector<1x8x8xbf16> to vector<8x8xbf16>
    %c40_330 = arith.constant 40 : index
    %c48_331 = arith.constant 48 : index
    %460 = vector.load %arg11[%c40_330, %c48_331] : memref<64x72xbf16, #tpu.memory_space<vmem>>, vector<8x8xbf16>
    tpu.vector_store %arg11[%c40_330, %c48_331], %459 {strides = array<i32>} : memref<64x72xbf16, #tpu.memory_space<vmem>>, vector<8x8xbf16>,
    %461 = vector.extract_strided_slice %442 {offsets = [6, 0, 0], sizes = [1, 8, 8], strides = [1, 1, 1]} : vector<8x8x8xbf16> to vector<1x8x8xbf16>
    %462 = vector.shape_cast %461 : vector<1x8x8xbf16> to vector<8x8xbf16>
    %c48_332 = arith.constant 48 : index
    %c48_333 = arith.constant 48 : index
    %463 = vector.load %arg11[%c48_332, %c48_333] : memref<64x72xbf16, #tpu.memory_space<vmem>>, vector<8x8xbf16>
    tpu.vector_store %arg11[%c48_332, %c48_333], %462 {strides = array<i32>} : memref<64x72xbf16, #tpu.memory_space<vmem>>, vector<8x8xbf16>,
    %464 = vector.extract_strided_slice %442 {offsets = [7, 0, 0], sizes = [1, 8, 8], strides = [1, 1, 1]} : vector<8x8x8xbf16> to vector<1x8x8xbf16>
    %465 = vector.shape_cast %464 : vector<1x8x8xbf16> to vector<8x8xbf16>
    %c56_334 = arith.constant 56 : index
    %c48_335 = arith.constant 48 : index
    %466 = vector.load %arg11[%c56_334, %c48_335] : memref<64x72xbf16, #tpu.memory_space<vmem>>, vector<8x8xbf16>
    tpu.vector_store %arg11[%c56_334, %c48_335], %465 {strides = array<i32>} : memref<64x72xbf16, #tpu.memory_space<vmem>>, vector<8x8xbf16>,
    %c2_336 = arith.constant 2 : index
    %c1_337 = arith.constant 1 : index
    %c0_338 = arith.constant 0 : index
    %467 = vector.load %arg10[%c2_336, %c1_337, %c0_338] : memref<10x10x8xbf16, #tpu.memory_space<vmem>>, vector<8x8x8xbf16>
    %468 = vector.extract_strided_slice %467 {offsets = [0, 0, 0], sizes = [1, 8, 8], strides = [1, 1, 1]} : vector<8x8x8xbf16> to vector<1x8x8xbf16>
    %469 = vector.shape_cast %468 : vector<1x8x8xbf16> to vector<8x8xbf16>
    %c0_339 = arith.constant 0 : index
    %c56_340 = arith.constant 56 : index
    %470 = vector.load %arg11[%c0_339, %c56_340] : memref<64x72xbf16, #tpu.memory_space<vmem>>, vector<8x8xbf16>
    tpu.vector_store %arg11[%c0_339, %c56_340], %469 {strides = array<i32>} : memref<64x72xbf16, #tpu.memory_space<vmem>>, vector<8x8xbf16>,
    %471 = vector.extract_strided_slice %467 {offsets = [1, 0, 0], sizes = [1, 8, 8], strides = [1, 1, 1]} : vector<8x8x8xbf16> to vector<1x8x8xbf16>
    %472 = vector.shape_cast %471 : vector<1x8x8xbf16> to vector<8x8xbf16>
    %c8_341 = arith.constant 8 : index
    %c56_342 = arith.constant 56 : index
    %473 = vector.load %arg11[%c8_341, %c56_342] : memref<64x72xbf16, #tpu.memory_space<vmem>>, vector<8x8xbf16>
    tpu.vector_store %arg11[%c8_341, %c56_342], %472 {strides = array<i32>} : memref<64x72xbf16, #tpu.memory_space<vmem>>, vector<8x8xbf16>,
    %474 = vector.extract_strided_slice %467 {offsets = [2, 0, 0], sizes = [1, 8, 8], strides = [1, 1, 1]} : vector<8x8x8xbf16> to vector<1x8x8xbf16>
    %475 = vector.shape_cast %474 : vector<1x8x8xbf16> to vector<8x8xbf16>
    %c16_343 = arith.constant 16 : index
    %c56_344 = arith.constant 56 : index
    %476 = vector.load %arg11[%c16_343, %c56_344] : memref<64x72xbf16, #tpu.memory_space<vmem>>, vector<8x8xbf16>
    tpu.vector_store %arg11[%c16_343, %c56_344], %475 {strides = array<i32>} : memref<64x72xbf16, #tpu.memory_space<vmem>>, vector<8x8xbf16>,
    %477 = vector.extract_strided_slice %467 {offsets = [3, 0, 0], sizes = [1, 8, 8], strides = [1, 1, 1]} : vector<8x8x8xbf16> to vector<1x8x8xbf16>
    %478 = vector.shape_cast %477 : vector<1x8x8xbf16> to vector<8x8xbf16>
    %c24_345 = arith.constant 24 : index
    %c56_346 = arith.constant 56 : index
    %479 = vector.load %arg11[%c24_345, %c56_346] : memref<64x72xbf16, #tpu.memory_space<vmem>>, vector<8x8xbf16>
    tpu.vector_store %arg11[%c24_345, %c56_346], %478 {strides = array<i32>} : memref<64x72xbf16, #tpu.memory_space<vmem>>, vector<8x8xbf16>,
    %480 = vector.extract_strided_slice %467 {offsets = [4, 0, 0], sizes = [1, 8, 8], strides = [1, 1, 1]} : vector<8x8x8xbf16> to vector<1x8x8xbf16>
    %481 = vector.shape_cast %480 : vector<1x8x8xbf16> to vector<8x8xbf16>
    %c32_347 = arith.constant 32 : index
    %c56_348 = arith.constant 56 : index
    %482 = vector.load %arg11[%c32_347, %c56_348] : memref<64x72xbf16, #tpu.memory_space<vmem>>, vector<8x8xbf16>
    tpu.vector_store %arg11[%c32_347, %c56_348], %481 {strides = array<i32>} : memref<64x72xbf16, #tpu.memory_space<vmem>>, vector<8x8xbf16>,
    %483 = vector.extract_strided_slice %467 {offsets = [5, 0, 0], sizes = [1, 8, 8], strides = [1, 1, 1]} : vector<8x8x8xbf16> to vector<1x8x8xbf16>
    %484 = vector.shape_cast %483 : vector<1x8x8xbf16> to vector<8x8xbf16>
    %c40_349 = arith.constant 40 : index
    %c56_350 = arith.constant 56 : index
    %485 = vector.load %arg11[%c40_349, %c56_350] : memref<64x72xbf16, #tpu.memory_space<vmem>>, vector<8x8xbf16>
    tpu.vector_store %arg11[%c40_349, %c56_350], %484 {strides = array<i32>} : memref<64x72xbf16, #tpu.memory_space<vmem>>, vector<8x8xbf16>,
    %486 = vector.extract_strided_slice %467 {offsets = [6, 0, 0], sizes = [1, 8, 8], strides = [1, 1, 1]} : vector<8x8x8xbf16> to vector<1x8x8xbf16>
    %487 = vector.shape_cast %486 : vector<1x8x8xbf16> to vector<8x8xbf16>
    %c48_351 = arith.constant 48 : index
    %c56_352 = arith.constant 56 : index
    %488 = vector.load %arg11[%c48_351, %c56_352] : memref<64x72xbf16, #tpu.memory_space<vmem>>, vector<8x8xbf16>
    tpu.vector_store %arg11[%c48_351, %c56_352], %487 {strides = array<i32>} : memref<64x72xbf16, #tpu.memory_space<vmem>>, vector<8x8xbf16>,
    %489 = vector.extract_strided_slice %467 {offsets = [7, 0, 0], sizes = [1, 8, 8], strides = [1, 1, 1]} : vector<8x8x8xbf16> to vector<1x8x8xbf16>
    %490 = vector.shape_cast %489 : vector<1x8x8xbf16> to vector<8x8xbf16>
    %c56_353 = arith.constant 56 : index
    %c56_354 = arith.constant 56 : index
    %491 = vector.load %arg11[%c56_353, %c56_354] : memref<64x72xbf16, #tpu.memory_space<vmem>>, vector<8x8xbf16>
    tpu.vector_store %arg11[%c56_353, %c56_354], %490 {strides = array<i32>} : memref<64x72xbf16, #tpu.memory_space<vmem>>, vector<8x8xbf16>,
    %c2_355 = arith.constant 2 : index
    %c2_356 = arith.constant 2 : index
    %c0_357 = arith.constant 0 : index
    %492 = vector.load %arg10[%c2_355, %c2_356, %c0_357] : memref<10x10x8xbf16, #tpu.memory_space<vmem>>, vector<8x8x8xbf16>
    %493 = vector.extract_strided_slice %492 {offsets = [0, 0, 0], sizes = [1, 8, 8], strides = [1, 1, 1]} : vector<8x8x8xbf16> to vector<1x8x8xbf16>
    %494 = vector.shape_cast %493 : vector<1x8x8xbf16> to vector<8x8xbf16>
    %c0_358 = arith.constant 0 : index
    %c64 = arith.constant 64 : index
    %495 = vector.load %arg11[%c0_358, %c64] : memref<64x72xbf16, #tpu.memory_space<vmem>>, vector<8x8xbf16>
    tpu.vector_store %arg11[%c0_358, %c64], %494 {strides = array<i32>} : memref<64x72xbf16, #tpu.memory_space<vmem>>, vector<8x8xbf16>,
    %496 = vector.extract_strided_slice %492 {offsets = [1, 0, 0], sizes = [1, 8, 8], strides = [1, 1, 1]} : vector<8x8x8xbf16> to vector<1x8x8xbf16>
    %497 = vector.shape_cast %496 : vector<1x8x8xbf16> to vector<8x8xbf16>
    %c8_359 = arith.constant 8 : index
    %c64_360 = arith.constant 64 : index
    %498 = vector.load %arg11[%c8_359, %c64_360] : memref<64x72xbf16, #tpu.memory_space<vmem>>, vector<8x8xbf16>
    tpu.vector_store %arg11[%c8_359, %c64_360], %497 {strides = array<i32>} : memref<64x72xbf16, #tpu.memory_space<vmem>>, vector<8x8xbf16>,
    %499 = vector.extract_strided_slice %492 {offsets = [2, 0, 0], sizes = [1, 8, 8], strides = [1, 1, 1]} : vector<8x8x8xbf16> to vector<1x8x8xbf16>
    %500 = vector.shape_cast %499 : vector<1x8x8xbf16> to vector<8x8xbf16>
    %c16_361 = arith.constant 16 : index
    %c64_362 = arith.constant 64 : index
    %501 = vector.load %arg11[%c16_361, %c64_362] : memref<64x72xbf16, #tpu.memory_space<vmem>>, vector<8x8xbf16>
    tpu.vector_store %arg11[%c16_361, %c64_362], %500 {strides = array<i32>} : memref<64x72xbf16, #tpu.memory_space<vmem>>, vector<8x8xbf16>,
    %502 = vector.extract_strided_slice %492 {offsets = [3, 0, 0], sizes = [1, 8, 8], strides = [1, 1, 1]} : vector<8x8x8xbf16> to vector<1x8x8xbf16>
    %503 = vector.shape_cast %502 : vector<1x8x8xbf16> to vector<8x8xbf16>
    %c24_363 = arith.constant 24 : index
    %c64_364 = arith.constant 64 : index
    %504 = vector.load %arg11[%c24_363, %c64_364] : memref<64x72xbf16, #tpu.memory_space<vmem>>, vector<8x8xbf16>
    tpu.vector_store %arg11[%c24_363, %c64_364], %503 {strides = array<i32>} : memref<64x72xbf16, #tpu.memory_space<vmem>>, vector<8x8xbf16>,
    %505 = vector.extract_strided_slice %492 {offsets = [4, 0, 0], sizes = [1, 8, 8], strides = [1, 1, 1]} : vector<8x8x8xbf16> to vector<1x8x8xbf16>
    %506 = vector.shape_cast %505 : vector<1x8x8xbf16> to vector<8x8xbf16>
    %c32_365 = arith.constant 32 : index
    %c64_366 = arith.constant 64 : index
    %507 = vector.load %arg11[%c32_365, %c64_366] : memref<64x72xbf16, #tpu.memory_space<vmem>>, vector<8x8xbf16>
    tpu.vector_store %arg11[%c32_365, %c64_366], %506 {strides = array<i32>} : memref<64x72xbf16, #tpu.memory_space<vmem>>, vector<8x8xbf16>,
    %508 = vector.extract_strided_slice %492 {offsets = [5, 0, 0], sizes = [1, 8, 8], strides = [1, 1, 1]} : vector<8x8x8xbf16> to vector<1x8x8xbf16>
    %509 = vector.shape_cast %508 : vector<1x8x8xbf16> to vector<8x8xbf16>
    %c40_367 = arith.constant 40 : index
    %c64_368 = arith.constant 64 : index
    %510 = vector.load %arg11[%c40_367, %c64_368] : memref<64x72xbf16, #tpu.memory_space<vmem>>, vector<8x8xbf16>
    tpu.vector_store %arg11[%c40_367, %c64_368], %509 {strides = array<i32>} : memref<64x72xbf16, #tpu.memory_space<vmem>>, vector<8x8xbf16>,
    %511 = vector.extract_strided_slice %492 {offsets = [6, 0, 0], sizes = [1, 8, 8], strides = [1, 1, 1]} : vector<8x8x8xbf16> to vector<1x8x8xbf16>
    %512 = vector.shape_cast %511 : vector<1x8x8xbf16> to vector<8x8xbf16>
    %c48_369 = arith.constant 48 : index
    %c64_370 = arith.constant 64 : index
    %513 = vector.load %arg11[%c48_369, %c64_370] : memref<64x72xbf16, #tpu.memory_space<vmem>>, vector<8x8xbf16>
    tpu.vector_store %arg11[%c48_369, %c64_370], %512 {strides = array<i32>} : memref<64x72xbf16, #tpu.memory_space<vmem>>, vector<8x8xbf16>,
    %514 = vector.extract_strided_slice %492 {offsets = [7, 0, 0], sizes = [1, 8, 8], strides = [1, 1, 1]} : vector<8x8x8xbf16> to vector<1x8x8xbf16>
    %515 = vector.shape_cast %514 : vector<1x8x8xbf16> to vector<8x8xbf16>
    %c56_371 = arith.constant 56 : index
    %c64_372 = arith.constant 64 : index
    %516 = vector.load %arg11[%c56_371, %c64_372] : memref<64x72xbf16, #tpu.memory_space<vmem>>, vector<8x8xbf16>
    tpu.vector_store %arg11[%c56_371, %c64_372], %515 {strides = array<i32>} : memref<64x72xbf16, #tpu.memory_space<vmem>>, vector<8x8xbf16>,
    %c0_373 = arith.constant 0 : index
    %c0_374 = arith.constant 0 : index
    %517 = vector.load %arg11[%c0_373, %c0_374] : memref<64x72xbf16, #tpu.memory_space<vmem>>, vector<64x72xbf16>
    %c0_375 = arith.constant 0 : index
    %c0_376 = arith.constant 0 : index
    %518 = vector.load %arg4[%c0_375, %c0_376] : memref<72x8xbf16, #tpu.memory_space<vmem>>, vector<72x8xbf16>
    %cst_377 = arith.constant dense<0.000000e+00> : vector<64x8xf32>
    %519 = tpu.matmul %517, %518, %cst_377 {dimension_numbers = #tpu.dot_dimension_numbers<[1], [0], [0], [1], [0, 0, 1, 1], [], []>} : vector<64x72xbf16>, vector<72x8xbf16>, vector<64x8xf32> -> vector<64x8xf32>
    %c0_378 = arith.constant 0 : index
    %c0_379 = arith.constant 0 : index
    %520 = vector.load %arg5[%c0_378, %c0_379] : memref<1x8xf32, #tpu.memory_space<vmem>>, vector<1x8xf32>
    %521 = vector.broadcast %520 : vector<1x8xf32> to vector<64x8xf32>
    %522 = arith.addf %519, %521 : vector<64x8xf32>
    %c0_380 = arith.constant 0 : index
    %c16_381 = arith.constant 16 : index
    %523 = vector.load %arg9[%c0_380, %c16_381] : memref<64x36xbf16, #tpu.memory_space<vmem>>, vector<64x4xbf16>
    %c0_382 = arith.constant 0 : index
    %c0_383 = arith.constant 0 : index
    %524 = vector.load %arg6[%c0_382, %c0_383] : memref<4x8xbf16, #tpu.memory_space<vmem>>, vector<4x8xbf16>
    %cst_384 = arith.constant dense<0.000000e+00> : vector<64x8xf32>
    %525 = tpu.matmul %523, %524, %cst_384 {dimension_numbers = #tpu.dot_dimension_numbers<[1], [0], [0], [1], [0, 0, 1, 1], [], []>} : vector<64x4xbf16>, vector<4x8xbf16>, vector<64x8xf32> -> vector<64x8xf32>
    %c0_385 = arith.constant 0 : index
    %c0_386 = arith.constant 0 : index
    %526 = vector.load %arg7[%c0_385, %c0_386] : memref<1x8xf32, #tpu.memory_space<vmem>>, vector<1x8xf32>
    %527 = vector.broadcast %526 : vector<1x8xf32> to vector<64x8xf32>
    %528 = arith.addf %525, %527 : vector<64x8xf32>
    %529 = arith.addf %522, %528 : vector<64x8xf32>
    %cst_387 = arith.constant 0.000000e+00 : f32
    %530 = vector.broadcast %cst_387 : f32 to vector<64x8xf32>
    %531 = arith.maximumf %529, %530 : vector<64x8xf32>
    %532 = arith.truncf %531 : vector<64x8xf32> to vector<64x8xbf16>
    %c0_388 = arith.constant 0 : index
    %c0_389 = arith.constant 0 : index
    %c0_390 = arith.constant 0 : index
    %533 = vector.load %arg8[%c0_388, %c0_389, %c0_390] : memref<1x64x8xbf16, #tpu.memory_space<vmem>>, vector<1x64x8xbf16>
    %534 = vector.shape_cast %533 : vector<1x64x8xbf16> to vector<64x8xbf16>
    %535 = vector.shape_cast %532 : vector<64x8xbf16> to vector<1x64x8xbf16>
    tpu.vector_store %arg8[%c0_388, %c0_389, %c0_390], %535 {strides = array<i32>} : memref<1x64x8xbf16, #tpu.memory_space<vmem>>, vector<1x64x8xbf16>,
    return
  }
  func.func @transform_0(%arg0: i32) -> (i32, i32, i32, i32) {
    %c0_i32 = arith.constant 0 : i32
    %c0_i32_0 = arith.constant 0 : i32
    %c0_i32_1 = arith.constant 0 : i32
    %c0_i32_2 = arith.constant 0 : i32
    return %arg0, %c0_i32, %c0_i32_0, %c0_i32_1 : i32, i32, i32, i32
  }
  func.func @transform_1(%arg0: i32) -> (i32, i32) {
    %c0_i32 = arith.constant 0 : i32
    %c0_i32_0 = arith.constant 0 : i32
    %c0_i32_1 = arith.constant 0 : i32
    return %c0_i32, %c0_i32_0 : i32, i32
  }
  func.func @transform_2(%arg0: i32) -> (i32, i32) {
    %c0_i32 = arith.constant 0 : i32
    %c0_i32_0 = arith.constant 0 : i32
    %c0_i32_1 = arith.constant 0 : i32
    return %c0_i32, %c0_i32_0 : i32, i32
  }
  func.func @transform_3(%arg0: i32) -> (i32, i32) {
    %c0_i32 = arith.constant 0 : i32
    %c0_i32_0 = arith.constant 0 : i32
    %c0_i32_1 = arith.constant 0 : i32
    return %c0_i32, %c0_i32_0 : i32, i32
  }
  func.func @transform_4(%arg0: i32) -> (i32, i32) {
    %c0_i32 = arith.constant 0 : i32
    %c0_i32_0 = arith.constant 0 : i32
    %c0_i32_1 = arith.constant 0 : i32
    return %c0_i32, %c0_i32_0 : i32, i32
  }
  func.func @transform_5(%arg0: i32) -> (i32, i32) {
    %c0_i32 = arith.constant 0 : i32
    %c0_i32_0 = arith.constant 0 : i32
    %c0_i32_1 = arith.constant 0 : i32
    return %c0_i32, %c0_i32_0 : i32, i32
  }
  func.func @transform_6(%arg0: i32) -> (i32, i32) {
    %c0_i32 = arith.constant 0 : i32
    %c0_i32_0 = arith.constant 0 : i32
    %c0_i32_1 = arith.constant 0 : i32
    return %c0_i32, %c0_i32_0 : i32, i32
  }
  func.func @transform_7(%arg0: i32) -> (i32, i32, i32) {
    %c0_i32 = arith.constant 0 : i32
    %c0_i32_0 = arith.constant 0 : i32
    %c0_i32_1 = arith.constant 0 : i32
    return %arg0, %c0_i32, %c0_i32_0 : i32, i32, i32
  }
}

</mosaic_0001>

<bundles_post_ra>
// kernel: baseblock_apply.1
= control target key start
LH: loop header
LB: loop body
LE: loop exit
PB: predicated region body
PF: predicated region fallthrough
CT: control target
= control target key end

     0   :  { %12 = vsyncpa [#allocation6], 0  ;;  %s3777_s0 = inlined_call_operand.vmem [shape: bf16[2,36,9,4], index: 0, kind: input, shape index: {}]   ;;  %s3778_s1 = inlined_call_operand.vmem [shape: bf16[36,8], index: 1, kind: input, shape index: {}]   ;;  %s3779_s2 = inlined_call_operand.vmem [shape: f32[1,8], index: 2, kind: input, shape index: {}]   ;;  %s3780_s3 = inlined_call_operand.vmem [shape: bf16[72,8], index: 3, kind: input, shape index: {}]   ;;  %s3781_s4 = inlined_call_operand.vmem [shape: f32[1,8], index: 4, kind: input, shape index: {}]   ;;  %s3782_s5 = inlined_call_operand.vmem [shape: bf16[4,8], index: 5, kind: input, shape index: {}]   ;;  %s3783_s6 = inlined_call_operand.vmem [shape: f32[1,8], index: 6, kind: input, shape index: {}]   ;;  %s3784_s7 = inlined_call_operand.hbm [shape: bf16[2,64,8], index: 7, kind: output, shape index: {}]  }
   0x1   :  { %14 = vsyncpa [#allocation6 + $0x1], 0  ;;  %s2946_s24 = smov 0   ;;  %s2948_s25 = smov 0  }
   0x2   :  { %s2950_s26 = smov 0   ;;  %s2952_s27 = smov 0  }
   0x3 LB: > { %s2967_s28 = sadd.s32 4294967295, %s2890_s27   ;;  %s2556_s29 = sadd.s32 4294967294, %s2890_s27   ;;  %s2890_s27 = sphi %s2952_s27, %s3800_s27   ;;  %s2886_s26 = sphi %s2950_s26, %s3799_s26   ;;  %s2882_s25 = sphi %s2948_s25, %s3798_s25   ;;  %s2878_s24 = sphi %s2946_s24, %s3797_s24  }
   0x4   : > { %s2971_s30 = sadd.s32 1, %s2890_s27   ;;  %s179_s8 = sadd.s32 1, %s2886_s26 }
   0x5   : > { %s176_s9 = ssub.s32 %s2890_s27, %s2971_s30  ;;  %p189_p0 = scmp.ne.s32.totalorder %s2886_s26, %s2882_s25 }
   0x6   : > { %p177_p1 = scmp.eq.s32.totalorder %s176_s9, 0  ;;  %p190_p2 = scmp.eq.s32.totalorder %s2967_s28, 1 }
   0x7   : > { %p195_p3 = scmp.ne.s32.totalorder %s2882_s25, %s2878_s24  ;;  %p196_p4 = scmp.eq.s32.totalorder %s2556_s29, 1 }
   0x8   : > { %s2982_s10 = scalar_select %p177_p1, %s2886_s26, %s179_s8  }
   0x9   : > { %p2984_p5 = por %p190_p2, %p189_p0  ;;  %p2988_p6 = por %p196_p4, %p195_p3 }
   0xa   : > { %p2559_p7 = scmp.ge.s32.totalorder %s2890_s27, 1  ;;  %p240_p8 = scmp.lt.s32.totalorder %s2890_s27, 3 }
   0xc   : > { %p241_p9 = pnand %p2559_p7, %p240_p8 }
   0xd   : > { %p272_p10 = scmp.lt.s32.totalorder (!%p241_p9), %s2967_s28, 1  ;;  %s2892_s18 = smov (!%p241_p9), 12  }
   0xe   : > { %244 = sbr.rel (%p241_p9) target bundleno = 780 (0x30c), region = 48  ;;  %s2893_s19 = smov (!%p241_p9), 4  }
   0xf   : > { %s2894_s20 = smov (!%p241_p9), 16   ;;  %s2895_s21 = smov (!%p241_p9), 8  }
  0x10   : > { %s2896_s22 = smov (!%p241_p9), 20   ;;  %s2897_s23 = smov (!%p241_p9), 24  }
  0x11   : > { %s2898_s29 = smov (!%p241_p9), 32   ;;  %s2899_s8 = smov (!%p241_p9), 28  }
  0x12   : > { %s2905_s9 = smov (!%p241_p9), 40  }
  0x13   : > { %s273_s13 = scalar_select %p272_p10, %s2967_s28, 1  ;;  %vm361_vm0 = vsmask.f32 3328  ;;  %vm362_vm1 = vsmask.f32 7440  ;;  %vm286_vm3 = vcmask 27648  }
  0x14   : > { %vm3018_vm2 = vmor %vm361_vm0, %vm362_vm1  ;;  %vm308_vm4 = vcmask 60448   ;;  %vm1096_vm5 = vcmask 1041408   ;;  %vm381_vm6 = vcmask 93248   ;;  %vm522_vm7 = vcmask 126048   ;;  %v2262_v26 = vld [vmem:[%s3780_s3 + $0x20] sm:$0xf] }
  0x15   : > { %s2771_s14 = smul.u32 288, %s273_s13  ;;  %vm572_vm8 = vcmask 158848   ;;  %vm642_vm9 = vcmask 191648   ;;  %vm783_vm10 = vcmask 224448   ;;  %vm833_vm11 = vcmask 257248   ;;  %s2903_s13 = smov 56  }
  0x16   : > { %vm903_vm12 = vcmask 290048   ;;  %vm1083_vm13 = vcmask 293888   ;;  %vm1137_vm14 = vcmask 60416   ;;  %vm1139_vm15 = vcmask 57344  }
  0x17   : > { %s2999_s17 = scalar_lea.vmem %s3777_s0, %s2771_s14  ;;  %vm1145_vm0 = vsmask.f32 256  ;;  %s2904_s14 = smov 64  }
  0x18   : > { %v2570_v0 = vld [vmem:[%s2999_s17 + $0x90] sm:$0xf]  ;;  %v2562_v1 = vld [vmem:[%s2999_s17 + $0x48] sm:$0xf]  ;;  %v2579_v2 = vld [vmem:[%s2999_s17 + $0xe0] sm:$0xf] }
  0x19   : > { %519 = vrot.lane.b32.xlu2 %v2570_v0, %s2892_s18  ;;  %305 = vrot.lane.b32.xlu0 %v2562_v1, %s2893_s19  ;;  %v345_v3 = vld [vmem:[%s2999_s17] sm:$0xf]  ;;  %v346_v4 = vld [vmem:[%s2999_s17 + $0x4] sm:$0x1]  ;;  %vm3314_vm1 = vmand %vm1139_vm15, %vm1145_vm0 }
  0x1a   : > { %575 = vrot.lane.b32.xlu1 %v2579_v2, %s2894_s20  ;;  %v2586_v5 = vld [vmem:[%s2999_s17 + $0x90] sm:$0xf]  ;;  %v365_v6 = vshrl.u32 %v345_v3, 16  ;;  %v368_v7 = vshll.u32 %v345_v3, 16  ;;  %v374_v8 = vshll.u32 %v346_v4, 16 }
  0x1b   : > { %v2587_v9 = vld [vmem:[%s2999_s17 + $0x94] sm:$0x1]  ;;  %v626_v10 = vshrl.u32 %v2586_v5, 16  ;;  %v2571_v11 = vld [vmem:[%s2999_s17 + $0x98] sm:$0xf]  ;;  %v629_v12 = vshll.u32 %v2586_v5, 16 }
  0x1c   : > { %v347_v13 = vld [vmem:[%s2999_s17 + $0x8] sm:$0xf]  ;;  %v2563_v14 = vld [vmem:[%s2999_s17 + $0x50] sm:$0xf]  ;;  %v367_v15 = vrot.slane %v365_v6, 4  ;;  %v370_v16 = vrot.slane %v368_v7, 5 }
  0x1d   : > { %v628_v17 = vrot.slane %v626_v10, 4  ;;  %v631_v18 = vrot.slane %v629_v12, 5  ;;  %v635_v19 = vshll.u32 %v2587_v9, 16  ;;  %v348_v20 = vld [vmem:[%s2999_s17 + $0xc] sm:$0x1]  ;;  %v384_v21 = vshrl.u32 %v347_v13, 16 }
  0x1e   : > { %v387_v22 = vshll.u32 %v347_v13, 16  ;;  %v371_v23 = vor.u32 %v370_v16, %v367_v15  ;;  %v376_v24 = vrot.slane %v374_v8, 5  ;;  %v2588_v25 = vld [vmem:[%s2999_s17 + $0x98] sm:$0xf]  ;;  %v393_v32 = vshll.u32 %v348_v20, 16 }
  0x1f   : > { %v632_v27 = vor.u32 %v631_v18, %v628_v17  ;;  %v386_v28 = vrot.slane %v384_v21, 4  ;;  %v645_v30 = vshrl.u32 %v2588_v25, 16  ;;  %v648_v33 = vshll.u32 %v2588_v25, 16  ;;  %v2589_v37 = vld [vmem:[%s2999_s17 + $0x9c] sm:$0x1] }
  0x20   : > { %v389_v29 = vrot.slane %v387_v22, 5  ;;  %v372_v31 = vrot.slane %v371_v23, 4  ;;  %v637_v35 = vrot.slane %v635_v19, 5  ;;  %v2618_v41 = vld [vmem:[%s2999_s17 + $0x8] sm:$0xf]  ;;  %v395_v43 = vrot.slane %v393_v32, 5 }
  0x21   : > { %525 = vrot.lane.b32.xlu2 %v2571_v11, %s2892_s18  ;;  %311 = vrot.lane.b32.xlu0 %v2563_v14, %s2893_s19  ;;  %v633_v34 = vrot.slane %v632_v27, 4  ;;  %v647_v38 = vrot.slane %v645_v30, 4  ;;  %v650_v40 = vrot.slane %v648_v33, 5  ;;  %v654_v44 = vshll.u32 %v2589_v37, 16  ;;  %v2578_v46 = vld [vmem:[%s2999_s17 + $0xd8] sm:$0xf] }
  0x22   : > { %v390_v36 = vor.u32 %v389_v29, %v386_v28  ;;  %v377_v39 = vsel %vm3018_vm2, %v372_v31, %v376_v24  ;;  %v887_v48 = vshrl.u32 %v2618_v41, 16  ;;  %v890_v49 = vshll.u32 %v2618_v41, 16  ;;  %v2619_v53 = vld [vmem:[%s2999_s17 + $0xc] sm:$0x1]  ;;  %v2620_v56 = vld [vmem:[%s2999_s17 + $0x10] sm:$0xf] }
  0x23   : > { %378 = vrot.lane.b32.xlu1 %v377_v39, %s2895_s21  ;;  %v638_v45 = vsel %vm3018_vm2, %v633_v34, %v637_v35  ;;  %v651_v47 = vor.u32 %v650_v40, %v647_v38  ;;  %v656_v52 = vrot.slane %v654_v44, 5  ;;  %v896_v57 = vshll.u32 %v2619_v53, 16  ;;  %v2603_v58 = vld [vmem:[%s2999_s17 + $0x10] sm:$0xf]  ;;  %v2602_v63 = vld [vmem:[%s2999_s17 + $0x8] sm:$0xf] }
  0x24   : > { %v391_v42 = vrot.slane %v390_v36, 4  ;;  %v889_v54 = vrot.slane %v887_v48, 4  ;;  %v892_v55 = vrot.slane %v890_v49, 5  ;;  %v906_v61 = vshrl.u32 %v2620_v56, 16  ;;  %v2621_v2 = vld [vmem:[%s2999_s17 + $0x14] sm:$0x1] }
  0x25   : > { %v652_v51 = vrot.slane %v651_v47, 4  ;;  %v909_v62 = vshll.u32 %v2620_v56, 16  ;;  %v898_v1 = vrot.slane %v896_v57, 5  ;;  %v349_v5 = vld [vmem:[%s2999_s17 + $0x10] sm:$0xf]  ;;  %v915_v6 = vshll.u32 %v2621_v2, 16 }
  0x26   : > { %v396_v50 = vsel %vm3018_vm2, %v391_v42, %v395_v43  ;;  %v893_v60 = vor.u32 %v892_v55, %v889_v54  ;;  %v908_v3 = vrot.slane %v906_v61, 4  ;;  %v2610_v8 = vld [vmem:[%s2999_s17 + $0x50] sm:$0xf]  ;;  %v402_v10 = vshrl.u32 %v349_v5, 16  ;;  %v351_v12 = vld [vmem:[%s2999_s17 + $0x18] sm:$0xf] }
  0x27   : > { %v657_v59 = vsel %vm3018_vm2, %v652_v51, %v656_v52  ;;  %v911_v4 = vrot.slane %v909_v62, 5  ;;  %v405_v11 = vshll.u32 %v349_v5, 16  ;;  %v2611_v13 = vld [vmem:[%s2999_s17 + $0x58] sm:$0xf]  ;;  %v420_v14 = vshrl.u32 %v351_v12, 16 }
  0x28   : > { %v894_v0 = vrot.slane %v893_v60, 4  ;;  %v423_v15 = vshll.u32 %v351_v12, 16  ;;  %v917_v17 = vrot.slane %v915_v6, 5  ;;  %v404_v18 = vrot.slane %v402_v10, 4  ;;  %v350_v20 = vld [vmem:[%s2999_s17 + $0x14] sm:$0x1] }
  0x29   : > { %639 = vrot.lane.b32.xlu2 %v638_v45, %s2896_s22  ;;  %569 = vrot.lane.b32.xlu0 %v2578_v46, %s2894_s20  ;;  %v912_v9 = vor.u32 %v911_v4, %v908_v3  ;;  %v407_v19 = vrot.slane %v405_v11, 5  ;;  %v422_v21 = vrot.slane %v420_v14, 4  ;;  %v2565_v23 = vld [vmem:[%s2999_s17 + $0x60] sm:$0xf]  ;;  %v411_v27 = vshll.u32 %v350_v20, 16 }
  0x2a   : > { %v899_v7 = vsel %vm3018_vm2, %v894_v0, %v898_v1  ;;  %v425_v22 = vrot.slane %v423_v15, 5  ;;  %v352_v28 = vld [vmem:[%s2999_s17 + $0x1c] sm:$0x1]  ;;  %v2564_v29 = vld [vmem:[%s2999_s17 + $0x58] sm:$0xf] }
  0x2b   : > { %397 = vrot.lane.b32.xlu1 %v396_v50, %s2895_s21  ;;  %v913_v16 = vrot.slane %v912_v9, 4  ;;  %v408_v25 = vor.u32 %v407_v19, %v404_v18  ;;  %v429_v31 = vshll.u32 %v352_v28, 16  ;;  %v413_v33 = vrot.slane %v411_v27, 5  ;;  %v2590_v34 = vld [vmem:[%s2999_s17 + $0xa0] sm:$0xf] }
  0x2c   : > { %v426_v30 = vor.u32 %v425_v22, %v422_v21  ;;  %v2572_v37 = vld [vmem:[%s2999_s17 + $0xa0] sm:$0xf]  ;;  %v663_v39 = vshrl.u32 %v2590_v34, 16  ;;  %v666_v40 = vshll.u32 %v2590_v34, 16  ;;  %v2592_v41 = vld [vmem:[%s2999_s17 + $0xa8] sm:$0xf] }
  0x2d   : > { %v918_v24 = vsel %vm3018_vm2, %v913_v16, %v917_v17  ;;  %v409_v32 = vrot.slane %v408_v25, 4  ;;  %v431_v36 = vrot.slane %v429_v31, 5  ;;  %v681_v43 = vshrl.u32 %v2592_v41, 16  ;;  %v2591_v47 = vld [vmem:[%s2999_s17 + $0xa4] sm:$0x1] }
  0x2e   : > { %v427_v35 = vrot.slane %v426_v30, 4  ;;  %v684_v44 = vshll.u32 %v2592_v41, 16  ;;  %v665_v45 = vrot.slane %v663_v39, 4  ;;  %v668_v46 = vrot.slane %v666_v40, 5  ;;  %v2581_v48 = vld [vmem:[%s2999_s17 + $0xf0] sm:$0xf] }
  0x2f   : > { %v414_v38 = vsel %vm3018_vm2, %v409_v32, %v413_v33  ;;  %v683_v49 = vrot.slane %v681_v43, 4  ;;  %v2573_v51 = vld [vmem:[%s2999_s17 + $0xa8] sm:$0xf]  ;;  %v672_v53 = vshll.u32 %v2591_v47, 16  ;;  %v2593_v54 = vld [vmem:[%s2999_s17 + $0xac] sm:$0x1] }
  0x30   : > { %v432_v42 = vsel %vm3018_vm2, %v427_v35, %v431_v36  ;;  %v686_v50 = vrot.slane %v684_v44, 5  ;;  %v669_v52 = vor.u32 %v668_v46, %v665_v45  ;;  %v2580_v55 = vld [vmem:[%s2999_s17 + $0xe8] sm:$0xf]  ;;  %v690_v57 = vshll.u32 %v2593_v54, 16  ;;  %v2622_v60 = vld [vmem:[%s2999_s17 + $0x18] sm:$0xf] }
  0x31   : > { %786 = vrot.lane.b32.xlu2 %v2603_v58, %s2897_s23  ;;  %658 = vrot.lane.b32.xlu0 %v657_v59, %s2896_s22  ;;  %v674_v59 = vrot.slane %v672_v53, 5  ;;  %v924_v1 = vshrl.u32 %v2622_v60, 16  ;;  %v927_v2 = vshll.u32 %v2622_v60, 16  ;;  %v2624_v3 = vld [vmem:[%s2999_s17 + $0x20] sm:$0xf] }
  0x32   : > { %v687_v56 = vor.u32 %v686_v50, %v683_v49  ;;  %v670_v58 = vrot.slane %v669_v52, 4  ;;  %v692_v62 = vrot.slane %v690_v57, 5  ;;  %v942_v5 = vshrl.u32 %v2624_v3, 16  ;;  %v355_v10 = vld [vmem:[%s2999_s17 + $0x28] sm:$0xf] }
  0x33   : > { %780 = vrot.lane.b32.xlu1 %v2602_v63, %s2897_s23  ;;  %v2604_v63 = vld [vmem:[%s2999_s17 + $0x18] sm:$0xf]  ;;  %v945_v6 = vshll.u32 %v2624_v3, 16  ;;  %v929_v9 = vrot.slane %v927_v2, 5  ;;  %v2613_v11 = vld [vmem:[%s2999_s17 + $0x68] sm:$0xf] }
  0x34   : > { %v688_v61 = vrot.slane %v687_v56, 4  ;;  %v675_v0 = vsel %vm3018_vm2, %v670_v58, %v674_v59  ;;  %v2605_v12 = vld [vmem:[%s2999_s17 + $0x20] sm:$0xf]  ;;  %v944_v14 = vrot.slane %v942_v5, 4  ;;  %v2625_v17 = vld [vmem:[%s2999_s17 + $0x24] sm:$0x1] }
  0x35   : > { %v947_v15 = vrot.slane %v945_v6, 5  ;;  %v456_v18 = vshrl.u32 %v355_v10, 16  ;;  %v459_v19 = vshll.u32 %v355_v10, 16  ;;  %v353_v20 = vld [vmem:[%s2999_s17 + $0x20] sm:$0xf] }
  0x36   : > { %v693_v4 = vsel %vm3018_vm2, %v688_v61, %v692_v62  ;;  %v2612_v21 = vld [vmem:[%s2999_s17 + $0x60] sm:$0xf]  ;;  %v441_v25 = vshll.u32 %v353_v20, 16  ;;  %v356_v31 = vld [vmem:[%s2999_s17 + $0x2c] sm:$0x1] }
  0x37   : > { %v948_v22 = vor.u32 %v947_v15, %v944_v14  ;;  %v461_v30 = vrot.slane %v459_v19, 5  ;;  %v2566_v36 = vld [vmem:[%s2999_s17 + $0x68] sm:$0xf]  ;;  %v465_v39 = vshll.u32 %v356_v31, 16  ;;  %v354_v40 = vld [vmem:[%s2999_s17 + $0x24] sm:$0x1] }
  0x38   : > { %v443_v35 = vrot.slane %v441_v25, 5  ;;  %v447_v43 = vshll.u32 %v354_v40, 16  ;;  %v2596_v46 = vld [vmem:[%s2999_s17 + $0xb8] sm:$0xf]  ;;  %v278_v47 = vld [vmem:[%s2999_s17] sm:$0xf] }
  0x39   : > { %900 = vrot.lane.b32.xlu2 %v899_v7, %s2898_s29  ;;  %830 = vrot.lane.b32.xlu0 %v2610_v8, %s2899_s8  ;;  %v2623_v7 = vld [vmem:[%s2999_s17 + $0x1c] sm:$0x1]  ;;  %v926_v8 = vrot.slane %v924_v1, 4  ;;  %v949_v32 = vrot.slane %v948_v22, 4  ;;  %v467_v45 = vrot.slane %v465_v39, 5  ;;  %v717_v52 = vshrl.u32 %v2596_v46, 16 }
  0x3a   : > { %v449_v49 = vrot.slane %v447_v43, 5  ;;  %287 = vst.msk [vmem:[#allocation2] sm:$0xf] %vm286_vm3, %v278_v47  ;;  %v720_v53 = vshll.u32 %v2596_v46, 16  ;;  %v2594_v54 = vld [vmem:[%s2999_s17 + $0xb0] sm:$0xf] }
  0x3b   : > { %836 = vrot.lane.b32.xlu1 %v2611_v13, %s2899_s8  ;;  %v933_v13 = vshll.u32 %v2623_v7, 16  ;;  %v930_v16 = vor.u32 %v929_v9, %v926_v8  ;;  %v699_v56 = vshrl.u32 %v2594_v54, 16  ;;  %v702_v57 = vshll.u32 %v2594_v54, 16  ;;  %v2597_v61 = vld [vmem:[%s2999_s17 + $0xbc] sm:$0x1] }
  0x3c   : > { %v719_v58 = vrot.slane %v717_v52, 4  ;;  %v722_v59 = vrot.slane %v720_v53, 5  ;;  %v279_v62 = vld [vmem:[%s2999_s17 + $0x8] sm:$0xf]  ;;  %v2574_v2 = vld [vmem:[%s2999_s17 + $0xb0] sm:$0xf] }
  0x3d   : > { %v931_v27 = vrot.slane %v930_v16, 4  ;;  %v935_v28 = vrot.slane %v933_v13, 5  ;;  %v704_v1 = vrot.slane %v702_v57, 5  ;;  %288 = vst.msk [vmem:[#allocation2 + $0x4] sm:$0xf] %vm286_vm3, %v279_v62 }
  0x3e   : > { %v723_v3 = vor.u32 %v722_v59, %v719_v58  ;;  %v2595_v5 = vld [vmem:[%s2999_s17 + $0xb4] sm:$0x1]  ;;  %v2575_v6 = vld [vmem:[%s2999_s17 + $0xb8] sm:$0xf]  ;;  %v2626_v16 = vld [vmem:[%s2999_s17 + $0x28] sm:$0xf] }
  0x3f   : > { %v708_v8 = vshll.u32 %v2595_v5, 16  ;;  %v281_v13 = vld [vmem:[%s2999_s17 + $0x18] sm:$0xf]  ;;  %v963_v22 = vshll.u32 %v2626_v16, 16  ;;  %v358_v46 = vld [vmem:[%s2999_s17 + $0x34] sm:$0x1] }
  0x40   : > { %v724_v9 = vrot.slane %v723_v3, 4  ;;  %290 = vst.msk [vmem:[#allocation2 + $0xc] sm:$0xf] %vm286_vm3, %v281_v13  ;;  %v483_v54 = vshll.u32 %v358_v46, 16  ;;  %v1043_v59 = vld [vmem:[%s3778_s1 + $0x10] sm:$0x3] }
  0x41   : > { %321 = vrot.lane.b32.xlu2 %v2565_v23, %s2893_s19  ;;  %919 = vrot.lane.b32.xlu0 %v918_v24, %s2898_s29  ;;  %v951_v23 = vshll.u32 %v2625_v17, 16  ;;  %v438_v24 = vshrl.u32 %v353_v20, 16  ;;  %v710_v15 = vrot.slane %v708_v8, 5  ;;  %v965_v31 = vrot.slane %v963_v22, 5 }
  0x43   : > { %316 = vrot.lane.b32.xlu1 %v2564_v29, %s2893_s19  ;;  %v458_v29 = vrot.slane %v456_v18, 4  ;;  %v953_v33 = vrot.slane %v951_v23, 5  ;;  %v440_v34 = vrot.slane %v438_v24, 4  ;;  %v2583_v18 = vld [vmem:[%s2999_s17 + $0x100] sm:$0xf] }
  0x45   : > { %v954_v41 = vsel %vm3018_vm2, %v949_v32, %v953_v33  ;;  %v2627_v32 = vld [vmem:[%s2999_s17 + $0x2c] sm:$0x1] }
  0x46   : > { %v969_v40 = vshll.u32 %v2627_v32, 16 }
  0x48   : > { %v971_v52 = vrot.slane %v969_v40, 5 }
  0x49   : > { %530 = vrot.lane.b32.xlu2 %v2572_v37, %s2892_s18  ;;  %415 = vrot.lane.b32.xlu0 %v414_v38, %s2895_s21  ;;  %v936_v37 = vsel %vm3018_vm2, %v931_v27, %v935_v28  ;;  %v462_v38 = vor.u32 %v461_v30, %v458_v29  ;;  %v357_v27 = vld [vmem:[%s2999_s17 + $0x30] sm:$0xf]  ;;  %v2629_v29 = vld [vmem:[%s2999_s17 + $0x34] sm:$0x1] }
  0x4a   : > { %v474_v33 = vshrl.u32 %v357_v27, 16 }
  0x4b   : > { %433 = vrot.lane.b32.xlu1 %v432_v42, %s2895_s21  ;;  %v444_v42 = vor.u32 %v443_v35, %v440_v34  ;;  %v463_v44 = vrot.slane %v462_v38, 4  ;;  %v477_v34 = vshll.u32 %v357_v27, 16  ;;  %v2614_v35 = vld [vmem:[%s2999_s17 + $0x70] sm:$0xf]  ;;  %v987_v38 = vshll.u32 %v2629_v29, 16 }
  0x4c   : > { %v2599_v29 = vld [vmem:[%s2999_s17 + $0xc4] sm:$0x1] }
  0x4d   : > { %v468_v50 = vsel %vm3018_vm2, %v463_v44, %v467_v45  ;;  %v479_v43 = vrot.slane %v477_v34, 5  ;;  %v989_v45 = vrot.slane %v987_v38, 5 }
  0x51   : > { %585 = vrot.lane.b32.xlu2 %v2581_v48, %s2894_s20  ;;  %535 = vrot.lane.b32.xlu0 %v2573_v51, %s2892_s18  ;;  %v445_v48 = vrot.slane %v444_v42, 4  ;;  %v2567_v51 = vld [vmem:[%s2999_s17 + $0x70] sm:$0xf]  ;;  %v476_v42 = vrot.slane %v474_v33, 4  ;;  %v2577_v33 = vld [vmem:[%s2999_s17 + $0xc8] sm:$0xf] }
  0x53   : > { %580 = vrot.lane.b32.xlu1 %v2580_v55, %s2894_s20  ;;  %v450_v55 = vsel %vm3018_vm2, %v445_v48, %v449_v49  ;;  %v359_v49 = vld [vmem:[%s2999_s17 + $0x38] sm:$0xf]  ;;  %v480_v53 = vor.u32 %v479_v43, %v476_v42 }
  0x54   : > { %v492_v57 = vshrl.u32 %v359_v49, 16  ;;  %v495_v58 = vshll.u32 %v359_v49, 16 }
  0x56   : > { %v497_v3 = vrot.slane %v495_v58, 5 }
  0x59   : > { %791 = vrot.lane.b32.xlu2 %v2604_v63, %s2897_s23  ;;  %676 = vrot.lane.b32.xlu0 %v675_v0, %s2896_s22  ;;  %v2582_v63 = vld [vmem:[%s2999_s17 + $0xf8] sm:$0xf]  ;;  %v701_v0 = vrot.slane %v699_v56, 4 }
  0x5a   : > { %v2615_v56 = vld [vmem:[%s2999_s17 + $0x78] sm:$0xf] }
  0x5b   : > { %694 = vrot.lane.b32.xlu1 %v693_v4, %s2896_s22  ;;  %v726_v4 = vshll.u32 %v2597_v61, 16  ;;  %v705_v7 = vor.u32 %v704_v1, %v701_v0  ;;  %v1077_v61 = vunpack.c.l.b16 %v1043_v59  ;;  %v485_v0 = vrot.slane %v483_v54, 5  ;;  %v2631_v59 = vld [vmem:[%s2999_s17 + $0x3c] sm:$0x1] }
  0x5d   : > { %v728_v10 = vrot.slane %v726_v4, 5  ;;  %v706_v14 = vrot.slane %v705_v7, 4  ;;  %v1080_v1 = vpack.c.b16 %v1077_v61, %v1077_v61  ;;  %v2598_v7 = vld [vmem:[%s2999_s17 + $0xc0] sm:$0xf] }
  0x5e   : > { %v2632_v61 = vld [vmem:[%s2999_s17 + $0x40] sm:$0xf] }
  0x5f   : > { %v729_v17 = vsel %vm3018_vm2, %v724_v9, %v728_v10  ;;  %v711_v23 = vsel %vm3018_vm2, %v706_v14, %v710_v15  ;;  %v1098_v8 = vsel %vm1096_vm5, %v1080_v1, 0  ;;  %v2568_v10 = vld [vmem:[%s2999_s17 + $0x78] sm:$0xf]  ;;  %v735_v15 = vshrl.u32 %v2598_v7, 16 }
  0x60   : > { %1105 = vmatpush.bf16.msra.mxu0 %v1098_v8 }
  0x61   : > { %846 = vrot.lane.b32.xlu2 %v2613_v11, %s2899_s8  ;;  %796 = vrot.lane.b32.xlu0 %v2605_v12, %s2897_s23  ;;  %v2628_v12 = vld [vmem:[%s2999_s17 + $0x30] sm:$0xf] }
  0x62   : > { %v978_v19 = vshrl.u32 %v2628_v12, 16  ;;  %v981_v20 = vshll.u32 %v2628_v12, 16 }
  0x63   : > { %841 = vrot.lane.b32.xlu1 %v2612_v21, %s2899_s8  ;;  %v960_v21 = vshrl.u32 %v2626_v16, 16  ;;  %v738_v16 = vshll.u32 %v2598_v7, 16 }
  0x64   : > { %v980_v24 = vrot.slane %v978_v19, 4  ;;  %v983_v25 = vrot.slane %v981_v20, 5  ;;  %v2569_v19 = vld [vmem:[%s2999_s17 + $0x80] sm:$0xf] }
  0x65   : > { %v962_v30 = vrot.slane %v960_v21, 4  ;;  %v2751_v20 = vld [vmem:[%s3778_s1] sm:$0xff] }
  0x67   : > { %v966_v39 = vor.u32 %v965_v31, %v962_v30 }
  0x69   : > { %326 = vrot.lane.b32.xlu2 %v2566_v36, %s2893_s19  ;;  %937 = vrot.lane.b32.xlu0 %v936_v37, %s2898_s29  ;;  %v2606_v36 = vld [vmem:[%s2999_s17 + $0x28] sm:$0xf]  ;;  %v984_v37 = vor.u32 %v983_v25, %v980_v24  ;;  %v740_v24 = vrot.slane %v738_v16, 5  ;;  %v2616_v16 = vld [vmem:[%s2999_s17 + $0x80] sm:$0xf] }
  0x6b   : > { %955 = vrot.lane.b32.xlu1 %v954_v41, %s2898_s29  ;;  %v2607_v41 = vld [vmem:[%s2999_s17 + $0x30] sm:$0xf]  ;;  %v985_v44 = vrot.slane %v984_v37, 4  ;;  %v2576_v37 = vld [vmem:[%s2999_s17 + $0xc0] sm:$0xf] }
  0x71   : > { %469 = vrot.lane.b32.xlu2 %v468_v50, %s2895_s21  ;;  %331 = vrot.lane.b32.xlu0 %v2567_v51, %s2893_s19  ;;  %v967_v51 = vrot.slane %v966_v39, 4 }
  0x73   : > { %v3124_v60 = vpop.permute.xlu2 %519  ;;  %451 = vrot.lane.b32.xlu1 %v450_v55, %s2895_s21  ;;  %v990_v55 = vsel %vm3018_vm2, %v985_v44, %v989_v45  ;;  %v972_v62 = vsel %vm3018_vm2, %v967_v51, %v971_v52  ;;  %v2630_v44 = vld [vmem:[%s2999_s17 + $0x38] sm:$0xf] }
  0x74   : > { %v996_v51 = vshrl.u32 %v2630_v44, 16  ;;  %v999_v52 = vshll.u32 %v2630_v44, 16 }
  0x79   : > { %590 = vrot.lane.b32.xlu2 %v2582_v63, %s2894_s20  ;;  %540 = vrot.lane.b32.xlu0 %v2574_v2, %s2892_s18  ;;  %v481_v63 = vrot.slane %v480_v53, 4  ;;  %v494_v2 = vrot.slane %v492_v57, 4 }
  0x7b   : > { %v3136_v11 = vpop.permute.xlu2 %525  ;;  %545 = vrot.lane.b32.xlu1 %v2575_v6, %s2892_s18  ;;  %v360_v6 = vld [vmem:[%s2999_s17 + $0x3c] sm:$0x1]  ;;  %v486_v9 = vsel %vm3018_vm2, %v481_v63, %v485_v0  ;;  %v498_v13 = vor.u32 %v497_v3, %v494_v2  ;;  %v2609_v0 = vld [vmem:[%s2999_s17 + $0x40] sm:$0xf]  ;;  %v1005_v2 = vshll.u32 %v2631_v59, 16  ;;  %v1014_v3 = vshrl.u32 %v2632_v61, 16 }
  0x7c   : > { %v501_v14 = vshll.u32 %v360_v6, 16  ;;  %v2608_v6 = vld [vmem:[%s2999_s17 + $0x38] sm:$0xf] }
  0x7d   : > { %v499_v21 = vrot.slane %v498_v13, 4  ;;  %v1016_v8 = vrot.slane %v1014_v3, 4  ;;  %v2633_v13 = vld [vmem:[%s2999_s17 + $0x44] sm:$0x1] }
  0x7e   : > { %v503_v22 = vrot.slane %v501_v14, 5 }
  0x80   : > { %v504_v34 = vsel %vm3018_vm2, %v499_v21, %v503_v22 }
  0x81   : > { %730 = vrot.lane.b32.xlu2 %v729_v17, %s2896_s22  ;;  %595 = vrot.lane.b32.xlu0 %v2583_v18, %s2894_s20  ;;  %v280_v17 = vld [vmem:[%s2999_s17 + $0x10] sm:$0xf]  ;;  %v2752_v18 = vld [vmem:[%s3778_s1 + $0x8] sm:$0xff] }
  0x82   : > { %1106 = vmatpush.bf16.msra.mxu0 %v2752_v18  ;;  %289 = vst.msk [vmem:[#allocation2 + $0x8] sm:$0xf] %vm286_vm3, %v280_v17  ;;  %v1023_v18 = vshll.u32 %v2633_v13, 16 }
  0x83   : > { %v3151_v28 = vpop.permute.xlu2 %639  ;;  %712 = vrot.lane.b32.xlu1 %v711_v23, %s2896_s22  ;;  %v737_v23 = vrot.slane %v735_v15, 4 }
  0x84   : > { %v1025_v21 = vrot.slane %v1023_v18, 5 }
  0x86   : > { %1107 = vmatpush.bf16.msra.mxu0 %v2751_v20 }
  0x89   : > { %851 = vrot.lane.b32.xlu2 %v2614_v35, %s2899_s8  ;;  %801 = vrot.lane.b32.xlu0 %v2606_v36, %s2897_s23  ;;  %v741_v35 = vor.u32 %v740_v24, %v737_v23  ;;  %v744_v36 = vshll.u32 %v2599_v29, 16 }
  0x8b   : > { %v3162_v47 = vpop.permute.xlu2 %786  ;;  %v306_v48 = vpop.permute.xlu0 %305  ;;  %806 = vrot.lane.b32.xlu1 %v2607_v41, %s2897_s23  ;;  %v746_v40 = vrot.slane %v744_v36, 5  ;;  %v2601_v41 = vld [vmem:[%s2999_s17 + $0xcc] sm:$0x1] }
  0x8c   : > { %309 = vst.msk [vmem:[#allocation2] sm:$0xf] %vm308_vm4, %v306_v48  ;;  %v3167_v50 = vpop.permute.xlu1 %575  ;;  %v762_v46 = vshll.u32 %v2601_v41, 16 }
  0x8e   : > { %v764_v54 = vrot.slane %v762_v46, 5 }
  0x91   : > { %991 = vrot.lane.b32.xlu2 %v990_v55, %s2898_s29  ;;  %856 = vrot.lane.b32.xlu0 %v2615_v56, %s2899_s8  ;;  %v998_v55 = vrot.slane %v996_v51, 4  ;;  %v1001_v56 = vrot.slane %v999_v52, 5 }
  0x93   : > { %v3179_v4 = vpop.permute.xlu2 %900  ;;  %v312_v5 = vpop.permute.xlu0 %311  ;;  %973 = vrot.lane.b32.xlu1 %v972_v62, %s2898_s29  ;;  %v1002_v1 = vor.u32 %v1001_v56, %v998_v55 }
  0x94   : > { %314 = vst.msk [vmem:[#allocation2 + $0x4] sm:$0xf] %vm308_vm4, %v312_v5  ;;  %v1017_v5 = vshll.u32 %v2632_v61, 16 }
  0x95   : > { %v379_v12 = vpop.permute.xlu1 %378  ;;  %v1003_v7 = vrot.slane %v1002_v1, 4 }
  0x96   : > { %382 = vst.msk [vmem:[#allocation2] sm:$0xf] %vm381_vm6, %v379_v12 }
  0x97   : > { %523 = vst.msk [vmem:[#allocation2] sm:$0xf] %vm522_vm7, %v3124_v60  ;;  %v2600_v60 = vld [vmem:[%s2999_s17 + $0xc8] sm:$0xf] }
  0x98   : > { %v753_v30 = vshrl.u32 %v2600_v60, 16  ;;  %v756_v31 = vshll.u32 %v2600_v60, 16 }
  0x99   : > { %487 = vrot.lane.b32.xlu2 %v486_v9, %s2895_s21  ;;  %336 = vrot.lane.b32.xlu0 %v2568_v10, %s2893_s19  ;;  %v1019_v9 = vrot.slane %v1017_v5, 5 }
  0x9a   : > { %v755_v38 = vrot.slane %v753_v30, 4  ;;  %v758_v39 = vrot.slane %v756_v31, 5  ;;  %v283_v31 = vld [vmem:[%s2999_s17 + $0x28] sm:$0xf] }
  0x9b   : > { %v322_v25 = vpop.permute.xlu2 %321  ;;  %v570_v27 = vpop.permute.xlu0 %569  ;;  %341 = vrot.lane.b32.xlu1 %v2569_v19, %s2893_s19  ;;  %v1020_v17 = vor.u32 %v1019_v9, %v1016_v8  ;;  %v2617_v19 = vld [vmem:[%s2999_s17 + $0x88] sm:$0xf]  ;;  %292 = vst.msk [vmem:[#allocation2 + $0x14] sm:$0xf] %vm286_vm3, %v283_v31 }
  0x9c   : > { %324 = vst.msk [vmem:[#allocation2 + $0xc] sm:$0xf] %vm308_vm4, %v322_v25  ;;  %v759_v45 = vor.u32 %v758_v39, %v755_v38 }
  0x9d   : > { %573 = vst.msk [vmem:[#allocation2] sm:$0xf] %vm572_vm8, %v570_v27  ;;  %v398_v32 = vpop.permute.xlu1 %397  ;;  %v1021_v20 = vrot.slane %v1020_v17, 4 }
  0x9e   : > { %643 = vst.msk [vmem:[#allocation2] sm:$0xf] %vm642_vm9, %v3151_v28  ;;  %v742_v28 = vrot.slane %v741_v35, 4  ;;  %v760_v53 = vrot.slane %v759_v45, 4 }
  0x9f   : > { %400 = vst.msk [vmem:[#allocation2 + $0x4] sm:$0xf] %vm381_vm6, %v398_v32  ;;  %v1026_v25 = vsel %vm3018_vm2, %v1021_v20, %v1025_v21 }
  0xa0   : > { %528 = vst.msk [vmem:[#allocation2 + $0x4] sm:$0xf] %vm522_vm7, %v3136_v11  ;;  %v282_v11 = vld [vmem:[%s2999_s17 + $0x20] sm:$0xf]  ;;  %v747_v49 = vsel %vm3018_vm2, %v742_v28, %v746_v40  ;;  %v765_v62 = vsel %vm3018_vm2, %v760_v53, %v764_v54 }
  0xa1   : > { %578 = vst.msk [vmem:[#allocation2 + $0x4] sm:$0xf] %vm572_vm8, %v3167_v50  ;;  %555 = vrot.lane.b32.xlu2 %v2577_v33, %s2892_s18  ;;  %505 = vrot.lane.b32.xlu0 %v504_v34, %s2895_s21  ;;  %v2584_v50 = vld [vmem:[%s2999_s17 + $0x108] sm:$0xf] }
  0xa2   : > { %291 = vst.msk [vmem:[#allocation2 + $0x10] sm:$0xf] %vm286_vm3, %v282_v11 }
  0xa3   : > { %v3222_v42 = vpop.permute.xlu2 %530  ;;  %v659_v43 = vpop.permute.xlu0 %658  ;;  %550 = vrot.lane.b32.xlu1 %v2576_v37, %s2892_s18  ;;  %s2900_s18 = smov 112  }
  0xa4   : > { %661 = vst.msk [vmem:[#allocation2 + $0x4] sm:$0xf] %vm642_vm9, %v659_v43 }
  0xa5   : > { %789 = vst.msk [vmem:[#allocation2 + $0x4] sm:$0xf] %vm783_vm10, %v3162_v47  ;;  %v781_v48 = vpop.permute.xlu1 %780  ;;  %v2585_v47 = vld [vmem:[%s2999_s17 + $0x110] sm:$0xf] }
  0xa6   : > { %784 = vst.msk [vmem:[#allocation2] sm:$0xf] %vm783_vm10, %v781_v48  ;;  %v284_v48 = vld [vmem:[%s2999_s17 + $0x30] sm:$0xf] }
  0xa7   : > { %293 = vst.msk [vmem:[#allocation2 + $0x18] sm:$0xf] %vm286_vm3, %v284_v48 }
  0xa9   : > { %748 = vrot.lane.b32.xlu2 %v747_v49, %s2896_s22  ;;  %600 = vrot.lane.b32.xlu0 %v2584_v50, %s2894_s20  ;;  %v285_v50 = vld [vmem:[%s2999_s17 + $0x38] sm:$0xf]  ;;  %s2902_s17 = smov 48  }
  0xaa   : > { %294 = vst.msk [vmem:[#allocation2 + $0x1c] sm:$0xf] %vm286_vm3, %v285_v50  ;;  %vm1177_vm3 = vsmask.f32 7938 }
  0xab   : > { %v586_v57 = vpop.permute.xlu2 %585  ;;  %v831_v58 = vpop.permute.xlu0 %830  ;;  %605 = vrot.lane.b32.xlu1 %v2585_v47, %s2894_s20  ;;  %v2368_v47 = vld [vmem:[%s3782_s5] sm:$0x3] }
  0xac   : > { %834 = vst.msk [vmem:[#allocation2] sm:$0xf] %vm833_vm11, %v831_v58  ;;  %v2415_v54 = vsel %vm1096_vm5, %v2368_v47, 0  ;;  %v2901_v58 = vmov 0   ;;  %vm3323_vm5 = vmand %vm1139_vm15, %vm1177_vm3 }
  0xad   : > { %904 = vst.msk [vmem:[#allocation2] sm:$0xf] %vm903_vm12, %v3179_v4  ;;  %v837_v63 = vpop.permute.xlu1 %836  ;;  %v1007_v4 = vrot.slane %v1005_v2, 5  ;;  %2424 = vmatpush.bf16.msra.mxu2 %v2415_v54 }
  0xae   : > { %839 = vst.msk [vmem:[#allocation2 + $0x4] sm:$0xf] %vm833_vm11, %v837_v63 }
  0xaf   : > { %v1008_v15 = vsel %vm3018_vm2, %v1003_v7, %v1007_v4  ;;  %1138 = vst.msk [vmem:[#allocation3] sm:$0xf] %vm1137_vm14, %v2901_v58 }
  0xb0   : > { %1142 = vst.msk [vmem:[#allocation3 + $0x48] sm:$0xf] %vm1137_vm14, %v2901_v58 }
  0xb1   : > { %816 = vrot.lane.b32.xlu2 %v2609_v0, %s2897_s23  ;;  %766 = vrot.lane.b32.xlu0 %v765_v62, %s2896_s22  ;;  %1140 = vst.msk [vmem:[#allocation3 + $0x4] sm:$0x1] %vm1139_vm15, %v2901_v58  ;;  %s2765_s22 = sshll.u32 %s2967_s28, 5 }
  0xb2   : > { %1143 = vst.msk [vmem:[#allocation3 + $0x4c] sm:$0x1] %vm1139_vm15, %v2901_v58  ;;  %vm1551_vm15 = vcmask 1046532  }
  0xb3   : > { %v792_v10 = vpop.permute.xlu2 %791  ;;  %v920_v12 = vpop.permute.xlu0 %919  ;;  %811 = vrot.lane.b32.xlu1 %v2608_v6, %s2897_s23 }
  0xb4   : > { %922 = vst.msk [vmem:[#allocation2 + $0x4] sm:$0xf] %vm903_vm12, %v920_v12 }
  0xb5   : > { %v317_v14 = vpop.permute.xlu1 %316 }
  0xb6   : > { %319 = vst.msk [vmem:[#allocation2 + $0x8] sm:$0xf] %vm308_vm4, %v317_v14  ;;  %v1147_v63 = vld [vmem:[#allocation3] sm:$0x1]  ;;  %v1532_v21 = vld [vmem:[#allocation3] sm:$0xe] }
  0xb7   : > { %v1148_v1 = vsel %vm3314_vm1, 0, %v1147_v63  ;;  %v2163_v63 = vld [vmem:[#allocation3 + $0x48] sm:$0xe] }
  0xb8   : > { %1149 = vst [vmem:[#allocation3] sm:$0x1] %v1148_v1  ;;  %v1179_v3 = vld [vmem:[#allocation3 + $0x4] sm:$0x1]  ;;  %v2685_v1 = vrot.slane %v2163_v63, 9 }
  0xb9   : > { %1009 = vrot.lane.b32.xlu2 %v1008_v15, %s2898_s29  ;;  %861 = vrot.lane.b32.xlu0 %v2616_v16, %s2899_s8  ;;  %v1180_v5 = vsel %vm3323_vm5, 0, %v1179_v3 }
  0xba   : > { %1181 = vst [vmem:[#allocation3 + $0x4] sm:$0x1] %v1180_v5 }
  0xbb   : > { %v847_v22 = vpop.permute.xlu2 %846  ;;  %v416_v23 = vpop.permute.xlu0 %415  ;;  %v2747_v24 = vld [vmem:[#allocation2] sm:$0xff]  ;;  %866 = vrot.lane.b32.xlu1 %v2617_v19, %s2899_s8 }
  0xbc   : > { %418 = vst.msk [vmem:[#allocation2 + $0x8] sm:$0xf] %vm381_vm6, %v416_v23  ;;  %2658 = vmatmul.msk.bf16.vlgmr.msra.gmra.mxu0 %vm1083_vm13, %v2747_v24  ;;  %v2761_v27 = vld [vmem:[#allocation2] sm:$0xff]  ;;  %v2662_v24 = vrot.slane %v1532_v21, 9 }
  0xbd   : > { %533 = vst.msk [vmem:[#allocation2 + $0x8] sm:$0xf] %vm522_vm7, %v3222_v42  ;;  %v434_v60 = vpop.permute.xlu1 %433 }
  0xbe   : > { %436 = vst.msk [vmem:[#allocation2 + $0xc] sm:$0xf] %vm381_vm6, %v434_v60 }
  0xc1   : > { %1027 = vrot.lane.b32.xlu0 %v1026_v25, %s2898_s29  ;;  %2393 = vrot.lane.b32.xlu2 %v2761_v27, %s2900_s18  ;;  %v1372_v14 = vld [vmem:[#allocation3 + $0x4] sm:$0x1] }
  0xc2   : > { %v1397_v19 = vshll.u32 %v1372_v14, 16 }
  0xc3   : > { %v327_v29 = vpop.permute.xlu2 %326  ;;  %v536_v30 = vpop.permute.xlu0 %535 }
  0xc4   : > { %329 = vst.msk [vmem:[#allocation2 + $0x10] sm:$0xf] %vm308_vm4, %v327_v29  ;;  %v1399_v23 = vrot.slane %v1397_v19, 5 }
  0xc5   : > { %538 = vst.msk [vmem:[#allocation2 + $0xc] sm:$0xf] %vm522_vm7, %v536_v30  ;;  %v581_v32 = vpop.permute.xlu1 %580 }
  0xc6   : > { %588 = vst.msk [vmem:[#allocation2 + $0xc] sm:$0xf] %vm572_vm8, %v586_v57 }
  0xc7   : > { %583 = vst.msk [vmem:[#allocation2 + $0x8] sm:$0xf] %vm572_vm8, %v581_v32  ;;  %v1174_v32 = vld [vmem:[#allocation3 + $0x48] sm:$0x1] }
  0xcb   : > { %v470_v33 = vpop.permute.xlu2 %469  ;;  %v677_v34 = vpop.permute.xlu0 %676 }
  0xcc   : > { %679 = vst.msk [vmem:[#allocation2 + $0x8] sm:$0xf] %vm642_vm9, %v677_v34 }
  0xcd   : > { %794 = vst.msk [vmem:[#allocation2 + $0x8] sm:$0xf] %vm783_vm10, %v792_v10  ;;  %v695_v35 = vpop.permute.xlu1 %694  ;;  %v1371_v10 = vld [vmem:[#allocation3] sm:$0xf] }
  0xce   : > { %697 = vst.msk [vmem:[#allocation2 + $0xc] sm:$0xf] %vm642_vm9, %v695_v35  ;;  %v1388_v12 = vshrl.u32 %v1371_v10, 16  ;;  %v1391_v13 = vshll.u32 %v1371_v10, 16  ;;  %v1175_v35 = vsel %vm3314_vm1, 0, %v1174_v32 }
  0xcf   : > { %1176 = vst [vmem:[#allocation3 + $0x48] sm:$0x1] %v1175_v35 }
  0xd0   : > { %v1390_v15 = vrot.slane %v1388_v12, 4  ;;  %v1393_v16 = vrot.slane %v1391_v13, 5 }
  0xd2   : > { %v1394_v20 = vor.u32 %v1393_v16, %v1390_v15 }
  0xd3   : > { %v591_v36 = vpop.permute.xlu2 %590  ;;  %v797_v37 = vpop.permute.xlu0 %796 }
  0xd4   : > { %799 = vst.msk [vmem:[#allocation2 + $0xc] sm:$0xf] %vm783_vm10, %v797_v37  ;;  %v1395_v25 = vrot.slane %v1394_v20, 4  ;;  %v1182_v37 = vld [vmem:[#allocation3 + $0xc] sm:$0x1] }
  0xd5   : > { %849 = vst.msk [vmem:[#allocation2 + $0xc] sm:$0xf] %vm833_vm11, %v847_v22  ;;  %v842_v38 = vpop.permute.xlu1 %841  ;;  %v1533_v22 = vld [vmem:[#allocation3 + $0x4] sm:$0x1] }
  0xd6   : > { %844 = vst.msk [vmem:[#allocation2 + $0x8] sm:$0xf] %vm833_vm11, %v842_v38  ;;  %v1555_v29 = vrot.slane %v1533_v22, 5  ;;  %v1400_v30 = vsel %vm3018_vm2, %v1395_v25, %v1399_v23 }
  0xdb   : > { %v731_v39 = vpop.permute.xlu2 %730  ;;  %v938_v28 = vpop.permute.xlu0 %937 }
  0xdc   : > { %940 = vst.msk [vmem:[#allocation2 + $0x8] sm:$0xf] %vm903_vm12, %v938_v28  ;;  %v1183_v28 = vsel %vm3323_vm5, 0, %v1182_v37 }
  0xdd   : > { %v956_v40 = vpop.permute.xlu1 %955  ;;  %1184 = vst [vmem:[#allocation3 + $0xc] sm:$0x1] %v1183_v28 }
  0xde   : > { %958 = vst.msk [vmem:[#allocation2 + $0xc] sm:$0xf] %vm903_vm12, %v956_v40  ;;  %v1206_v40 = vld [vmem:[#allocation3 + $0x4c] sm:$0x1] }
  0xe3   : > { %v852_v41 = vpop.permute.xlu2 %851  ;;  %v332_v42 = vpop.permute.xlu0 %331 }
  0xe4   : > { %334 = vst.msk [vmem:[#allocation2 + $0x14] sm:$0xf] %vm308_vm4, %v332_v42  ;;  %v1226_v20 = vld [vmem:[#allocation3 + $0xc] sm:$0x1] }
  0xe5   : > { %472 = vst.msk [vmem:[#allocation2 + $0x14] sm:$0xf] %vm381_vm6, %v470_v33  ;;  %v452_v43 = vpop.permute.xlu1 %451  ;;  %v2762_v44 = vld [vmem:[#allocation2 + $0x8] sm:$0xff] }
  0xe6   : > { %v2748_v11 = vld [vmem:[#allocation2 + $0x8] sm:$0xff]  ;;  %454 = vst.msk [vmem:[#allocation2 + $0x10] sm:$0xf] %vm381_vm6, %v452_v43  ;;  %2395 = vrot.lane.b32.xlu1 %v2762_v44, %s2900_s18 }
  0xe7   : > { %2659 = vmatmul.msk.bf16.gmra.mxu0 %vm1083_vm13, %v2748_v11  ;;  %v2002_v43 = vld [vmem:[#allocation3 + $0x48] sm:$0xf] }
  0xe8   : > { %v2132_v11 = vshrl.u32 %v2002_v43, 16 }
  0xea   : > { %v2134_v50 = vrot.slane %v2132_v11, 4 }
  0xeb   : > { %v992_v45 = vpop.permute.xlu2 %991  ;;  %v541_v46 = vpop.permute.xlu0 %540 }
  0xec   : > { %543 = vst.msk [vmem:[#allocation2 + $0x10] sm:$0xf] %vm522_vm7, %v541_v46  ;;  %v1153_v46 = vld [vmem:[#allocation3 + $0x10] sm:$0x1] }
  0xed   : > { %593 = vst.msk [vmem:[#allocation2 + $0x10] sm:$0xf] %vm572_vm8, %v591_v36  ;;  %v546_v49 = vpop.permute.xlu1 %545  ;;  %v1150_v36 = vld [vmem:[#allocation3 + $0x8] sm:$0x1]  ;;  %v1154_v48 = vsel %vm3314_vm1, 0, %v1153_v46 }
  0xee   : > { %548 = vst.msk [vmem:[#allocation2 + $0x14] sm:$0xf] %vm522_vm7, %v546_v49  ;;  %v1185_v49 = vld [vmem:[#allocation3 + $0x14] sm:$0x1] }
  0xef   : > { %1155 = vst [vmem:[#allocation3 + $0x10] sm:$0x1] %v1154_v48 }
  0xf3   : > { %v488_v51 = vpop.permute.xlu2 %487  ;;  %v596_v52 = vpop.permute.xlu0 %595 }
  0xf4   : > { %598 = vst.msk [vmem:[#allocation2 + $0x14] sm:$0xf] %vm572_vm8, %v596_v52  ;;  %v1946_v52 = vld [vmem:[#allocation3 + $0x48] sm:$0xf] }
  0xf5   : > { %733 = vst.msk [vmem:[#allocation2 + $0x14] sm:$0xf] %vm642_vm9, %v731_v39  ;;  %v713_v53 = vpop.permute.xlu1 %712  ;;  %v1151_v39 = vsel %vm3314_vm1, 0, %v1150_v36  ;;  %1984 = vrot.lane.b32.xlu2 %v1946_v52, %s2902_s17 }
  0xf6   : > { %715 = vst.msk [vmem:[#allocation2 + $0x10] sm:$0xf] %vm642_vm9, %v713_v53  ;;  %v1241_v36 = vld [vmem:[#allocation3 + $0x10] sm:$0xf] }
  0xf7   : > { %1152 = vst [vmem:[#allocation3 + $0x8] sm:$0x1] %v1151_v39 }
  0xfb   : > { %v556_v55 = vpop.permute.xlu2 %555  ;;  %v802_v56 = vpop.permute.xlu0 %801 }
  0xfc   : > { %804 = vst.msk [vmem:[#allocation2 + $0x10] sm:$0xf] %vm783_vm10, %v802_v56 }
  0xfd   : > { %854 = vst.msk [vmem:[#allocation2 + $0x10] sm:$0xf] %vm833_vm11, %v852_v41  ;;  %v807_v57 = vpop.permute.xlu1 %806  ;;  %v1207_v41 = vsel %vm3323_vm5, 0, %v1206_v40 }
  0xfe   : > { %809 = vst.msk [vmem:[#allocation2 + $0x14] sm:$0xf] %vm783_vm10, %v807_v57  ;;  %v1223_v19 = vld [vmem:[#allocation3 + $0x8] sm:$0xf] }
  0xff   : > { %1208 = vst [vmem:[#allocation3 + $0x4c] sm:$0x1] %v1207_v41 }
 0x103   : > { %v749_v59 = vpop.permute.xlu2 %748  ;;  %v857_v61 = vpop.permute.xlu0 %856 }
 0x104   : > { %859 = vst.msk [vmem:[#allocation2 + $0x14] sm:$0xf] %vm833_vm11, %v857_v61 }
 0x105   : > { %994 = vst.msk [vmem:[#allocation2 + $0x14] sm:$0xf] %vm903_vm12, %v992_v45  ;;  %v974_v0 = vpop.permute.xlu1 %973  ;;  %v2135_v45 = vshll.u32 %v2002_v43, 16 }
 0x106   : > { %976 = vst.msk [vmem:[#allocation2 + $0x10] sm:$0xf] %vm903_vm12, %v974_v0  ;;  %v2003_v53 = vld [vmem:[#allocation3 + $0x4c] sm:$0x1] }
 0x107   : > { %v2137_v47 = vrot.slane %v2135_v45, 5  ;;  %v2141_v56 = vshll.u32 %v2003_v53, 16  ;;  %v2164_v0 = vld [vmem:[#allocation3 + $0x4c] sm:$0x1] }
 0x108   : > { %v2240_v3 = vrot.slane %v2164_v0, 5 }
 0x109   : > { %v2143_v58 = vrot.slane %v2141_v56, 5 }
 0x10b   : > { %v817_v6 = vpop.permute.xlu2 %816  ;;  %v337_v7 = vpop.permute.xlu0 %336 }
 0x10c   : > { %339 = vst.msk [vmem:[#allocation2 + $0x18] sm:$0xf] %vm308_vm4, %v337_v7  ;;  %v3383_v7 = vld [vmem:[%s3779_s2] ss:$0 sm:$0xff] }
 0x10d   : > { %490 = vst.msk [vmem:[#allocation2 + $0x18] sm:$0xf] %vm381_vm6, %v488_v51  ;;  %v2763_v4 = vld [vmem:[#allocation2 + $0x10] sm:$0xff]  ;;  %v342_v9 = vpop.permute.xlu1 %341  ;;  %v1186_v51 = vsel %vm3323_vm5, 0, %v1185_v49 }
 0x10e   : > { %v2749_v8 = vld [vmem:[#allocation2 + $0x10] sm:$0xff]  ;;  %344 = vst.msk [vmem:[#allocation2 + $0x1c] sm:$0xf] %vm308_vm4, %v342_v9  ;;  %2397 = vrot.lane.b32.xlu0 %v2763_v4, %s2900_s18  ;;  %vm1550_vm4 = vcmask 1042432  }
 0x10f   : > { %2660 = vmatmul.msk.bf16.gmra.mxu0 %vm1083_vm13, %v2749_v8  ;;  %vm3338_vm0 = vmor %vm1550_vm4, %vm1551_vm15  ;;  %1187 = vst [vmem:[#allocation3 + $0x14] sm:$0x1] %v1186_v51 }
 0x110   : > { %v1556_v31 = vsel %vm3338_vm0, %v2662_v24, %v1555_v29  ;;  %v2241_v5 = vsel %vm3338_vm0, %v2685_v1, %v2240_v3  ;;  %v1156_v29 = vld [vmem:[#allocation3 + $0x18] sm:$0x1] }
 0x111   : > { %1557 = vrot.lane.b32.xlu1 %v1556_v31, %s2894_s20  ;;  %v1157_v32 = vsel %vm3314_vm1, 0, %v1156_v29 }
 0x112   : > { %1158 = vst [vmem:[#allocation3 + $0x18] sm:$0x1] %v1157_v32 }
 0x113   : > { %v3334_v17 = vpop.permute.xlu2 %1009  ;;  %v506_v18 = vpop.permute.xlu0 %505 }
 0x114   : > { %508 = vst.msk [vmem:[#allocation2 + $0x1c] sm:$0xf] %vm381_vm6, %v506_v18  ;;  %vm2401_vm6 = vcmask 31744  }
 0x115   : > { %558 = vst.msk [vmem:[#allocation2 + $0x1c] sm:$0xf] %vm522_vm7, %v556_v55  ;;  %v551_v60 = vpop.permute.xlu1 %550  ;;  %v2138_v55 = vor.u32 %v2137_v47, %v2134_v50 }
 0x116   : > { %553 = vst.msk [vmem:[#allocation2 + $0x18] sm:$0xf] %vm522_vm7, %v551_v60  ;;  %1401 = vrot.lane.b32.xlu0 %v1400_v30, %s2895_s21  ;;  %vm3390_vm7 = vmand %vm1137_vm14, %vm1177_vm3  ;;  %v1188_v30 = vld [vmem:[#allocation3 + $0x1c] sm:$0x1]  ;;  %v1244_v37 = vld [vmem:[#allocation3 + $0x14] sm:$0x1] }
 0x117   : > { %v2139_v57 = vrot.slane %v2138_v55, 4  ;;  %vm2174_vm3 = vcmask 585216  }
 0x119   : > { %v2144_v61 = vsel %vm3018_vm2, %v2139_v57, %v2143_v58  ;;  %2242 = vrot.lane.b32.xlu1 %v2241_v5, %s2904_s14 }
 0x11b   : > { %v601_v33 = vpop.permute.xlu0 %600  ;;  %v2394_v34 = vpop.permute.xlu2 %2393 }
 0x11c   : > { %603 = vst.msk [vmem:[#allocation2 + $0x18] sm:$0xf] %vm572_vm8, %v601_v33  ;;  %2738 = vmatmul.msk.bf16.vlgmr.msra.gmra.mxu2 %vm2401_vm6, %v2394_v34  ;;  %v1189_v33 = vsel %vm3323_vm5, 0, %v1188_v30 }
 0x11d   : > { %751 = vst.msk [vmem:[#allocation2 + $0x18] sm:$0xf] %vm642_vm9, %v749_v59  ;;  %v606_v38 = vpop.permute.xlu1 %605 }
 0x11e   : > { %608 = vst.msk [vmem:[#allocation2 + $0x1c] sm:$0xf] %vm572_vm8, %v606_v38  ;;  %2145 = vrot.lane.b32.xlu0 %v2144_v61, %s2903_s13  ;;  %v1159_v61 = vld [vmem:[#allocation3 + $0x20] sm:$0x1]  ;;  %vm1404_vm8 = vcmask 126016  }
 0x11f   : > { %1190 = vst [vmem:[#allocation3 + $0x1c] sm:$0x1] %v1189_v33 }
 0x123   : > { %v767_v42 = vpop.permute.xlu0 %766 }
 0x124   : > { %769 = vst.msk [vmem:[#allocation2 + $0x1c] sm:$0xf] %vm642_vm9, %v767_v42  ;;  %vm1560_vm9 = vcmask 191616  }
 0x125   : > { %819 = vst.msk [vmem:[#allocation2 + $0x1c] sm:$0xf] %vm783_vm10, %v817_v6  ;;  %v812_v44 = vpop.permute.xlu1 %811 }
 0x126   : > { %814 = vst.msk [vmem:[#allocation2 + $0x18] sm:$0xf] %vm783_vm10, %v812_v44  ;;  %vm1644_vm10 = vcmask 257216  }
 0x12b   : > { %v862_v54 = vpop.permute.xlu0 %861 }
 0x12c   : > { %864 = vst.msk [vmem:[#allocation2 + $0x18] sm:$0xf] %vm833_vm11, %v862_v54 }
 0x12d   : > { %1012 = vst.msk [vmem:[#allocation2 + $0x18] sm:$0xf] %vm903_vm12, %v3334_v17  ;;  %v867_v59 = vpop.permute.xlu1 %866 }
 0x12e   : > { %869 = vst.msk [vmem:[#allocation2 + $0x1c] sm:$0xf] %vm833_vm11, %v867_v59  ;;  %vm1714_vm11 = vcmask 322816  }
 0x133   : > { %v1028_v6 = vpop.permute.xlu0 %1027 }
 0x134   : > { %1030 = vst.msk [vmem:[#allocation2 + $0x1c] sm:$0xf] %vm903_vm12, %v1028_v6  ;;  %v1191_v6 = vld [vmem:[#allocation3 + $0x24] sm:$0x1]  ;;  %vm1867_vm12 = vcmask 388416  }
 0x139   : > { %v1109_v4 = vpop.f32.mrf.mxu0 }
 0x13a   : > { %v1110_v8 = vadd.f32 %v3383_v7, %v1109_v4 }
 0x13b   : > { %v2750_v9 = vld [vmem:[#allocation2 + $0x18] sm:$0xff] }
 0x13c   : > { %v1129_v10 = vmax.f32 %v1110_v8, 0.0  ;;  %2661 = vmatmul.msk.bf16.gmra.mxu0 %vm1083_vm13, %v2750_v9  ;;  %vm1951_vm13 = vcmask 454016  }
 0x13e   : > { %v1209_v12 = vpack.c.bf16 %v1129_v10, %v1129_v10  ;;  %v1160_v10 = vsel %vm3314_vm1, 0, %v1159_v61 }
 0x13f   : > { %1161 = vst [vmem:[#allocation3 + $0x20] sm:$0x1] %v1160_v10 }
 0x140   : > { %v1211_v13 = vshrl.u32 %v1209_v12, 16  ;;  %v1214_v16 = vshll.u32 %v1209_v12, 16 }
 0x141   : > { %v1111_v14 = vpop.f32.mrf.mxu0 }
 0x142   : > { %v1213_v15 = vrot.slane %v1211_v13, 7  ;;  %v1112_v17 = vadd.f32 %v3383_v7, %v1111_v14 }
 0x144   : > { %v1216_v21 = vor.u32 %v1214_v16, %v1213_v15  ;;  %v1217_v22 = vrot.slane %v1213_v15, 4  ;;  %v1130_v23 = vmax.f32 %v1112_v17, 0.0 }
 0x146   : > { %v1224_v24 = vsel %vm3390_vm7, %v1216_v21, %v1223_v19  ;;  %v1227_v60 = vsel %vm3314_vm1, %v1217_v22, %v1226_v20  ;;  %v1229_v25 = vpack.c.bf16 %v1130_v23, %v1130_v23  ;;  %v1192_v20 = vsel %vm3323_vm5, 0, %v1191_v6 }
 0x147   : > { %1225 = vst [vmem:[#allocation3 + $0x8] sm:$0xf] %v1224_v24 }
 0x148   : > { %1228 = vst [vmem:[#allocation3 + $0xc] sm:$0x1] %v1227_v60  ;;  %v1231_v31 = vshrl.u32 %v1229_v25, 16  ;;  %v1234_v35 = vshll.u32 %v1229_v25, 16 }
 0x149   : > { %1193 = vst [vmem:[#allocation3 + $0x24] sm:$0x1] %v1192_v20 }
 0x14a   : > { %v1233_v34 = vrot.slane %v1231_v31, 7 }
 0x14c   : > { %v1236_v38 = vor.u32 %v1234_v35, %v1233_v34  ;;  %v1237_v39 = vrot.slane %v1233_v34, 4 }
 0x14e   : > { %v1242_v28 = vsel %vm3390_vm7, %v1236_v38, %v1241_v36  ;;  %v1245_v40 = vsel %vm3314_vm1, %v1237_v39, %v1244_v37  ;;  %v1632_v41 = vld [vmem:[#allocation3 + $0x8] sm:$0xf] }
 0x14f   : > { %v1842_v42 = vld [vmem:[#allocation3 + $0x8] sm:$0xe]  ;;  %1243 = vst [vmem:[#allocation3 + $0x10] sm:$0xf] %v1242_v28  ;;  %1641 = vrot.lane.b32.xlu2 %v1632_v41, %s2897_s23  ;;  %v1843_v44 = vld [vmem:[#allocation3 + $0xc] sm:$0x1] }
 0x150   : > { %v1534_v43 = vld [vmem:[#allocation3 + $0x8] sm:$0xe]  ;;  %v2670_v11 = vrot.slane %v1842_v42, 9  ;;  %1246 = vst [vmem:[#allocation3 + $0x14] sm:$0x1] %v1245_v40  ;;  %v1862_v45 = vrot.slane %v1843_v44, 5 }
 0x151   : > { %v1535_v46 = vld [vmem:[#allocation3 + $0xc] sm:$0x1]  ;;  %v2663_v48 = vrot.slane %v1534_v43, 9  ;;  %v1373_v49 = vld [vmem:[#allocation3 + $0x8] sm:$0xf] }
 0x152   : > { %v1374_v50 = vld [vmem:[#allocation3 + $0xc] sm:$0x1]  ;;  %v1863_v51 = vsel %vm3338_vm0, %v2670_v11, %v1862_v45  ;;  %v1566_v52 = vrot.slane %v1535_v46, 5  ;;  %v1407_v47 = vshrl.u32 %v1373_v49, 16  ;;  %v1410_v53 = vshll.u32 %v1373_v49, 16 }
 0x153   : > { %v1681_v54 = vld [vmem:[#allocation3 + $0x8] sm:$0xf]  ;;  %1864 = vrot.lane.b32.xlu0 %v1863_v51, %s2905_s9  ;;  %v1416_v59 = vshll.u32 %v1374_v50, 16  ;;  %v1682_v19 = vld [vmem:[#allocation3 + $0xc] sm:$0x1] }
 0x154   : > { %v1698_v55 = vshrl.u32 %v1681_v54, 16  ;;  %v1701_v56 = vshll.u32 %v1681_v54, 16  ;;  %v1409_v57 = vrot.slane %v1407_v47, 4  ;;  %v1412_v58 = vrot.slane %v1410_v53, 5  ;;  %v1356_v32 = vld [vmem:[#allocation3 + $0x8] sm:$0xf] }
 0x155   : > { %v1567_v63 = vsel %vm3338_vm0, %v2663_v48, %v1566_v52  ;;  %v1418_v13 = vrot.slane %v1416_v59, 5  ;;  %v1707_v29 = vshll.u32 %v1682_v19, 16  ;;  %1364 = vst.msk [vmem:[#allocation4 + $0x4] sm:$0xf] %vm1137_vm14, %v1356_v32 }
 0x156   : > { %v1413_v0 = vor.u32 %v1412_v58, %v1409_v57  ;;  %v1683_v1 = vld [vmem:[#allocation3 + $0x10] sm:$0xf]  ;;  %v1700_v3 = vrot.slane %v1698_v55, 4  ;;  %v1703_v5 = vrot.slane %v1701_v56, 5 }
 0x157   : > { %1568 = vrot.lane.b32.xlu2 %v1567_v63, %s2894_s20  ;;  %v1684_v4 = vld [vmem:[#allocation3 + $0x14] sm:$0x1]  ;;  %v1717_v8 = vshrl.u32 %v1683_v1, 16  ;;  %v1720_v9 = vshll.u32 %v1683_v1, 16  ;;  %v1633_v22 = vld [vmem:[#allocation3 + $0x10] sm:$0xf] }
 0x158   : > { %v1414_v12 = vrot.slane %v1413_v0, 4  ;;  %v2396_v14 = vpop.permute.xlu1 %2395  ;;  %v1726_v17 = vshll.u32 %v1684_v4, 16  ;;  %v1704_v23 = vor.u32 %v1703_v5, %v1700_v3  ;;  %v1536_v60 = vld [vmem:[#allocation3 + $0x10] sm:$0xe]  ;;  %v1537_v25 = vld [vmem:[#allocation3 + $0x14] sm:$0x1] }
 0x159   : > { %v1719_v15 = vrot.slane %v1717_v8, 4  ;;  %v1722_v16 = vrot.slane %v1720_v9, 5  ;;  %2739 = vmatmul.msk.bf16.gmra.mxu2 %vm2401_vm6, %v2396_v14  ;;  %v1357_v33 = vld [vmem:[#allocation3 + $0x10] sm:$0xf]  ;;  %v2664_v35 = vrot.slane %v1536_v60, 9  ;;  %v1576_v36 = vrot.slane %v1537_v25, 5 }
 0x15a   : > { %v1419_v21 = vsel %vm3018_vm2, %v1414_v12, %v1418_v13  ;;  %v1728_v31 = vrot.slane %v1726_v17, 5  ;;  %v1705_v34 = vrot.slane %v1704_v23, 4  ;;  %v1375_v38 = vld [vmem:[#allocation3 + $0x10] sm:$0xf]  ;;  %1365 = vst.msk [vmem:[#allocation4 + $0x8] sm:$0xf] %vm1137_vm14, %v1357_v33 }
 0x15b   : > { %1420 = vrot.lane.b32.xlu1 %v1419_v21, %s2895_s21  ;;  %1647 = vrot.lane.b32.xlu0 %v1633_v22, %s2897_s23  ;;  %v1723_v24 = vor.u32 %v1722_v16, %v1719_v15  ;;  %v1709_v39 = vrot.slane %v1707_v29, 5  ;;  %v1577_v40 = vsel %vm3338_vm0, %v2664_v35, %v1576_v36  ;;  %v1425_v41 = vshrl.u32 %v1375_v38, 16  ;;  %v1844_v43 = vld [vmem:[#allocation3 + $0x10] sm:$0xe]  ;;  %v1845_v44 = vld [vmem:[#allocation3 + $0x14] sm:$0x1] }
 0x15c   : > { %v1428_v42 = vshll.u32 %v1375_v38, 16  ;;  %v2671_v46 = vrot.slane %v1844_v43, 9  ;;  %v1873_v48 = vrot.slane %v1845_v44, 5  ;;  %v1376_v47 = vld [vmem:[#allocation3 + $0x14] sm:$0x1] }
 0x15d   : > { %v1724_v30 = vrot.slane %v1723_v24, 4  ;;  %v1710_v28 = vsel %vm3018_vm2, %v1705_v34, %v1709_v39  ;;  %v1427_v49 = vrot.slane %v1425_v41, 4  ;;  %v1434_v57 = vshll.u32 %v1376_v47, 16  ;;  %v1259_v63 = vld [vmem:[#allocation3 + $0x18] sm:$0xf] }
 0x15e   : > { %v1430_v50 = vrot.slane %v1428_v42, 5  ;;  %v1874_v53 = vsel %vm3338_vm0, %v2671_v46, %v1873_v48  ;;  %v1262_v0 = vld [vmem:[#allocation3 + $0x1c] sm:$0x1]  ;;  %v1162_v4 = vld [vmem:[#allocation3 + $0x28] sm:$0x1] }
 0x15f   : > { %v1729_v37 = vsel %vm3018_vm2, %v1724_v30, %v1728_v31  ;;  %v1194_v8 = vld [vmem:[#allocation3 + $0x2c] sm:$0x1]  ;;  %v1436_v9 = vrot.slane %v1434_v57, 5  ;;  %v1163_v10 = vsel %vm3314_vm1, 0, %v1162_v4  ;;  %v1277_v21 = vld [vmem:[#allocation3 + $0x20] sm:$0xf] }
 0x160   : > { %1730 = vrot.lane.b32.xlu2 %v1729_v37, %s2898_s29  ;;  %v1431_v54 = vor.u32 %v1430_v50, %v1427_v49  ;;  %1164 = vst [vmem:[#allocation3 + $0x28] sm:$0x1] %v1163_v10  ;;  %v1195_v15 = vsel %vm3323_vm5, 0, %v1194_v8  ;;  %v1280_v22 = vld [vmem:[#allocation3 + $0x24] sm:$0x1] }
 0x161   : > { %1196 = vst [vmem:[#allocation3 + $0x2c] sm:$0x1] %v1195_v15 }
 0x162   : > { %v1432_v1 = vrot.slane %v1431_v54, 4 }
 0x163   : > { %1711 = vrot.lane.b32.xlu1 %v1710_v28, %s2898_s29  ;;  %1578 = vrot.lane.b32.xlu0 %v1577_v40, %s2894_s20 }
 0x164   : > { %v1114_v11 = vpop.f32.mrf.mxu0  ;;  %v1437_v16 = vsel %vm3018_vm2, %v1432_v1, %v1436_v9 }
 0x165   : > { %v1115_v45 = vadd.f32 %v3383_v7, %v1114_v11 }
 0x167   : > { %v1131_v51 = vmax.f32 %v1115_v45, 0.0 }
 0x169   : > { %v1247_v52 = vpack.c.bf16 %v1131_v51, %v1131_v51  ;;  %v1165_v51 = vld [vmem:[#allocation3 + $0x30] sm:$0x1] }
 0x16b   : > { %v1249_v55 = vshrl.u32 %v1247_v52, 16  ;;  %1875 = vrot.lane.b32.xlu1 %v1874_v53, %s2905_s9  ;;  %v1252_v59 = vshll.u32 %v1247_v52, 16  ;;  %v1197_v52 = vld [vmem:[#allocation3 + $0x34] sm:$0x1] }
 0x16c   : > { %v1116_v56 = vpop.f32.mrf.mxu0  ;;  %v1198_v9 = vsel %vm3323_vm5, 0, %v1197_v52 }
 0x16d   : > { %v1251_v58 = vrot.slane %v1249_v55, 7  ;;  %v1117_v61 = vadd.f32 %v3383_v7, %v1116_v56  ;;  %1199 = vst [vmem:[#allocation3 + $0x34] sm:$0x1] %v1198_v9 }
 0x16f   : > { %v1254_v3 = vor.u32 %v1252_v59, %v1251_v58  ;;  %v1255_v5 = vrot.slane %v1251_v58, 4  ;;  %v1132_v6 = vmax.f32 %v1117_v61, 0.0 }
 0x171   : > { %v1260_v12 = vsel %vm3390_vm7, %v1254_v3, %v1259_v63  ;;  %v1263_v13 = vsel %vm3314_vm1, %v1255_v5, %v1262_v0  ;;  %v1265_v14 = vpack.c.bf16 %v1132_v6, %v1132_v6  ;;  %v1166_v5 = vsel %vm3314_vm1, 0, %v1165_v51 }
 0x172   : > { %1261 = vst [vmem:[#allocation3 + $0x18] sm:$0xf] %v1260_v12 }
 0x173   : > { %1264 = vst [vmem:[#allocation3 + $0x1c] sm:$0x1] %v1263_v13  ;;  %v1267_v17 = vshrl.u32 %v1265_v14, 16  ;;  %1438 = vrot.lane.b32.xlu1 %v1437_v16, %s2895_s21  ;;  %v1270_v20 = vshll.u32 %v1265_v14, 16 }
 0x174   : > { %1167 = vst [vmem:[#allocation3 + $0x30] sm:$0x1] %v1166_v5 }
 0x175   : > { %v1269_v19 = vrot.slane %v1267_v17, 7 }
 0x177   : > { %v1272_v23 = vor.u32 %v1270_v20, %v1269_v19  ;;  %v1273_v24 = vrot.slane %v1269_v19, 4 }
 0x179   : > { %v1278_v60 = vsel %vm3390_vm7, %v1272_v23, %v1277_v21  ;;  %v1281_v25 = vsel %vm3314_vm1, %v1273_v24, %v1280_v22  ;;  %v1634_v29 = vld [vmem:[#allocation3 + $0x18] sm:$0xf] }
 0x17a   : > { %v1538_v30 = vld [vmem:[#allocation3 + $0x18] sm:$0xe]  ;;  %1279 = vst [vmem:[#allocation3 + $0x20] sm:$0xf] %v1278_v60  ;;  %1652 = vrot.lane.b32.xlu0 %v1634_v29, %s2897_s23  ;;  %v1539_v32 = vld [vmem:[#allocation3 + $0x1c] sm:$0x1] }
 0x17b   : > { %v1377_v31 = vld [vmem:[#allocation3 + $0x18] sm:$0xf]  ;;  %v2665_v33 = vrot.slane %v1538_v30, 9  ;;  %1282 = vst [vmem:[#allocation3 + $0x24] sm:$0x1] %v1281_v25  ;;  %v1586_v35 = vrot.slane %v1539_v32, 5 }
 0x17c   : > { %v1443_v34 = vshrl.u32 %v1377_v31, 16  ;;  %v1378_v36 = vld [vmem:[#allocation3 + $0x1c] sm:$0x1]  ;;  %v1446_v37 = vshll.u32 %v1377_v31, 16  ;;  %v1846_v39 = vld [vmem:[#allocation3 + $0x18] sm:$0xe] }
 0x17d   : > { %v1847_v28 = vld [vmem:[#allocation3 + $0x1c] sm:$0x1]  ;;  %v1587_v40 = vsel %vm3338_vm0, %v2665_v33, %v1586_v35  ;;  %v1452_v42 = vshll.u32 %v1378_v36, 16  ;;  %v1685_v43 = vld [vmem:[#allocation3 + $0x18] sm:$0xf]  ;;  %v2672_v46 = vrot.slane %v1846_v39, 9 }
 0x17e   : > { %v1445_v38 = vrot.slane %v1443_v34, 4  ;;  %v1448_v41 = vrot.slane %v1446_v37, 5  ;;  %1588 = vrot.lane.b32.xlu1 %v1587_v40, %s2894_s20  ;;  %v1735_v44 = vshrl.u32 %v1685_v43, 16  ;;  %v1738_v11 = vshll.u32 %v1685_v43, 16  ;;  %v1686_v61 = vld [vmem:[#allocation3 + $0x1c] sm:$0x1] }
 0x17f   : > { %v1883_v48 = vrot.slane %v1847_v28, 5  ;;  %v1454_v55 = vrot.slane %v1452_v42, 5  ;;  %v1744_v12 = vshll.u32 %v1686_v61, 16  ;;  %v1355_v60 = vld [vmem:[#allocation3] sm:$0xf] }
 0x180   : > { %v1449_v45 = vor.u32 %v1448_v41, %v1445_v38  ;;  %v1737_v49 = vrot.slane %v1735_v44, 4  ;;  %v1740_v50 = vrot.slane %v1738_v11, 5  ;;  %v2398_v47 = vpop.permute.xlu0 %2397  ;;  %1363 = vst.msk [vmem:[#allocation4] sm:$0xf] %vm1137_vm14, %v1355_v60  ;;  %v1358_v42 = vld [vmem:[#allocation3 + $0x18] sm:$0xf] }
 0x181   : > { %v1941_v53 = vld [vmem:[#allocation3 + $0x20] sm:$0xf]  ;;  %2740 = vmatmul.msk.bf16.gmra.mxu2 %vm2401_vm6, %v2398_v47  ;;  %v1884_v10 = vsel %vm3338_vm0, %v2672_v46, %v1883_v48  ;;  %v1746_v21 = vrot.slane %v1744_v12, 5  ;;  %1366 = vst.msk [vmem:[#allocation4 + $0xc] sm:$0xf] %vm1137_vm14, %v1358_v42 }
 0x182   : > { %v1450_v54 = vrot.slane %v1449_v45, 4  ;;  %v1687_v56 = vld [vmem:[#allocation3 + $0x20] sm:$0xf]  ;;  %1959 = vrot.lane.b32.xlu0 %v1941_v53, %s2902_s17  ;;  %v1688_v57 = vld [vmem:[#allocation3 + $0x24] sm:$0x1]  ;;  %v1741_v1 = vor.u32 %v1740_v50, %v1737_v49 }
 0x183   : > { %v1753_v58 = vshrl.u32 %v1687_v56, 16  ;;  %v1756_v59 = vshll.u32 %v1687_v56, 16  ;;  %v1762_v0 = vshll.u32 %v1688_v57, 16  ;;  %v1379_v3 = vld [vmem:[#allocation3 + $0x20] sm:$0xf]  ;;  %v1558_v29 = vpop.permute.xlu1 %1557 }
 0x184   : > { %v1455_v63 = vsel %vm3018_vm2, %v1450_v54, %v1454_v55  ;;  %v1461_v8 = vshrl.u32 %v1379_v3, 16  ;;  %v1464_v13 = vshll.u32 %v1379_v3, 16  ;;  %v1742_v16 = vrot.slane %v1741_v1, 4  ;;  %v1380_v22 = vld [vmem:[#allocation3 + $0x24] sm:$0x1] }
 0x185   : > { %1456 = vrot.lane.b32.xlu2 %v1455_v63, %s2895_s21  ;;  %v1755_v6 = vrot.slane %v1753_v58, 4  ;;  %v1758_v4 = vrot.slane %v1756_v59, 5  ;;  %v1764_v20 = vrot.slane %v1762_v0, 5  ;;  %v1848_v31 = vld [vmem:[#allocation3 + $0x20] sm:$0xe]  ;;  %v1470_v33 = vshll.u32 %v1380_v22, 16 }
 0x186   : > { %1885 = vrot.lane.b32.xlu1 %v1884_v10, %s2905_s9  ;;  %v1463_v15 = vrot.slane %v1461_v8, 4  ;;  %v1466_v17 = vrot.slane %v1464_v13, 5  ;;  %v1747_v30 = vsel %vm3018_vm2, %v1742_v16, %v1746_v21  ;;  %v1849_v34 = vld [vmem:[#allocation3 + $0x24] sm:$0x1]  ;;  %v1635_v36 = vld [vmem:[#allocation3 + $0x20] sm:$0xf] }
 0x187   : > { %v1759_v14 = vor.u32 %v1758_v4, %v1755_v6  ;;  %v2153_v38 = vld [vmem:[#allocation3 + $0x20] sm:$0xe]  ;;  %v2154_v39 = vld [vmem:[#allocation3 + $0x24] sm:$0x1]  ;;  %v2673_v40 = vrot.slane %v1848_v31, 9  ;;  %v1893_v41 = vrot.slane %v1849_v34, 5 }
 0x188   : > { %v1467_v24 = vor.u32 %v1466_v17, %v1463_v15  ;;  %v1402_v25 = vpop.permute.xlu0 %1401  ;;  %v1472_v43 = vrot.slane %v1470_v33, 5  ;;  %v2680_v11 = vrot.slane %v2153_v38, 9  ;;  %v2190_v45 = vrot.slane %v2154_v39, 5  ;;  %v1359_v48 = vld [vmem:[#allocation3 + $0x20] sm:$0xf] }
 0x189   : > { %v1760_v19 = vrot.slane %v1759_v14, 4  ;;  %1405 = vst.msk [vmem:[#allocation4] sm:$0xf] %vm1404_vm8, %v1402_v25  ;;  %v1894_v51 = vsel %vm3338_vm0, %v2673_v40, %v1893_v41  ;;  %v1540_v52 = vld [vmem:[#allocation3 + $0x20] sm:$0xe] }
 0x18a   : > { %1561 = vst.msk [vmem:[#allocation4] sm:$0xf] %vm1560_vm9, %v1558_v29  ;;  %v1468_v37 = vrot.slane %v1467_v24, 4  ;;  %v1541_v53 = vld [vmem:[#allocation3 + $0x24] sm:$0x1]  ;;  %v2191_v56 = vsel %vm3338_vm0, %v2680_v11, %v2190_v45  ;;  %v2666_v59 = vrot.slane %v1540_v52, 9  ;;  %v3503_v24 = vpop.permute.xlu2 %1984 }
 0x18b   : > { %v1765_v23 = vsel %vm3018_vm2, %v1760_v19, %v1764_v20  ;;  %1367 = vst.msk [vmem:[#allocation4 + $0x10] sm:$0xf] %vm1137_vm14, %v1359_v48  ;;  %v1295_v57 = vld [vmem:[#allocation3 + $0x28] sm:$0xf]  ;;  %v1298_v58 = vld [vmem:[#allocation3 + $0x2c] sm:$0x1] }
 0x18c   : > { %1766 = vrot.lane.b32.xlu0 %v1765_v23, %s2898_s29  ;;  %v1119_v32 = vpop.f32.mrf.mxu0  ;;  %v1473_v46 = vsel %vm3018_vm2, %v1468_v37, %v1472_v43  ;;  %v1596_v1 = vrot.slane %v1541_v53, 5  ;;  %v1992_v3 = vld [vmem:[#allocation3 + $0x20] sm:$0xf]  ;;  %v1168_v13 = vld [vmem:[#allocation3 + $0x38] sm:$0x1] }
 0x18d   : > { %1748 = vrot.lane.b32.xlu2 %v1747_v30, %s2898_s29  ;;  %v1120_v35 = vadd.f32 %v3383_v7, %v1119_v32  ;;  %v2042_v10 = vshrl.u32 %v1992_v3, 16  ;;  %v2045_v12 = vshll.u32 %v1992_v3, 16  ;;  %v1200_v14 = vld [vmem:[#allocation3 + $0x3c] sm:$0x1]  ;;  %v1169_v17 = vsel %vm3314_vm1, 0, %v1168_v13 }
 0x18e   : > { %1657 = vrot.lane.b32.xlu1 %v1635_v36, %s2897_s23  ;;  %v1597_v9 = vsel %vm3338_vm0, %v2666_v59, %v1596_v1  ;;  %v1201_v19 = vsel %vm3323_vm5, 0, %v1200_v14  ;;  %v1313_v20 = vld [vmem:[#allocation3 + $0x30] sm:$0xf]  ;;  %v1316_v21 = vld [vmem:[#allocation3 + $0x34] sm:$0x1] }
 0x18f   : > { %v1133_v28 = vmax.f32 %v1120_v35, 0.0  ;;  %1170 = vst [vmem:[#allocation3 + $0x38] sm:$0x1] %v1169_v17  ;;  %v2044_v60 = vrot.slane %v2042_v10, 4  ;;  %v2047_v25 = vrot.slane %v2045_v12, 5 }
 0x190   : > { %1202 = vst [vmem:[#allocation3 + $0x3c] sm:$0x1] %v1201_v19  ;;  %v1993_v29 = vld [vmem:[#allocation3 + $0x24] sm:$0x1]  ;;  %v1171_v13 = vld [vmem:[#allocation3 + $0x40] sm:$0x1] }
 0x191   : > { %v1283_v44 = vpack.c.bf16 %v1133_v28, %v1133_v28  ;;  %v2048_v38 = vor.u32 %v2047_v25, %v2044_v60  ;;  %v2051_v43 = vshll.u32 %v1993_v29, 16  ;;  %v1172_v14 = vsel %vm3314_vm1, 0, %v1171_v13 }
 0x192   : > { %1173 = vst [vmem:[#allocation3 + $0x40] sm:$0x1] %v1172_v14 }
 0x193   : > { %v1285_v49 = vshrl.u32 %v1283_v44, 16  ;;  %v1288_v50 = vshll.u32 %v1283_v44, 16 }
 0x194   : > { %1474 = vrot.lane.b32.xlu0 %v1473_v46, %s2895_s21  ;;  %v1121_v47 = vpop.f32.mrf.mxu0 }
 0x195   : > { %1895 = vrot.lane.b32.xlu2 %v1894_v51, %s2905_s9  ;;  %v1287_v54 = vrot.slane %v1285_v49, 7  ;;  %v1122_v55 = vadd.f32 %v3383_v7, %v1121_v47  ;;  %v2049_v49 = vrot.slane %v2048_v38, 4 }
 0x196   : > { %2192 = vrot.lane.b32.xlu1 %v2191_v56, %s2904_s14 }
 0x197   : > { %v1290_v61 = vor.u32 %v1288_v50, %v1287_v54  ;;  %v1291_v63 = vrot.slane %v1287_v54, 4  ;;  %v1134_v0 = vmax.f32 %v1122_v55, 0.0  ;;  %v2053_v55 = vrot.slane %v2051_v43, 5 }
 0x199   : > { %v1296_v5 = vsel %vm3390_vm7, %v1290_v61, %v1295_v57  ;;  %v1299_v6 = vsel %vm3314_vm1, %v1291_v63, %v1298_v58  ;;  %v1301_v4 = vpack.c.bf16 %v1134_v0, %v1134_v0  ;;  %v2054_v0 = vsel %vm3018_vm2, %v2049_v49, %v2053_v55  ;;  %v3538_v49 = vpop.permute.xlu0 %2145 }
 0x19a   : > { %1297 = vst [vmem:[#allocation3 + $0x28] sm:$0xf] %v1296_v5 }
 0x19b   : > { %1300 = vst [vmem:[#allocation3 + $0x2c] sm:$0x1] %v1299_v6  ;;  %v1303_v8 = vshrl.u32 %v1301_v4, 16  ;;  %v1306_v16 = vshll.u32 %v1301_v4, 16 }
 0x19d   : > { %1598 = vrot.lane.b32.xlu2 %v1597_v9, %s2894_s20  ;;  %v1305_v15 = vrot.slane %v1303_v8, 7 }
 0x19f   : > { %v1308_v22 = vor.u32 %v1306_v16, %v1305_v15  ;;  %v1309_v23 = vrot.slane %v1305_v15, 4  ;;  %v1203_v15 = vld [vmem:[#allocation3 + $0x44] sm:$0x1] }
 0x1a0   : > { %v1204_v19 = vsel %vm3323_vm5, 0, %v1203_v15  ;;  %vm2314_vm5 = vcmask 588800  }
 0x1a1   : > { %v1314_v30 = vsel %vm3390_vm7, %v1308_v22, %v1313_v20  ;;  %v1317_v31 = vsel %vm3314_vm1, %v1309_v23, %v1316_v21  ;;  %v1636_v32 = vld [vmem:[#allocation3 + $0x28] sm:$0xf]  ;;  %1205 = vst [vmem:[#allocation3 + $0x44] sm:$0x1] %v1204_v19  ;;  %v1334_v19 = vld [vmem:[#allocation3 + $0x3c] sm:$0x1] }
 0x1a2   : > { %v1942_v33 = vld [vmem:[#allocation3 + $0x28] sm:$0xf]  ;;  %1315 = vst [vmem:[#allocation3 + $0x30] sm:$0xf] %v1314_v30  ;;  %v1543_v35 = vld [vmem:[#allocation3 + $0x2c] sm:$0x1] }
 0x1a3   : > { %v1542_v34 = vld [vmem:[#allocation3 + $0x28] sm:$0xe]  ;;  %1964 = vrot.lane.b32.xlu1 %v1942_v33, %s2902_s17  ;;  %1318 = vst [vmem:[#allocation3 + $0x34] sm:$0x1] %v1317_v31  ;;  %v1606_v37 = vrot.slane %v1543_v35, 5 }
 0x1a4   : > { %v2667_v36 = vrot.slane %v1542_v34, 9  ;;  %v1381_v39 = vld [vmem:[#allocation3 + $0x28] sm:$0xf]  ;;  %v1382_v28 = vld [vmem:[#allocation3 + $0x2c] sm:$0x1] }
 0x1a5   : > { %1662 = vrot.lane.b32.xlu2 %v1636_v32, %s2897_s23  ;;  %v1479_v40 = vshrl.u32 %v1381_v39, 16  ;;  %v1482_v41 = vshll.u32 %v1381_v39, 16  ;;  %v1488_v44 = vshll.u32 %v1382_v28, 16  ;;  %v1850_v46 = vld [vmem:[#allocation3 + $0x28] sm:$0xe] }
 0x1a6   : > { %v1607_v42 = vsel %vm3338_vm0, %v2667_v36, %v1606_v37  ;;  %v1851_v48 = vld [vmem:[#allocation3 + $0x2c] sm:$0x1]  ;;  %v1689_v50 = vld [vmem:[#allocation3 + $0x28] sm:$0xf]  ;;  %v2674_v56 = vrot.slane %v1850_v46, 9 }
 0x1a7   : > { %1608 = vrot.lane.b32.xlu0 %v1607_v42, %s2894_s20  ;;  %v1481_v11 = vrot.slane %v1479_v40, 4  ;;  %v1484_v45 = vrot.slane %v1482_v41, 5  ;;  %v1490_v52 = vrot.slane %v1488_v44, 5  ;;  %v1771_v47 = vshrl.u32 %v1689_v50, 16  ;;  %v1690_v58 = vld [vmem:[#allocation3 + $0x2c] sm:$0x1] }
 0x1a8   : > { %v1774_v53 = vshll.u32 %v1689_v50, 16  ;;  %v1903_v57 = vrot.slane %v1851_v48, 5  ;;  %v2155_v1 = vld [vmem:[#allocation3 + $0x28] sm:$0xe]  ;;  %v2156_v5 = vld [vmem:[#allocation3 + $0x2c] sm:$0x1] }
 0x1a9   : > { %v1485_v51 = vor.u32 %v1484_v45, %v1481_v11  ;;  %v1642_v54 = vpop.permute.xlu2 %1641  ;;  %v1773_v61 = vrot.slane %v1771_v47, 4  ;;  %v1780_v4 = vshll.u32 %v1690_v58, 16  ;;  %v1994_v8 = vld [vmem:[#allocation3 + $0x28] sm:$0xf]  ;;  %v2681_v16 = vrot.slane %v2155_v1, 9 }
 0x1aa   : > { %1645 = vst.msk [vmem:[#allocation4] sm:$0xf] %vm1644_vm10, %v1642_v54  ;;  %v1776_v63 = vrot.slane %v1774_v53, 5  ;;  %v1904_v9 = vsel %vm3338_vm0, %v2674_v56, %v1903_v57  ;;  %v2060_v10 = vshrl.u32 %v1994_v8, 16  ;;  %v2063_v12 = vshll.u32 %v1994_v8, 16 }
 0x1ab   : > { %v1486_v59 = vrot.slane %v1485_v51, 4  ;;  %v2200_v17 = vrot.slane %v2156_v5, 5  ;;  %v1782_v21 = vrot.slane %v1780_v4, 5  ;;  %v1691_v22 = vld [vmem:[#allocation3 + $0x30] sm:$0xf] }
 0x1ac   : > { %v1777_v6 = vor.u32 %v1776_v63, %v1773_v61  ;;  %v2062_v23 = vrot.slane %v2060_v10, 4  ;;  %v2065_v60 = vrot.slane %v2063_v12, 5  ;;  %v1995_v25 = vld [vmem:[#allocation3 + $0x2c] sm:$0x1]  ;;  %v1789_v30 = vshrl.u32 %v1691_v22, 16 }
 0x1ad   : > { %2055 = vrot.lane.b32.xlu2 %v2054_v0, %s2903_s13  ;;  %v1491_v3 = vsel %vm3018_vm2, %v1486_v59, %v1490_v52  ;;  %v2201_v29 = vsel %vm3338_vm0, %v2681_v16, %v2200_v17  ;;  %v1792_v31 = vshll.u32 %v1691_v22, 16  ;;  %v1852_v33 = vld [vmem:[#allocation3 + $0x30] sm:$0xe]  ;;  %v1853_v2 = vld [vmem:[#allocation3 + $0x34] sm:$0x1]  ;;  %v2069_v36 = vshll.u32 %v1995_v25, 16 }
 0x1ae   : > { %1492 = vrot.lane.b32.xlu1 %v1491_v3, %s2895_s21  ;;  %v1778_v20 = vrot.slane %v1777_v6, 4  ;;  %v1637_v34 = vld [vmem:[#allocation3 + $0x30] sm:$0xf]  ;;  %v2066_v35 = vor.u32 %v2065_v60, %v2062_v23  ;;  %v2675_v37 = vrot.slane %v1852_v33, 9  ;;  %v1913_v38 = vrot.slane %v1853_v2, 5 }
 0x1af   : > { %1905 = vrot.lane.b32.xlu0 %v1904_v9, %s2905_s9  ;;  %v1791_v39 = vrot.slane %v1789_v30, 4  ;;  %v1794_v28 = vrot.slane %v1792_v31, 5  ;;  %v1383_v40 = vld [vmem:[#allocation3 + $0x30] sm:$0xf]  ;;  %v1360_v41 = vld [vmem:[#allocation3 + $0x28] sm:$0xf] }
 0x1b0   : > { %v1783_v32 = vsel %vm3018_vm2, %v1778_v20, %v1782_v21  ;;  %v1361_v42 = vld [vmem:[#allocation3 + $0x30] sm:$0xf]  ;;  %v2067_v44 = vrot.slane %v2066_v35, 4  ;;  %v2071_v11 = vrot.slane %v2069_v36, 5  ;;  %1368 = vst.msk [vmem:[#allocation4 + $0x14] sm:$0xf] %vm1137_vm14, %v1360_v41  ;;  %v1914_v53 = vsel %vm3338_vm0, %v2675_v37, %v1913_v38  ;;  %v3550_v21 = vpop.permute.xlu1 %2242 }
 0x1b1   : > { %v1692_v46 = vld [vmem:[#allocation3 + $0x34] sm:$0x1]  ;;  %1369 = vst.msk [vmem:[#allocation4 + $0x18] sm:$0xf] %vm1137_vm14, %v1361_v42  ;;  %v1943_v48 = vld [vmem:[#allocation3 + $0x30] sm:$0xf]  ;;  %v1795_v50 = vor.u32 %v1794_v28, %v1791_v39  ;;  %v1569_v37 = vpop.permute.xlu2 %1568 }
 0x1b2   : > { %v1497_v51 = vshrl.u32 %v1383_v40, 16  ;;  %v1500_v52 = vshll.u32 %v1383_v40, 16  ;;  %v2072_v54 = vsel %vm3018_vm2, %v2067_v44, %v2071_v11  ;;  %v1798_v55 = vshll.u32 %v1692_v46, 16  ;;  %v1544_v56 = vld [vmem:[#allocation3 + $0x30] sm:$0xe] }
 0x1b3   : > { %v1545_v57 = vld [vmem:[#allocation3 + $0x34] sm:$0x1]  ;;  %v2157_v59 = vld [vmem:[#allocation3 + $0x30] sm:$0xe]  ;;  %v1796_v63 = vrot.slane %v1795_v50, 4  ;;  %v2668_v5 = vrot.slane %v1544_v56, 9 }
 0x1b4   : > { %v2158_v61 = vld [vmem:[#allocation3 + $0x34] sm:$0x1]  ;;  %v1499_v0 = vrot.slane %v1497_v51, 4  ;;  %v1502_v1 = vrot.slane %v1500_v52, 5  ;;  %v1616_v6 = vrot.slane %v1545_v57, 5  ;;  %v1800_v8 = vrot.slane %v1798_v55, 5 }
 0x1b5   : > { %2202 = vrot.lane.b32.xlu2 %v2201_v29, %s2904_s14  ;;  %v2682_v9 = vrot.slane %v2157_v59, 9  ;;  %v2210_v10 = vrot.slane %v2158_v61, 5  ;;  %v1384_v15 = vld [vmem:[#allocation3 + $0x34] sm:$0x1]  ;;  %v1996_v16 = vld [vmem:[#allocation3 + $0x30] sm:$0xf] }
 0x1b6   : > { %1784 = vrot.lane.b32.xlu1 %v1783_v32, %s2898_s29  ;;  %v1331_v17 = vld [vmem:[#allocation3 + $0x38] sm:$0xf]  ;;  %v1801_v20 = vsel %vm3018_vm2, %v1796_v63, %v1800_v8  ;;  %v1503_v22 = vor.u32 %v1502_v1, %v1499_v0  ;;  %v1617_v29 = vsel %vm3338_vm0, %v2668_v5, %v1616_v6  ;;  %v1506_v31 = vshll.u32 %v1384_v15, 16  ;;  %v1997_v41 = vld [vmem:[#allocation3 + $0x34] sm:$0x1] }
 0x1b7   : > { %1667 = vrot.lane.b32.xlu0 %v1637_v34, %s2897_s23  ;;  %v2078_v32 = vshrl.u32 %v1996_v16, 16  ;;  %v2081_v35 = vshll.u32 %v1996_v16, 16  ;;  %v1349_v44 = vld [vmem:[#allocation3 + $0x40] sm:$0xf]  ;;  %v1352_v11 = vld [vmem:[#allocation3 + $0x44] sm:$0x1] }
 0x1b8   : > { %v1504_v36 = vrot.slane %v1503_v22, 4  ;;  %v1508_v39 = vrot.slane %v1506_v31, 5  ;;  %v2087_v51 = vshll.u32 %v1997_v41, 16  ;;  %v1940_v6 = vld [vmem:[#allocation3 + $0x18] sm:$0xf] }
 0x1b9   : > { %v1124_v43 = vpop.f32.mrf.mxu0  ;;  %v2080_v42 = vrot.slane %v2078_v32, 4 }
 0x1ba   : > { %v1125_v45 = vadd.f32 %v3383_v7, %v1124_v43  ;;  %v2083_v43 = vrot.slane %v2081_v35, 5  ;;  %v1731_v62 = vpop.permute.xlu2 %1730  ;;  %v2089_v1 = vrot.slane %v2087_v51, 5 }
 0x1bc   : > { %v1135_v47 = vmax.f32 %v1125_v45, 0.0  ;;  %v1509_v45 = vsel %vm3018_vm2, %v1504_v36, %v1508_v39  ;;  %v2084_v55 = vor.u32 %v2083_v43, %v2080_v42 }
 0x1bd   : > { %1969 = vrot.lane.b32.xlu2 %v1943_v48, %s2902_s17 }
 0x1be   : > { %1915 = vrot.lane.b32.xlu1 %v1914_v53, %s2905_s9  ;;  %v1319_v58 = vpack.c.bf16 %v1135_v47, %v1135_v47  ;;  %v2085_v63 = vrot.slane %v2084_v55, 4 }
 0x1bf   : > { %2073 = vrot.lane.b32.xlu0 %v2072_v54, %s2903_s13 }
 0x1c0   : > { %v1321_v3 = vshrl.u32 %v1319_v58, 16  ;;  %v1324_v13 = vshll.u32 %v1319_v58, 16  ;;  %v2090_v16 = vsel %vm3018_vm2, %v2085_v63, %v2089_v1 }
 0x1c1   : > { %v1126_v4 = vpop.f32.mrf.mxu0 }
 0x1c2   : > { %v1323_v12 = vrot.slane %v1321_v3, 7  ;;  %v1127_v14 = vadd.f32 %v3383_v7, %v1126_v4  ;;  %v2211_v7 = vsel %vm3338_vm0, %v2682_v9, %v2210_v10 }
 0x1c4   : > { %v1326_v23 = vor.u32 %v1324_v13, %v1323_v12  ;;  %v1327_v60 = vrot.slane %v1323_v12, 4  ;;  %v1136_v25 = vmax.f32 %v1127_v14, 0.0 }
 0x1c5   : > { %1802 = vrot.lane.b32.xlu2 %v1801_v20, %s2898_s29  ;;  %v3558_v30 = vpop.permute.xlu0 %1864 }
 0x1c6   : > { %1618 = vrot.lane.b32.xlu1 %v1617_v29, %s2894_s20  ;;  %v1332_v33 = vsel %vm3390_vm7, %v1326_v23, %v1331_v17  ;;  %v1335_v2 = vsel %vm3314_vm1, %v1327_v60, %v1334_v19  ;;  %v1337_v34 = vpack.c.bf16 %v1136_v25, %v1136_v25 }
 0x1c7   : > { %2212 = vrot.lane.b32.xlu0 %v2211_v7, %s2904_s14  ;;  %1333 = vst [vmem:[#allocation3 + $0x38] sm:$0xf] %v1332_v33 }
 0x1c8   : > { %1336 = vst [vmem:[#allocation3 + $0x3c] sm:$0x1] %v1335_v2  ;;  %v1339_v38 = vshrl.u32 %v1337_v34, 16  ;;  %v1342_v40 = vshll.u32 %v1337_v34, 16 }
 0x1ca   : > { %v1341_v28 = vrot.slane %v1339_v38, 7 }
 0x1cc   : > { %v1344_v46 = vor.u32 %v1342_v40, %v1341_v28  ;;  %v1345_v48 = vrot.slane %v1341_v28, 4 }
 0x1cd   : > { %1510 = vrot.lane.b32.xlu2 %v1509_v45, %s2895_s21  ;;  %v1421_v50 = vpop.permute.xlu1 %1420  ;;  %v1648_v56 = vpop.permute.xlu0 %1647 }
 0x1ce   : > { %v1350_v52 = vsel %vm3390_vm7, %v1344_v46, %v1349_v44  ;;  %v1353_v47 = vsel %vm3314_vm1, %v1345_v48, %v1352_v11  ;;  %1423 = vst.msk [vmem:[#allocation4 + $0x4] sm:$0xf] %vm1404_vm8, %v1421_v50  ;;  %v1944_v53 = vld [vmem:[#allocation3 + $0x38] sm:$0xf]  ;;  %v1988_v50 = vld [vmem:[#allocation3 + $0x10] sm:$0xf] }
 0x1cf   : > { %v1638_v54 = vld [vmem:[#allocation3 + $0x38] sm:$0xf]  ;;  %1351 = vst [vmem:[#allocation3 + $0x40] sm:$0xf] %v1350_v52  ;;  %1974 = vrot.lane.b32.xlu0 %v1944_v53, %s2902_s17  ;;  %v1547_v58 = vld [vmem:[#allocation3 + $0x3c] sm:$0x1] }
 0x1d0   : > { %1672 = vrot.lane.b32.xlu1 %v1638_v54, %s2897_s23  ;;  %v1546_v57 = vld [vmem:[#allocation3 + $0x38] sm:$0xe]  ;;  %1354 = vst [vmem:[#allocation3 + $0x44] sm:$0x1] %v1353_v47  ;;  %v1626_v18 = vrot.slane %v1547_v58, 5  ;;  %vm2021_vm1 = vcmask 519616  }
 0x1d1   : > { %v2669_v59 = vrot.slane %v1546_v57, 9  ;;  %1571 = vst.msk [vmem:[#allocation4 + $0x4] sm:$0xf] %vm1560_vm9, %v1569_v37  ;;  %v1385_v0 = vld [vmem:[#allocation3 + $0x38] sm:$0xf] }
 0x1d2   : > { %1650 = vst.msk [vmem:[#allocation4 + $0x4] sm:$0xf] %vm1644_vm10, %v1648_v56  ;;  %v1515_v3 = vshrl.u32 %v1385_v0, 16  ;;  %v1518_v5 = vshll.u32 %v1385_v0, 16  ;;  %v1854_v4 = vld [vmem:[#allocation3 + $0x38] sm:$0xe] }
 0x1d3   : > { %v1627_v61 = vsel %vm3338_vm0, %v2669_v59, %v1626_v18  ;;  %1733 = vst.msk [vmem:[#allocation4 + $0x4] sm:$0xf] %vm1714_vm11, %v1731_v62  ;;  %v1855_v8 = vld [vmem:[#allocation3 + $0x3c] sm:$0x1]  ;;  %v2159_v14 = vld [vmem:[#allocation3 + $0x38] sm:$0xe] }
 0x1d4   : > { %v1386_v9 = vld [vmem:[#allocation3 + $0x3c] sm:$0x1]  ;;  %v1517_v12 = vrot.slane %v1515_v3, 4  ;;  %v1520_v13 = vrot.slane %v1518_v5, 5  ;;  %v1693_v15 = vld [vmem:[#allocation3 + $0x38] sm:$0xf] }
 0x1d5   : > { %1628 = vrot.lane.b32.xlu2 %v1627_v61, %s2894_s20  ;;  %v1712_v10 = vpop.permute.xlu1 %1711  ;;  %v2160_v17 = vld [vmem:[#allocation3 + $0x3c] sm:$0x1]  ;;  %v1807_v19 = vshrl.u32 %v1693_v15, 16  ;;  %v2676_v20 = vrot.slane %v1854_v4, 9  ;;  %v1923_v22 = vrot.slane %v1855_v8, 5  ;;  %v1810_v60 = vshll.u32 %v1693_v15, 16  ;;  %v1579_v56 = vpop.permute.xlu0 %1578 }
 0x1d6   : > { %1715 = vst.msk [vmem:[#allocation4] sm:$0xf] %vm1714_vm11, %v1712_v10  ;;  %v1521_v23 = vor.u32 %v1520_v13, %v1517_v12  ;;  %v1524_v25 = vshll.u32 %v1386_v9, 16  ;;  %v1998_v29 = vld [vmem:[#allocation3 + $0x38] sm:$0xf]  ;;  %v2683_v7 = vrot.slane %v2159_v14, 9 }
 0x1d7   : > { %1954 = vrot.lane.b32.xlu0 %v1940_v6, %s2902_s17  ;;  %1868 = vst.msk [vmem:[#allocation4] sm:$0xf] %vm1867_vm12, %v3558_v30  ;;  %v2220_v31 = vrot.slane %v2160_v17, 5  ;;  %v1809_v33 = vrot.slane %v1807_v19, 4  ;;  %v1812_v2 = vrot.slane %v1810_v60, 5  ;;  %v1924_v34 = vsel %vm3338_vm0, %v2676_v20, %v1923_v22 }
 0x1d8   : > { %2091 = vrot.lane.b32.xlu1 %v2090_v16, %s2903_s13  ;;  %v1522_v32 = vrot.slane %v1521_v23, 4  ;;  %v2096_v35 = vshrl.u32 %v1998_v29, 16  ;;  %v2099_v36 = vshll.u32 %v1998_v29, 16  ;;  %v1695_v37 = vld [vmem:[#allocation3 + $0x40] sm:$0xf]  ;;  %v1526_v38 = vrot.slane %v1524_v25, 5 }
 0x1d9   : > { %v2221_v30 = vsel %vm3338_vm0, %v2683_v7, %v2220_v31  ;;  %v1694_v28 = vld [vmem:[#allocation3 + $0x3c] sm:$0x1]  ;;  %v1813_v42 = vor.u32 %v1812_v2, %v1809_v33  ;;  %v1825_v43 = vshrl.u32 %v1695_v37, 16  ;;  %v1828_v44 = vshll.u32 %v1695_v37, 16  ;;  %v1362_v51 = vld [vmem:[#allocation3 + $0x38] sm:$0xf] }
 0x1da   : > { %v1527_v41 = vsel %vm3018_vm2, %v1522_v32, %v1526_v38  ;;  %v2098_v11 = vrot.slane %v2096_v35, 4  ;;  %v2101_v45 = vrot.slane %v2099_v36, 5  ;;  %v1816_v46 = vshll.u32 %v1694_v28, 16  ;;  %v1999_v48 = vld [vmem:[#allocation3 + $0x3c] sm:$0x1] }
 0x1db   : > { %v1814_v52 = vrot.slane %v1813_v42, 4  ;;  %v1827_v47 = vrot.slane %v1825_v43, 4  ;;  %v1830_v53 = vrot.slane %v1828_v44, 5  ;;  %1370 = vst.msk [vmem:[#allocation4 + $0x1c] sm:$0xf] %vm1137_vm14, %v1362_v51  ;;  %v2105_v59 = vshll.u32 %v1999_v48, 16 }
 0x1dc   : > { %v1639_v54 = vld [vmem:[#allocation3 + $0x40] sm:$0xf]  ;;  %v2102_v55 = vor.u32 %v2101_v45, %v2098_v11  ;;  %v1818_v57 = vrot.slane %v1816_v46, 5  ;;  %v1696_v18 = vld [vmem:[#allocation3 + $0x44] sm:$0x1]  ;;  %v2005_v62 = vshrl.u32 %v1988_v50, 16 }
 0x1dd   : > { %1925 = vrot.lane.b32.xlu2 %v1924_v34, %s2905_s9  ;;  %v1876_v39 = vpop.permute.xlu1 %1875  ;;  %v2008_v61 = vshll.u32 %v1988_v50, 16  ;;  %v1945_v1 = vld [vmem:[#allocation3 + $0x40] sm:$0xf]  ;;  %v1831_v5 = vor.u32 %v1830_v53, %v1827_v47  ;;  %v1857_v4 = vld [vmem:[#allocation3 + $0x44] sm:$0x1]  ;;  %v1834_v8 = vshll.u32 %v1696_v18, 16 }
 0x1de   : > { %1878 = vst.msk [vmem:[#allocation4 + $0x4] sm:$0xf] %vm1867_vm12, %v1876_v39  ;;  %v1819_v0 = vsel %vm3018_vm2, %v1814_v52, %v1818_v57  ;;  %v1856_v3 = vld [vmem:[#allocation3 + $0x40] sm:$0xe]  ;;  %v2103_v6 = vrot.slane %v2102_v55, 4  ;;  %v2107_v10 = vrot.slane %v2105_v59, 5 }
 0x1df   : > { %v1457_v40 = vpop.permute.xlu2 %1456  ;;  %1528 = vrot.lane.b32.xlu0 %v1527_v41, %s2895_s21  ;;  %v2000_v9 = vld [vmem:[#allocation3 + $0x40] sm:$0xf]  ;;  %v2007_v12 = vrot.slane %v2005_v62, 4  ;;  %v2677_v13 = vrot.slane %v1856_v3, 9  ;;  %v1933_v14 = vrot.slane %v1857_v4, 5  ;;  %v1832_v15 = vrot.slane %v1831_v5, 4 }
 0x1e0   : > { %1459 = vst.msk [vmem:[#allocation4 + $0xc] sm:$0xf] %vm1404_vm8, %v1457_v40  ;;  %2222 = vrot.lane.b32.xlu1 %v2221_v30, %s2904_s14  ;;  %v2010_v16 = vrot.slane %v2008_v61, 5  ;;  %v2108_v17 = vsel %vm3018_vm2, %v2103_v6, %v2107_v10  ;;  %v2114_v19 = vshrl.u32 %v2000_v9, 16  ;;  %v2117_v20 = vshll.u32 %v2000_v9, 16 }
 0x1e1   : > { %v1836_v23 = vrot.slane %v1834_v8, 5  ;;  %v1989_v60 = vld [vmem:[#allocation3 + $0x14] sm:$0x1]  ;;  %v1934_v29 = vsel %vm3338_vm0, %v2677_v13, %v1933_v14  ;;  %v2161_v32 = vld [vmem:[#allocation3 + $0x40] sm:$0xe] }
 0x1e2   : > { %v2011_v31 = vor.u32 %v2010_v16, %v2007_v12  ;;  %v2162_v33 = vld [vmem:[#allocation3 + $0x44] sm:$0x1]  ;;  %v2116_v2 = vrot.slane %v2114_v19, 4  ;;  %v2119_v34 = vrot.slane %v2117_v20, 5  ;;  %v2014_v36 = vshll.u32 %v1989_v60, 16  ;;  %v2764_v16 = vld [vmem:[#allocation2 + $0x18] sm:$0xff] }
 0x1e3   : > { %v1837_v7 = vsel %vm3018_vm2, %v1832_v15, %v1836_v23  ;;  %v1990_v37 = vld [vmem:[#allocation3 + $0x18] sm:$0xf]  ;;  %v2684_v38 = vrot.slane %v2161_v32, 9  ;;  %v2230_v39 = vrot.slane %v2162_v33, 5  ;;  %v2001_v28 = vld [vmem:[#allocation3 + $0x44] sm:$0x1] }
 0x1e4   : > { %v2012_v30 = vrot.slane %v2011_v31, 4  ;;  %v1939_v40 = vld [vmem:[#allocation3 + $0x10] sm:$0xf]  ;;  %v2120_v41 = vor.u32 %v2119_v34, %v2116_v2  ;;  %v2024_v42 = vshrl.u32 %v1990_v37, 16  ;;  %v2027_v43 = vshll.u32 %v1990_v37, 16  ;;  %v2760_v23 = vld [vmem:[%s3780_s3 + $0x18] sm:$0xff] }
 0x1e5   : > { %1677 = vrot.lane.b32.xlu2 %v1639_v54, %s2897_s23  ;;  %v1439_v58 = vpop.permute.xlu1 %1438  ;;  %v2016_v11 = vrot.slane %v2014_v36, 5  ;;  %v2123_v45 = vshll.u32 %v2001_v28, 16  ;;  %v2231_v48 = vsel %vm3338_vm0, %v2684_v38, %v2230_v39  ;;  %v2149_v51 = vld [vmem:[#allocation3 + $0x10] sm:$0xe]  ;;  %v2150_v52 = vld [vmem:[#allocation3 + $0x14] sm:$0x1] }
 0x1e6   : > { %1441 = vst.msk [vmem:[#allocation4 + $0x8] sm:$0xf] %vm1404_vm8, %v1439_v58  ;;  %v2151_v47 = vld [vmem:[#allocation3 + $0x18] sm:$0xe]  ;;  %v2121_v53 = vrot.slane %v2120_v41, 4  ;;  %v2026_v55 = vrot.slane %v2024_v42, 4 }
 0x1e7   : > { %v1749_v63 = vpop.permute.xlu2 %1748  ;;  %1581 = vst.msk [vmem:[#allocation4 + $0x8] sm:$0xf] %vm1560_vm9, %v1579_v56  ;;  %1820 = vrot.lane.b32.xlu0 %v1819_v0, %s2898_s29  ;;  %v2017_v50 = vsel %vm3018_vm2, %v2012_v30, %v2016_v11  ;;  %v2152_v54 = vld [vmem:[#allocation3 + $0x1c] sm:$0x1]  ;;  %v2029_v56 = vrot.slane %v2027_v43, 5  ;;  %v2125_v58 = vrot.slane %v2123_v45, 5 }
 0x1e8   : > { %1979 = vrot.lane.b32.xlu1 %v1945_v1, %s2902_s17  ;;  %v2678_v59 = vrot.slane %v2149_v51, 9  ;;  %v2169_v18 = vrot.slane %v2150_v52, 5  ;;  %v2679_v62 = vrot.slane %v2151_v47, 9  ;;  %v2180_v61 = vrot.slane %v2152_v54, 5  ;;  %v2758_v31 = vld [vmem:[%s3780_s3 + $0x8] sm:$0xff]  ;;  %v2757_v33 = vld [vmem:[%s3780_s3] sm:$0xff] }
 0x1e9   : > { %v2126_v0 = vsel %vm3018_vm2, %v2121_v53, %v2125_v58  ;;  %v2030_v1 = vor.u32 %v2029_v56, %v2026_v55  ;;  %s269_s23 = sand.u32 1, %s2882_s25  }
 0x1ea   : > { %v2170_v4 = vsel %vm3338_vm0, %v2678_v59, %v2169_v18  ;;  %v2181_v8 = vsel %vm3338_vm0, %v2679_v62, %v2180_v61  ;;  %s2479_s28 = scalar_lea.sflag [#allocation6], %s269_s23 }
 0x1eb   : > { %v2031_v9 = vrot.slane %v2030_v1, 4 }
 0x1ec   : > { %v1653_v22 = vpop.permute.xlu0 %1652 }
 0x1ed   : > { %2109 = vrot.lane.b32.xlu2 %v2108_v17, %s2903_s13  ;;  %1655 = vst.msk [vmem:[#allocation4 + $0x8] sm:$0xf] %vm1644_vm10, %v1653_v22  ;;  %v2304_v17 = vunpack.c.l.b16 %v2262_v26 }
 0x1ee   : > { %1751 = vst.msk [vmem:[#allocation4 + $0x8] sm:$0xf] %vm1714_vm11, %v1749_v63  ;;  %v1991_v63 = vld [vmem:[#allocation3 + $0x1c] sm:$0x1] }
 0x1ef   : > { %v3612_v25 = vpop.permute.xlu2 %1895  ;;  %1935 = vrot.lane.b32.xlu0 %v1934_v29, %s2905_s9  ;;  %v2033_v5 = vshll.u32 %v1991_v63, 16  ;;  %v2309_v20 = vpack.c.b16 %v2304_v17, %v2304_v17  ;;  %v2759_v29 = vld [vmem:[%s3780_s3 + $0x10] sm:$0xff] }
 0x1f0   : > { %1838 = vrot.lane.b32.xlu1 %v1837_v7, %s2898_s29  ;;  %v1589_v35 = vpop.permute.xlu1 %1588  ;;  %s2560_s29 = sshll.u32 %s269_s23, 5 }
 0x1f1   : > { %1591 = vst.msk [vmem:[#allocation4 + $0xc] sm:$0xf] %vm1560_vm9, %v1589_v35  ;;  %v2035_v12 = vrot.slane %v2033_v5, 5  ;;  %v2826_v5 = vld [vmem:[%s3783_s6] ss:$0 sm:$0xff] }
 0x1f3   : > { %v2036_v13 = vsel %vm3018_vm2, %v2031_v9, %v2035_v12  ;;  %vm2327_vm2 = vcmask 1043456  }
 0x1f4   : > { %v1960_v44 = vpop.permute.xlu0 %1959  ;;  %v2329_v22 = vsel %vm2327_vm2, %v2309_v20, 0 }
 0x1f5   : > { %1948 = vrot.lane.b32.xlu2 %v1939_v40, %s2902_s17  ;;  %2766 = vmatpush.bf16.msra.mxu3 %v2329_v22 }
 0x1f6   : > { %2334 = vmatpush.bf16.msra.mxu1 %v2329_v22 }
 0x1f7   : > { %v1599_v46 = vpop.permute.xlu2 %1598  ;;  %2232 = vrot.lane.b32.xlu0 %v2231_v48, %s2904_s14 }
 0x1f8   : > { %2018 = vrot.lane.b32.xlu1 %v2017_v50, %s2903_s13  ;;  %v1886_v57 = vpop.permute.xlu1 %1885 }
 0x1f9   : > { %1888 = vst.msk [vmem:[#allocation4 + $0x8] sm:$0xf] %vm1867_vm12, %v1886_v57  ;;  %2767 = vmatpush.bf16.msra.mxu3 %v2760_v23 }
 0x1fa   : > { %1962 = vst.msk [vmem:[#allocation4 + $0x8] sm:$0xf] %vm1951_vm13, %v1960_v44  ;;  %2335 = vmatpush.bf16.msra.mxu1 %v2760_v23 }
 0x1fd   : > { %2127 = vrot.lane.b32.xlu2 %v2126_v0, %s2903_s13  ;;  %2768 = vmatpush.bf16.msra.mxu3 %v2759_v29 }
 0x1fe   : > { %v1767_v3 = vpop.permute.xlu0 %1766  ;;  %2336 = vmatpush.bf16.msra.mxu1 %v2759_v29 }
 0x1ff   : > { %v1663_v6 = vpop.permute.xlu2 %1662  ;;  %2171 = vrot.lane.b32.xlu0 %v2170_v4, %s2904_s14 }
 0x200   : > { %2182 = vrot.lane.b32.xlu1 %v2181_v8, %s2904_s14  ;;  %v1658_v10 = vpop.permute.xlu1 %1657 }
 0x201   : > { %1660 = vst.msk [vmem:[#allocation4 + $0xc] sm:$0xf] %vm1644_vm10, %v1658_v10  ;;  %2769 = vmatpush.bf16.msra.mxu3 %v2758_v31 }
 0x202   : > { %1769 = vst.msk [vmem:[#allocation4 + $0xc] sm:$0xf] %vm1714_vm11, %v1767_v3  ;;  %2337 = vmatpush.bf16.msra.mxu1 %v2758_v31  ;;  %v2827_v3 = vld [vmem:[%s3781_s4] ss:$0 sm:$0xff] }
 0x203   : > { %1898 = vst.msk [vmem:[#allocation4 + $0xc] sm:$0xf] %vm1867_vm12, %v3612_v25 }
 0x205   : > { %2037 = vrot.lane.b32.xlu2 %v2036_v13, %s2903_s13  ;;  %2770 = vmatpush.bf16.msra.mxu3 %v2757_v33  ;;  %s2490_s13 = scalar_lea.hbm %s3784_s7, %s2765_s22  ;;  %s2848_s22 = scalar_lea.hbm %s3784_s7, 64 }
 0x206   : > { %v1475_v27 = vpop.permute.xlu0 %1474  ;;  %2338 = vmatpush.bf16.msra.mxu1 %v2757_v33  ;;  %s2493_s16 = sshll.u32 %s2490_s13, 4  ;;  %s2494_s16 = int_to_ptr.hbm [resolvable:$true] %s2493_s16 }
 0x207   : > { %1477 = vst.msk [vmem:[#allocation4 + $0x10] sm:$0xf] %vm1404_vm8, %v1475_v27  ;;  %v2056_v14 = vpop.permute.xlu2 %2055  ;;  %s2842_s9 = sshra.s32 %s2494_s16, 4  ;;  %s2843_s9 = int_to_ptr.hbm [resolvable:$true] %s2842_s9 }
 0x208   : > { %1601 = vst.msk [vmem:[#allocation4 + $0x10] sm:$0xf] %vm1560_vm9, %v1599_v46  ;;  %v2193_v15 = vpop.permute.xlu1 %2192  ;;  %s2844_s20 = scalar_lea.hbm %s2843_s9, 32  ;;  %p2849_p0 = scmp.lt.s32.totalorder %s2843_s9, %s3784_s7 }
 0x209   : > { %1665 = vst.msk [vmem:[#allocation4 + $0x10] sm:$0xf] %vm1644_vm10, %v1663_v6  ;;  %p2845_p11 = scmp.ne.s32.totalorder %s2843_s9, %s2844_s20  ;;  %p2850_p1 = scmp.lt.s32.totalorder %s2848_s22, %s2844_s20 }
 0x20a   : > { %2058 = vst.msk [vmem:[#allocation4 + $0x8] sm:$0xf] %vm2021_vm1, %v2056_v14 }
 0x20b   : > { %2195 = vst.msk [vmem:[#allocation4 + $0x8] sm:$0xf] %vm2174_vm3, %v2193_v15  ;;  %p2846_p12 = pnand %p2845_p11, %p2984_p5  ;;  %p2851_p2 = por %p2850_p1, %p2849_p0 }
 0x20d   : > { %2399 = vrot.lane.b32.xlu2 %v2764_v16, %s2900_s18  ;;  %s3722_s18 = scalar_lea.vmem [#allocation5], %s2560_s29  ;;  %p2847_p13 = pneg %p2846_p12 }
 0x20e   : > { %s2491_s15 = sshll.u32 %s3722_s18, 4  ;;  %s2492_s15 = int_to_ptr.vmem [resolvable:$true] %s2491_s15 }
 0x20f   : > { %v2203_v19 = vpop.permute.xlu2 %2202  ;;  %p2852_p3 = pnand %p2851_p2, %p2847_p13 }
 0x215   : > { %v1965_v60 = vpop.permute.xlu1 %1964 }
 0x216   : > { %1967 = vst.msk [vmem:[#allocation4 + $0xc] sm:$0xf] %vm1951_vm13, %v1965_v60 }
 0x217   : > { %v1970_v25 = vpop.permute.xlu2 %1969 }
 0x219   : > { %v1609_v7 = vpop.permute.xlu0 %1608 }
 0x21f   : > { %v1803_v32 = vpop.permute.xlu2 %1802 }
 0x220   : > { %v1493_v2 = vpop.permute.xlu1 %1492 }
 0x221   : > { %1495 = vst.msk [vmem:[#allocation4 + $0x14] sm:$0xf] %vm1404_vm8, %v1493_v2  ;;  %v1906_v34 = vpop.permute.xlu0 %1905 }
 0x222   : > { %1611 = vst.msk [vmem:[#allocation4 + $0x14] sm:$0xf] %vm1560_vm9, %v1609_v7 }
 0x227   : > { %v1511_v35 = vpop.permute.xlu2 %1510 }
 0x228   : > { %1513 = vst.msk [vmem:[#allocation4 + $0x18] sm:$0xf] %vm1404_vm8, %v1511_v35  ;;  %v1785_v36 = vpop.permute.xlu1 %1784 }
 0x229   : > { %1787 = vst.msk [vmem:[#allocation4 + $0x10] sm:$0xf] %vm1714_vm11, %v1785_v36  ;;  %v1668_v37 = vpop.permute.xlu0 %1667 }
 0x22a   : > { %1908 = vst.msk [vmem:[#allocation4 + $0x10] sm:$0xf] %vm1867_vm12, %v1906_v34 }
 0x22b   : > { %1972 = vst.msk [vmem:[#allocation4 + $0x10] sm:$0xf] %vm1951_vm13, %v1970_v25 }
 0x22c   : > { %1670 = vst.msk [vmem:[#allocation4 + $0x14] sm:$0xf] %vm1644_vm10, %v1668_v37 }
 0x22d   : > { %1805 = vst.msk [vmem:[#allocation4 + $0x14] sm:$0xf] %vm1714_vm11, %v1803_v32 }
 0x22f   : > { %v1629_v38 = vpop.permute.xlu2 %1628 }
 0x230   : > { %v1916_v39 = vpop.permute.xlu1 %1915 }
 0x231   : > { %1918 = vst.msk [vmem:[#allocation4 + $0x14] sm:$0xf] %vm1867_vm12, %v1916_v39  ;;  %v2074_v30 = vpop.permute.xlu0 %2073 }
 0x232   : > { %2076 = vst.msk [vmem:[#allocation4 + $0xc] sm:$0xf] %vm2021_vm1, %v2074_v30 }
 0x233   : > { %2205 = vst.msk [vmem:[#allocation4 + $0xc] sm:$0xf] %vm2174_vm3, %v2203_v19 }
 0x237   : > { %v1926_v28 = vpop.permute.xlu2 %1925 }
 0x238   : > { %v1619_v40 = vpop.permute.xlu1 %1618 }
 0x239   : > { %1621 = vst.msk [vmem:[#allocation4 + $0x18] sm:$0xf] %vm1560_vm9, %v1619_v40  ;;  %v2213_v41 = vpop.permute.xlu0 %2212 }
 0x23a   : > { %v2754_v42 = vld [vmem:[#allocation4 + $0x8] sm:$0xff] }
 0x23b   : > { %2719 = vmatmul.msk.bf16.vlgmr.msra.gmra.mxu3 %vm2314_vm5, %v2754_v42 }
 0x23f   : > { %v1678_v43 = vpop.permute.xlu2 %1677 }
 0x241   : > { %v1975_v44 = vpop.permute.xlu0 %1974 }
 0x242   : > { %v1673_v11 = vpop.permute.xlu1 %1672  ;;  %1977 = vst.msk [vmem:[#allocation4 + $0x14] sm:$0xf] %vm1951_vm13, %v1975_v44 }
 0x243   : > { %1675 = vst.msk [vmem:[#allocation4 + $0x18] sm:$0xf] %vm1644_vm10, %v1673_v11 }
 0x247   : > { %v2110_v45 = vpop.permute.xlu2 %2109 }
 0x248   : > { %2112 = vst.msk [vmem:[#allocation4 + $0x14] sm:$0xf] %vm2021_vm1, %v2110_v45 }
 0x249   : > { %v1955_v46 = vpop.permute.xlu0 %1954 }
 0x24a   : > { %v2092_v48 = vpop.permute.xlu1 %2091  ;;  %1957 = vst.msk [vmem:[#allocation4 + $0x4] sm:$0xf] %vm1951_vm13, %v1955_v46 }
 0x24b   : > { %2094 = vst.msk [vmem:[#allocation4 + $0x10] sm:$0xf] %vm2021_vm1, %v2092_v48 }
 0x24c   : > { %2215 = vst.msk [vmem:[#allocation4 + $0x10] sm:$0xf] %vm2174_vm3, %v2213_v41 }
 0x24f   : > { %v1949_v50 = vpop.permute.xlu2 %1948 }
 0x250   : > { %1952 = vst.msk [vmem:[#allocation4] sm:$0xf] %vm1951_vm13, %v1949_v50 }
 0x251   : > { %v1529_v51 = vpop.permute.xlu0 %1528 }
 0x252   : > { %v2223_v52 = vpop.permute.xlu1 %2222  ;;  %1531 = vst.msk [vmem:[#allocation4 + $0x1c] sm:$0xf] %vm1404_vm8, %v1529_v51 }
 0x253   : > { %1631 = vst.msk [vmem:[#allocation4 + $0x1c] sm:$0xf] %vm1560_vm9, %v1629_v38 }
 0x254   : > { %1680 = vst.msk [vmem:[#allocation4 + $0x1c] sm:$0xf] %vm1644_vm10, %v1678_v43 }
 0x255   : > { %2225 = vst.msk [vmem:[#allocation4 + $0x14] sm:$0xf] %vm2174_vm3, %v2223_v52 }
 0x257   : > { %v2128_v47 = vpop.permute.xlu2 %2127 }
 0x259   : > { %v1821_v53 = vpop.permute.xlu0 %1820 }
 0x25a   : > { %v1980_v54 = vpop.permute.xlu1 %1979  ;;  %1823 = vst.msk [vmem:[#allocation4 + $0x18] sm:$0xf] %vm1714_vm11, %v1821_v53 }
 0x25b   : > { %1928 = vst.msk [vmem:[#allocation4 + $0x18] sm:$0xf] %vm1867_vm12, %v1926_v28 }
 0x25c   : > { %1982 = vst.msk [vmem:[#allocation4 + $0x18] sm:$0xf] %vm1951_vm13, %v1980_v54  ;;  %v2755_v55 = vld [vmem:[#allocation4 + $0x10] sm:$0xff] }
 0x25d   : > { %2130 = vst.msk [vmem:[#allocation4 + $0x18] sm:$0xf] %vm2021_vm1, %v2128_v47  ;;  %2720 = vmatmul.msk.bf16.gmra.mxu3 %vm2314_vm5, %v2755_v55 }
 0x25f   : > { %v2038_v56 = vpop.permute.xlu2 %2037 }
 0x260   : > { %2040 = vst.msk [vmem:[#allocation4 + $0x4] sm:$0xf] %vm2021_vm1, %v2038_v56 }
 0x261   : > { %v1936_v57 = vpop.permute.xlu0 %1935 }
 0x262   : > { %v1839_v58 = vpop.permute.xlu1 %1838 }
 0x263   : > { %1841 = vst.msk [vmem:[#allocation4 + $0x1c] sm:$0xf] %vm1714_vm11, %v1839_v58 }
 0x264   : > { %1938 = vst.msk [vmem:[#allocation4 + $0x1c] sm:$0xf] %vm1867_vm12, %v1936_v57 }
 0x265   : > { %1987 = vst.msk [vmem:[#allocation4 + $0x1c] sm:$0xf] %vm1951_vm13, %v3503_v24 }
 0x266   : > { %2148 = vst.msk [vmem:[#allocation4 + $0x1c] sm:$0xf] %vm2021_vm1, %v3538_v49 }
 0x267   : > { %2245 = vst.msk [vmem:[#allocation4 + $0x1c] sm:$0xf] %vm2174_vm3, %v3550_v21  ;;  %v2400_v59 = vpop.permute.xlu2 %2399  ;;  %v2426_v21 = vpop.f32.mrf.mxu2 }
 0x268   : > { %2741 = vmatmul.msk.bf16.gmra.mxu2 %vm2401_vm6, %v2400_v59  ;;  %v2427_v40 = vadd.f32 %v2826_v5, %v2426_v21 }
 0x269   : > { %v2233_v18 = vpop.permute.xlu0 %2232 }
 0x26a   : > { %v2019_v62 = vpop.permute.xlu1 %2018  ;;  %2235 = vst.msk [vmem:[#allocation4 + $0x18] sm:$0xf] %vm2174_vm3, %v2233_v18 }
 0x26b   : > { %2022 = vst.msk [vmem:[#allocation4] sm:$0xf] %vm2021_vm1, %v2019_v62 }
 0x26f   : > { %v2428_v0 = vpop.f32.mrf.mxu2 }
 0x270   : > { %v2429_v53 = vadd.f32 %v2826_v5, %v2428_v0 }
 0x271   : > { %v2172_v61 = vpop.permute.xlu0 %2171  ;;  %v2756_v24 = vld [vmem:[#allocation4 + $0x18] sm:$0xff] }
 0x272   : > { %v2183_v63 = vpop.permute.xlu1 %2182  ;;  %2175 = vst.msk [vmem:[#allocation4] sm:$0xf] %vm2174_vm3, %v2172_v61  ;;  %2721 = vmatmul.msk.bf16.gmra.mxu3 %vm2314_vm5, %v2756_v24 }
 0x273   : > { %2185 = vst.msk [vmem:[#allocation4 + $0x4] sm:$0xf] %vm2174_vm3, %v2183_v63 }
 0x277   : > { %v2431_v1 = vpop.f32.mrf.mxu2 }
 0x278   : > { %v2432_v4 = vadd.f32 %v2826_v5, %v2431_v1 }
 0x27a   : > { %v2753_v49 = vld [vmem:[#allocation4] sm:$0xff] }
 0x27b   : > { %2718 = vmatmul.msk.bf16.vlgmr.msra.gmra.mxu1 %vm2314_vm5, %v2753_v49 }
 0x27f   : > { %v2433_v12 = vpop.f32.mrf.mxu2 }
 0x280   : > { %v2434_v14 = vadd.f32 %v2826_v5, %v2433_v12 }
 0x287   : > { %v2436_v19 = vpop.f32.mrf.mxu2 }
 0x288   : > { %v2437_v22 = vadd.f32 %v2826_v5, %v2436_v19 }
 0x28f   : > { %v2438_v29 = vpop.f32.mrf.mxu2 }
 0x290   : > { %v2439_v32 = vadd.f32 %v2826_v5, %v2438_v29 }
 0x2be   : > { %v2345_v6 = vpop.f32.mrf.mxu3 }
 0x2bf   : > { %v2346_v8 = vadd.f32 %v2827_v3, %v2345_v6 }
 0x2c1   : > { %v2448_v9 = vadd.f32 %v2432_v4, %v2346_v8 }
 0x2c3   : > { %v2456_v10 = vmax.f32 %v2448_v9, 0.0 }
 0x2c5   : > { %v2464_v13 = vpack.c.bf16 %v2456_v10, %v2456_v10 }
 0x2c6   : > { %v2347_v27 = vpop.f32.mrf.mxu3 }
 0x2c7   : > { %2472 = vst.msk [vmem:[%s3722_s18 + $0x8] sm:$0xf] %vm1137_vm14, %v2464_v13  ;;  %v2348_v15 = vadd.f32 %v2827_v3, %v2347_v27 }
 0x2c9   : > { %v2449_v16 = vadd.f32 %v2434_v14, %v2348_v15 }
 0x2cb   : > { %v2457_v26 = vmax.f32 %v2449_v16, 0.0 }
 0x2cd   : > { %v2465_v17 = vpack.c.bf16 %v2457_v26, %v2457_v26 }
 0x2cf   : > { %2473 = vst.msk [vmem:[%s3722_s18 + $0xc] sm:$0xf] %vm1137_vm14, %v2465_v17 }
 0x2e0   : > { %v2350_v20 = vpop.f32.mrf.mxu3 }
 0x2e1   : > { %v2351_v23 = vadd.f32 %v2827_v3, %v2350_v20 }
 0x2e3   : > { %v2450_v60 = vadd.f32 %v2437_v22, %v2351_v23 }
 0x2e5   : > { %v2458_v25 = vmax.f32 %v2450_v60, 0.0 }
 0x2e7   : > { %v2466_v7 = vpack.c.bf16 %v2458_v25, %v2458_v25 }
 0x2e8   : > { %v2352_v31 = vpop.f32.mrf.mxu3 }
 0x2e9   : > { %2474 = vst.msk [vmem:[%s3722_s18 + $0x10] sm:$0xf] %vm1137_vm14, %v2466_v7  ;;  %v2353_v33 = vadd.f32 %v2827_v3, %v2352_v31 }
 0x2eb   : > { %v2451_v2 = vadd.f32 %v2439_v32, %v2353_v33  ;;  %v2441_v36 = vpop.f32.mrf.mxu2 }
 0x2ec   : > { %v2442_v38 = vadd.f32 %v2826_v5, %v2441_v36 }
 0x2ed   : > { %v2459_v34 = vmax.f32 %v2451_v2, 0.0 }
 0x2ef   : > { %v2467_v35 = vpack.c.bf16 %v2459_v34, %v2459_v34 }
 0x2f1   : > { %2475 = vst.msk [vmem:[%s3722_s18 + $0x14] sm:$0xf] %vm1137_vm14, %v2467_v35 }
 0x2f3   : > { %v2443_v43 = vpop.f32.mrf.mxu2 }
 0x2f4   : > { %v2444_v48 = vadd.f32 %v2826_v5, %v2443_v43 }
 0x2f5   : > { %v2355_v37 = vpop.f32.mrf.mxu3 }
 0x2f6   : > { %v2356_v39 = vadd.f32 %v2827_v3, %v2355_v37 }
 0x2f8   : > { %v2452_v30 = vadd.f32 %v2442_v38, %v2356_v39  ;;  %v2340_v28 = vpop.f32.mrf.mxu1 }
 0x2f9   : > { %v2341_v41 = vadd.f32 %v2827_v3, %v2340_v28 }
 0x2fa   : > { %v2460_v42 = vmax.f32 %v2452_v30, 0.0 }
 0x2fb   : > { %v2446_v44 = vadd.f32 %v2427_v40, %v2341_v41 }
 0x2fc   : > { %v2468_v11 = vpack.c.bf16 %v2460_v42, %v2460_v42 }
 0x2fd   : > { %v2454_v45 = vmax.f32 %v2446_v44, 0.0  ;;  %v2357_v46 = vpop.f32.mrf.mxu3 }
 0x2fe   : > { %2476 = vst.msk [vmem:[%s3722_s18 + $0x18] sm:$0xf] %vm1137_vm14, %v2468_v11  ;;  %v2358_v50 = vadd.f32 %v2827_v3, %v2357_v46 }
 0x2ff   : > { %v2462_v51 = vpack.c.bf16 %v2454_v45, %v2454_v45 }
 0x300   : > { %v2453_v52 = vadd.f32 %v2444_v48, %v2358_v50  ;;  %v2342_v47 = vpop.f32.mrf.mxu1 }
 0x301   : > { %2470 = vst.msk [vmem:[%s3722_s18] sm:$0xf] %vm1137_vm14, %v2462_v51  ;;  %v2343_v54 = vadd.f32 %v2827_v3, %v2342_v47 }
 0x302   : > { %v2461_v55 = vmax.f32 %v2453_v52, 0.0 }
 0x303   : > { %v2447_v56 = vadd.f32 %v2429_v53, %v2343_v54 }
 0x304   : > { %v2469_v57 = vpack.c.bf16 %v2461_v55, %v2461_v55 }
 0x305   : > { %v2455_v58 = vmax.f32 %v2447_v56, 0.0 }
 0x306   : > { %2477 = vst.msk [vmem:[%s3722_s18 + $0x1c] sm:$0xf] %vm1137_vm14, %v2469_v57 }
 0x307   : > { %v2463_v59 = vpack.c.bf16 %v2455_v58, %v2455_v58 }
 0x309   : > { %2471 = vst.msk [vmem:[%s3722_s18 + $0x4] sm:$0xf] %vm1137_vm14, %v2463_v59 }
 0x30a   : > { %2855 = shalt.err (!%p2852_p3)
}
 0x30b   : > { %2772 = dma.vmem_to_hbm [thread:$0]  (%p2984_p5), %s2492_s15, 512, %s2494_s16, %s2479_s28, %s2904_s14, %s2904_s14, %s2893_s19  }
 0x30c PF: > { %p2778_p4 = scmp.ge.s32.totalorder %s2890_s27, 2  ;;  %s2508_s23 = sand.u32 1, %s2878_s24  }
 0x30d   : > { %s2509_s18 = scalar_lea.sflag [#allocation6], %s2508_s23 }
 0x30e   : > { %p2775_p7 = pnand %p2778_p4, %p2988_p6 }
 0x310   : > { %p2776_p8 = pneg %p2775_p7 }
 0x312   : > { %2873 = dma.done.wait (%p2776_p8), %s2509_s18, 512  }
 0x313   : > { %2875 = vsyncadd (%p2776_p8), %s2509_s18, 4294966784  ;;  %p17_p9 = scmp.ge.s32.totalorder %s2971_s30, 4   ;;  %s3797_s24 = smov %s2882_s25 }
 0x314   : > { %s3798_s25 = smov %s2886_s26  ;;  %s3799_s26 = smov %s2982_s10 }
 0x315   : > { %s3800_s27 = smov %s2971_s30  ;;  %19 = sbr.rel (!%p17_p9) target bundleno = 3 (0x3), region = 97 }
 0x31a   :  { %2515 = vsyncpa [#allocation6], 1 }
 0x31b   :  { %2517 = vsyncpa [#allocation6 + $0x1], 1 }

</bundles_post_ra>
